<compile_context>
chip_gen: v7x
topology: tpu7x:2x2x1
jax: 0.10.0
libtpu: 0.0.40
codegen_flags: <defaults>
</compile_context>

<pallas_src>
import functools

import numpy as np
import jax
import jax.numpy as jnp
from jax import lax
from jax.experimental import pallas as pl
from jax.experimental.pallas import tpu as pltpu


DEFAULT_T_BLOCK = 8
VMEM_LIMIT_BYTES = 32 * 1024 * 1024   # >= v5e's 16-MiB default scoped limit, safe on all gens


def _sigmoid(x):
    # sigmoid(x) == 0.5 * tanh(0.5 * x) + 0.5  ->  one EUP op instead of exp + reciprocal.
    return 0.5 * jnp.tanh(0.5 * x) + 0.5


# ----------------------------- Pallas kernel --------------------------------

def _lstm_recurrence_kernel(gx_ref, w_hh_hbm, out_ref,
                            w_hh_vmem, h_ref, c_ref, dma_sem):
    """Recurrent part of one LSTM layer over a block of T_BLOCK timesteps.

    Grid axis 0 = time blocks (sequential, "arbitrary").

    gx_ref    : (T_BLOCK, B, 4H) f32   precomputed x_t @ W_ih^T + (b_ih + b_hh)
    w_hh_hbm  : (H, 4H)          HBM   recurrent weight (pre-transposed, matmul dtype)
    out_ref   : (T_BLOCK, B, H)  f32   h_t outputs for this block
    w_hh_vmem : (H, 4H)          VMEM  single-buffered resident copy of W_hh
    h_ref     : (B, H)           VMEM  carried hidden state (f32)
    c_ref     : (B, H)           VMEM  carried cell state (f32)
    dma_sem   : DMA semaphore for the one-time weight copy
    """
    tb = pl.program_id(0)
    t_block = gx_ref.shape[0]
    H = h_ref.shape[1]

    @pl.when(tb == 0)
    def _init():
        h_ref[...] = jnp.zeros_like(h_ref)
        c_ref[...] = jnp.zeros_like(c_ref)
        # One-time, single-buffered weight DMA (instead of a double-buffered
        # BlockSpec) -> half the resident weight VMEM; matters on v7x (64 MiB).
        cp = pltpu.make_async_copy(w_hh_hbm, w_hh_vmem, dma_sem)
        cp.start()
        cp.wait()

    w_hh = w_hh_vmem[...]                        # (H, 4H), matmul dtype (bf16)

    def step(i, carry):
        h_prev, c_prev = carry                   # f32 (B, H)
        # Only the recurrent matmul sits on the serial critical path; the input
        # projection + bias were hoisted into the precomputed gate slab gx.
        gates = gx_ref[i] + jnp.dot(h_prev.astype(w_hh.dtype), w_hh,
                                    preferred_element_type=jnp.float32)   # (B, 4H) f32
        # PyTorch gate order: i, f, g, o. Slices are lane-aligned when H % 128 == 0.
        i_g = _sigmoid(gates[:, 0 * H:1 * H])
        f_g = _sigmoid(gates[:, 1 * H:2 * H])
        g_g = jnp.tanh(gates[:, 2 * H:3 * H])
        o_g = _sigmoid(gates[:, 3 * H:4 * H])
        c_new = f_g * c_prev + i_g * g_g
        h_new = o_g * jnp.tanh(c_new)
        out_ref[i] = h_new.astype(out_ref.dtype)
        return h_new, c_new

    h_fin, c_fin = lax.fori_loop(0, t_block, step,
                                 (h_ref[...], c_ref[...]), unroll=True)
    h_ref[...] = h_fin
    c_ref[...] = c_fin


def lstm_layer_recurrence(gates_x, w_hh_t, *, t_block=DEFAULT_T_BLOCK):
    """Run the recurrent part of one LSTM layer over the full sequence.

    gates_x : (S, B, 4H) f32   precomputed input projection incl. bias
    w_hh_t  : (H, 4H)          recurrent weight, pre-transposed, matmul dtype (bf16)
    returns : (S, B, H)  f32   full hidden-state sequence
    """
    S, B, G = gates_x.shape
    H = G // 4

    n_blocks = pl.cdiv(S, t_block)
    S_pad = n_blocks * t_block
    if S_pad != S:
        # Zero-pad time; padded steps only affect state past t=S-1, outputs dropped.
        gates_x = jnp.pad(gates_x, ((0, S_pad - S), (0, 0), (0, 0)))

    out = pl.pallas_call(
        _lstm_recurrence_kernel,
        out_shape=jax.ShapeDtypeStruct((S_pad, B, H), jnp.float32),
        grid_spec=pltpu.PrefetchScalarGridSpec(
            num_scalar_prefetch=0,
            grid=(n_blocks,),
            in_specs=[
                pl.BlockSpec((t_block, B, G), lambda tb: (tb, 0, 0)),
                pl.BlockSpec(memory_space=pl.ANY),       # W_hh: manual single-buffer DMA
            ],
            out_specs=pl.BlockSpec((t_block, B, H), lambda tb: (tb, 0, 0)),
            scratch_shapes=[
                pltpu.VMEM((H, G), w_hh_t.dtype),        # resident W_hh
                pltpu.VMEM((B, H), jnp.float32),         # h state
                pltpu.VMEM((B, H), jnp.float32),         # c state
                pltpu.SemaphoreType.DMA(()),
            ],
        ),
        compiler_params=pltpu.CompilerParams(
            dimension_semantics=("arbitrary",),          # time is sequential
            vmem_limit_bytes=VMEM_LIMIT_BYTES,
        ),
    )(gates_x, w_hh_t)
    return out[:S]


def lstm_input_projection(x, w_ih_t, b):
    """gates_x = x @ W_ih^T + (b_ih + b_hh) as ONE large matmul (MXU via XLA)."""
    S, B, D = x.shape
    G = w_ih_t.shape[1]
    xf = x.reshape(S * B, D).astype(w_ih_t.dtype)
    gx = jnp.dot(xf, w_ih_t, preferred_element_type=jnp.float32) + b[None, :]
    return gx.reshape(S, B, G)


# ----------------------------- eLSTM module ----------------------------------

def _orthogonal(key, shape, gain):
    """Deterministic orthogonal init (like nn.init.orthogonal_)."""
    rows, cols = shape
    n = max(rows, cols)
    a = jax.random.normal(key, (n, n), dtype=jnp.float32)
    q, r = jnp.linalg.qr(a)
    q = q * jnp.sign(jnp.diag(r))[None, :]
    return gain * q[:rows, :cols]


def init_elstm_params(key, input_size, hidden_size, num_layers):
    """PyTorch nn.LSTM-shaped parameters:
       weight_ih_l{k}: (4H, D_in_k), weight_hh_l{k}: (4H, H),
       bias_ih_l{k}, bias_hh_l{k}: (4H,). Gate order: i, f, g, o.
       Layer 0 weights orthogonal with gain sqrt(2) (as in eLSTM.__init__)."""
    params = []
    k = 1.0 / np.sqrt(hidden_size)
    for layer in range(num_layers):
        d_in = input_size if layer == 0 else hidden_size
        key, k1, k2, k3, k4 = jax.random.split(key, 5)
        if layer == 0:
            w_ih = _orthogonal(k1, (4 * hidden_size, d_in), gain=np.sqrt(2.0))
            w_hh = _orthogonal(k2, (4 * hidden_size, hidden_size), gain=np.sqrt(2.0))
        else:
            w_ih = jax.random.uniform(k1, (4 * hidden_size, d_in),
                                      minval=-k, maxval=k, dtype=jnp.float32)
            w_hh = jax.random.uniform(k2, (4 * hidden_size, hidden_size),
                                      minval=-k, maxval=k, dtype=jnp.float32)
        b_ih = jax.random.uniform(k3, (4 * hidden_size,), minval=-k, maxval=k,
                                  dtype=jnp.float32)
        b_hh = jax.random.uniform(k4, (4 * hidden_size,), minval=-k, maxval=k,
                                  dtype=jnp.float32)
        params.append((w_ih, w_hh, b_ih, b_hh))
    return params


def prepare_elstm_params(params, matmul_dtype=jnp.bfloat16):
    """One-time prep (do at init, not per forward): transpose weights to
    (D_in, 4H)/(H, 4H), combine biases, cast matmul operands to bf16."""
    prepped = []
    for (w_ih, w_hh, b_ih, b_hh) in params:
        prepped.append((jnp.transpose(w_ih).astype(matmul_dtype),
                        jnp.transpose(w_hh).astype(matmul_dtype),
                        (b_ih + b_hh).astype(jnp.float32)))
    return prepped


def elstm_forward(x, prepped_params, *, t_block=DEFAULT_T_BLOCK):
    """eLSTM.forward: num_layers stacked LSTM layers with zero (h0, c0);
    returns the full output sequence `out` of shape (S, B, H).

    x: (S, B, input_size) float32
    """
    # TODO(synk): nn.LSTM inter-layer dropout (p=0.2, training mode only) is omitted
    # (inference semantics; deterministic kernel).
    h = x
    for (w_ih_t, w_hh_t, b) in prepped_params:
        gx = lstm_input_projection(h, w_ih_t, b)              # (S, B, 4H), one big matmul
        h = lstm_layer_recurrence(gx, w_hh_t, t_block=t_block)
    return h


# ----------------------------- pure-JAX reference ----------------------------

def elstm_reference(x, params, matmul_dtype=jnp.bfloat16):
    """Mirrors the kernel's math (same decomposition and bf16 matmul casts)."""
    h = x
    for (w_ih, w_hh, b_ih, b_hh) in params:
        S, B, _ = h.shape
        H = w_hh.shape[1]
        b = (b_ih + b_hh)
        gx = (jnp.dot(h.reshape(S * B, -1).astype(matmul_dtype),
                      w_ih.T.astype(matmul_dtype),
                      preferred_element_type=jnp.float32) + b[None, :]
              ).reshape(S, B, 4 * H)
        w_hh_t = w_hh.T.astype(matmul_dtype)

        def step(carry, gx_t):
            h_prev, c_prev = carry
            gates = gx_t + jnp.dot(h_prev.astype(matmul_dtype), w_hh_t,
                                   preferred_element_type=jnp.float32)
            i = _sigmoid(gates[:, 0 * H:1 * H])
            f = _sigmoid(gates[:, 1 * H:2 * H])
            g = jnp.tanh(gates[:, 2 * H:3 * H])
            o = _sigmoid(gates[:, 3 * H:4 * H])
            c_new = f * c_prev + i * g
            h_new = o * jnp.tanh(c_new)
            return (h_new, c_new), h_new

        init = (jnp.zeros((B, H), jnp.float32), jnp.zeros((B, H), jnp.float32))
        _, out = lax.scan(step, init, gx)
        h = out
    return h


# ----------------------------------- main ------------------------------------

if __name__ == "__main__":
    # Small shapes consistent with the module (docs: (seq_len, B, 2048) -> hidden 1024,
    # 2 layers). Chosen so gate slices / output rows are lane-aligned and sublanes are
    # filled: B=8, H=128.
    seq_len = 32
    batch = 8
    input_size = 128
    hidden_size = 128
    num_layers = 2

    key = jax.random.PRNGKey(0)
    kx, kp = jax.random.split(key)
    x = jax.random.normal(kx, (seq_len, batch, input_size), dtype=jnp.float32)
    params = init_elstm_params(kp, input_size, hidden_size, num_layers)
    prepped = prepare_elstm_params(params, matmul_dtype=jnp.bfloat16)

    fwd = jax.jit(functools.partial(elstm_forward, t_block=DEFAULT_T_BLOCK))
    out = jax.block_until_ready(fwd(x, prepped))

    ref = jax.block_until_ready(jax.jit(elstm_reference)(x, params))
    assert out.shape == (seq_len, batch, hidden_size)
    np.testing.assert_allclose(np.asarray(out), np.asarray(ref), rtol=2e-2, atol=2e-2)

    print("KERNEL_OK")
</pallas_src>

<mosaic_0001>
module attributes {stable_mosaic.version = 11 : i64} {
  func.func @_lstm_recurrence_kernel(%arg0: i32, %arg1: memref<8x8x512xf32, #tpu.memory_space<vmem>>, %arg2: memref<128x512xbf16, #tpu.memory_space<any>>, %arg3: memref<8x8x128xf32, #tpu.memory_space<vmem>>, %arg4: memref<128x512xbf16, #tpu.memory_space<vmem>>, %arg5: memref<8x128xf32, #tpu.memory_space<vmem>>, %arg6: memref<8x128xf32, #tpu.memory_space<vmem>>, %arg7: memref<!tpu.dma_semaphore, #tpu.memory_space<semaphore_mem>>) attributes {dimension_semantics = [#tpu.dimension_semantics<arbitrary>], iteration_bounds = array<i64: 4>, scalar_prefetch = 0 : i64, scratch_operands = 4 : i64, tpu.core_type = #tpu.core_type<tc>, window_params = [{transform_indices = @transform_0, window_bounds = array<i64: 8, 8, 512>}, {}, {transform_indices = @transform_2, window_bounds = array<i64: 8, 8, 128>}]} {
    %c0_i32 = arith.constant 0 : i32
    %0 = arith.cmpi eq, %arg0, %c0_i32 : i32
    %1 = arith.extui %0 : i1 to i32
    %c0_i32_0 = arith.constant 0 : i32
    %2 = arith.cmpi ne, %1, %c0_i32_0 : i32
    scf.if %2 {
      %cst_122 = arith.constant 0.000000e+00 : f32
      %336 = vector.broadcast %cst_122 : f32 to vector<8x128xf32>
      %c0_123 = arith.constant 0 : index
      %c0_124 = arith.constant 0 : index
      %337 = vector.load %arg5[%c0_123, %c0_124] : memref<8x128xf32, #tpu.memory_space<vmem>>, vector<8x128xf32>
      tpu.vector_store %arg5[%c0_123, %c0_124], %336 {strides = array<i32>} : memref<8x128xf32, #tpu.memory_space<vmem>>, vector<8x128xf32>,
      %cst_125 = arith.constant 0.000000e+00 : f32
      %338 = vector.broadcast %cst_125 : f32 to vector<8x128xf32>
      %c0_126 = arith.constant 0 : index
      %c0_127 = arith.constant 0 : index
      %339 = vector.load %arg6[%c0_126, %c0_127] : memref<8x128xf32, #tpu.memory_space<vmem>>, vector<8x128xf32>
      tpu.vector_store %arg6[%c0_126, %c0_127], %338 {strides = array<i32>} : memref<8x128xf32, #tpu.memory_space<vmem>>, vector<8x128xf32>,
      tpu.enqueue_dma source(%arg2 : memref<128x512xbf16, #tpu.memory_space<any>>) target(%arg4 : memref<128x512xbf16, #tpu.memory_space<vmem>>) target_semaphore(%arg7 : memref<!tpu.dma_semaphore, #tpu.memory_space<semaphore_mem>>)
      tpu.wait_dma2 semaphore(%arg7 : memref<!tpu.dma_semaphore, #tpu.memory_space<semaphore_mem>>) src(%arg2 : memref<128x512xbf16, #tpu.memory_space<any>>) dst(%arg4 : memref<128x512xbf16, #tpu.memory_space<vmem>>)
    } else {
    }
    %c0 = arith.constant 0 : index
    %c0_1 = arith.constant 0 : index
    %3 = vector.load %arg4[%c0, %c0_1] : memref<128x512xbf16, #tpu.memory_space<vmem>>, vector<128x512xbf16>
    %c0_2 = arith.constant 0 : index
    %c0_3 = arith.constant 0 : index
    %4 = vector.load %arg5[%c0_2, %c0_3] : memref<8x128xf32, #tpu.memory_space<vmem>>, vector<8x128xf32>
    %c0_4 = arith.constant 0 : index
    %c0_5 = arith.constant 0 : index
    %5 = vector.load %arg6[%c0_4, %c0_5] : memref<8x128xf32, #tpu.memory_space<vmem>>, vector<8x128xf32>
    %c0_i32_6 = arith.constant 0 : i32
    %6 = arith.index_cast %c0_i32_6 : i32 to index
    %c0_7 = arith.constant 0 : index
    %c0_8 = arith.constant 0 : index
    %7 = vector.load %arg1[%6, %c0_7, %c0_8] : memref<8x8x512xf32, #tpu.memory_space<vmem>>, vector<1x8x512xf32>
    %8 = vector.shape_cast %7 : vector<1x8x512xf32> to vector<8x512xf32>
    %9 = arith.truncf %4 : vector<8x128xf32> to vector<8x128xbf16>
    %cst = arith.constant dense<0.000000e+00> : vector<8x512xf32>
    %10 = tpu.matmul %9, %3, %cst {dimension_numbers = #tpu.dot_dimension_numbers<[1], [0], [0], [1], [0, 0, 1, 1], [], []>} : vector<8x128xbf16>, vector<128x512xbf16>, vector<8x512xf32> -> vector<8x512xf32>
    %11 = arith.addf %8, %10 : vector<8x512xf32>
    %12 = vector.extract_strided_slice %11 {offsets = [0, 0], sizes = [8, 128], strides = [1, 1]} : vector<8x512xf32> to vector<8x128xf32>
    %cst_9 = arith.constant 5.000000e-01 : f32
    %13 = vector.broadcast %cst_9 : f32 to vector<8x128xf32>
    %14 = arith.mulf %13, %12 : vector<8x128xf32>
    %15 = math.tanh %14 : vector<8x128xf32>
    %cst_10 = arith.constant 5.000000e-01 : f32
    %16 = vector.broadcast %cst_10 : f32 to vector<8x128xf32>
    %17 = arith.mulf %16, %15 : vector<8x128xf32>
    %cst_11 = arith.constant 5.000000e-01 : f32
    %18 = vector.broadcast %cst_11 : f32 to vector<8x128xf32>
    %19 = arith.addf %17, %18 : vector<8x128xf32>
    %20 = vector.extract_strided_slice %11 {offsets = [0, 128], sizes = [8, 128], strides = [1, 1]} : vector<8x512xf32> to vector<8x128xf32>
    %cst_12 = arith.constant 5.000000e-01 : f32
    %21 = vector.broadcast %cst_12 : f32 to vector<8x128xf32>
    %22 = arith.mulf %21, %20 : vector<8x128xf32>
    %23 = math.tanh %22 : vector<8x128xf32>
    %cst_13 = arith.constant 5.000000e-01 : f32
    %24 = vector.broadcast %cst_13 : f32 to vector<8x128xf32>
    %25 = arith.mulf %24, %23 : vector<8x128xf32>
    %cst_14 = arith.constant 5.000000e-01 : f32
    %26 = vector.broadcast %cst_14 : f32 to vector<8x128xf32>
    %27 = arith.addf %25, %26 : vector<8x128xf32>
    %28 = vector.extract_strided_slice %11 {offsets = [0, 256], sizes = [8, 128], strides = [1, 1]} : vector<8x512xf32> to vector<8x128xf32>
    %29 = math.tanh %28 : vector<8x128xf32>
    %30 = vector.extract_strided_slice %11 {offsets = [0, 384], sizes = [8, 128], strides = [1, 1]} : vector<8x512xf32> to vector<8x128xf32>
    %cst_15 = arith.constant 5.000000e-01 : f32
    %31 = vector.broadcast %cst_15 : f32 to vector<8x128xf32>
    %32 = arith.mulf %31, %30 : vector<8x128xf32>
    %33 = math.tanh %32 : vector<8x128xf32>
    %cst_16 = arith.constant 5.000000e-01 : f32
    %34 = vector.broadcast %cst_16 : f32 to vector<8x128xf32>
    %35 = arith.mulf %34, %33 : vector<8x128xf32>
    %cst_17 = arith.constant 5.000000e-01 : f32
    %36 = vector.broadcast %cst_17 : f32 to vector<8x128xf32>
    %37 = arith.addf %35, %36 : vector<8x128xf32>
    %38 = arith.mulf %27, %5 : vector<8x128xf32>
    %39 = arith.mulf %19, %29 : vector<8x128xf32>
    %40 = arith.addf %38, %39 : vector<8x128xf32>
    %41 = math.tanh %40 : vector<8x128xf32>
    %42 = arith.mulf %37, %41 : vector<8x128xf32>
    %43 = arith.index_cast %c0_i32_6 : i32 to index
    %c0_18 = arith.constant 0 : index
    %c0_19 = arith.constant 0 : index
    %44 = vector.load %arg3[%43, %c0_18, %c0_19] : memref<8x8x128xf32, #tpu.memory_space<vmem>>, vector<1x8x128xf32>
    %45 = vector.shape_cast %44 : vector<1x8x128xf32> to vector<8x128xf32>
    %46 = vector.shape_cast %42 : vector<8x128xf32> to vector<1x8x128xf32>
    tpu.vector_store %arg3[%43, %c0_18, %c0_19], %46 {strides = array<i32>} : memref<8x8x128xf32, #tpu.memory_space<vmem>>, vector<1x8x128xf32>,
    %c1_i32 = arith.constant 1 : i32
    %47 = arith.index_cast %c1_i32 : i32 to index
    %c0_20 = arith.constant 0 : index
    %c0_21 = arith.constant 0 : index
    %48 = vector.load %arg1[%47, %c0_20, %c0_21] : memref<8x8x512xf32, #tpu.memory_space<vmem>>, vector<1x8x512xf32>
    %49 = vector.shape_cast %48 : vector<1x8x512xf32> to vector<8x512xf32>
    %50 = arith.truncf %42 : vector<8x128xf32> to vector<8x128xbf16>
    %cst_22 = arith.constant dense<0.000000e+00> : vector<8x512xf32>
    %51 = tpu.matmul %50, %3, %cst_22 {dimension_numbers = #tpu.dot_dimension_numbers<[1], [0], [0], [1], [0, 0, 1, 1], [], []>} : vector<8x128xbf16>, vector<128x512xbf16>, vector<8x512xf32> -> vector<8x512xf32>
    %52 = arith.addf %49, %51 : vector<8x512xf32>
    %53 = vector.extract_strided_slice %52 {offsets = [0, 0], sizes = [8, 128], strides = [1, 1]} : vector<8x512xf32> to vector<8x128xf32>
    %cst_23 = arith.constant 5.000000e-01 : f32
    %54 = vector.broadcast %cst_23 : f32 to vector<8x128xf32>
    %55 = arith.mulf %54, %53 : vector<8x128xf32>
    %56 = math.tanh %55 : vector<8x128xf32>
    %cst_24 = arith.constant 5.000000e-01 : f32
    %57 = vector.broadcast %cst_24 : f32 to vector<8x128xf32>
    %58 = arith.mulf %57, %56 : vector<8x128xf32>
    %cst_25 = arith.constant 5.000000e-01 : f32
    %59 = vector.broadcast %cst_25 : f32 to vector<8x128xf32>
    %60 = arith.addf %58, %59 : vector<8x128xf32>
    %61 = vector.extract_strided_slice %52 {offsets = [0, 128], sizes = [8, 128], strides = [1, 1]} : vector<8x512xf32> to vector<8x128xf32>
    %cst_26 = arith.constant 5.000000e-01 : f32
    %62 = vector.broadcast %cst_26 : f32 to vector<8x128xf32>
    %63 = arith.mulf %62, %61 : vector<8x128xf32>
    %64 = math.tanh %63 : vector<8x128xf32>
    %cst_27 = arith.constant 5.000000e-01 : f32
    %65 = vector.broadcast %cst_27 : f32 to vector<8x128xf32>
    %66 = arith.mulf %65, %64 : vector<8x128xf32>
    %cst_28 = arith.constant 5.000000e-01 : f32
    %67 = vector.broadcast %cst_28 : f32 to vector<8x128xf32>
    %68 = arith.addf %66, %67 : vector<8x128xf32>
    %69 = vector.extract_strided_slice %52 {offsets = [0, 256], sizes = [8, 128], strides = [1, 1]} : vector<8x512xf32> to vector<8x128xf32>
    %70 = math.tanh %69 : vector<8x128xf32>
    %71 = vector.extract_strided_slice %52 {offsets = [0, 384], sizes = [8, 128], strides = [1, 1]} : vector<8x512xf32> to vector<8x128xf32>
    %cst_29 = arith.constant 5.000000e-01 : f32
    %72 = vector.broadcast %cst_29 : f32 to vector<8x128xf32>
    %73 = arith.mulf %72, %71 : vector<8x128xf32>
    %74 = math.tanh %73 : vector<8x128xf32>
    %cst_30 = arith.constant 5.000000e-01 : f32
    %75 = vector.broadcast %cst_30 : f32 to vector<8x128xf32>
    %76 = arith.mulf %75, %74 : vector<8x128xf32>
    %cst_31 = arith.constant 5.000000e-01 : f32
    %77 = vector.broadcast %cst_31 : f32 to vector<8x128xf32>
    %78 = arith.addf %76, %77 : vector<8x128xf32>
    %79 = arith.mulf %68, %40 : vector<8x128xf32>
    %80 = arith.mulf %60, %70 : vector<8x128xf32>
    %81 = arith.addf %79, %80 : vector<8x128xf32>
    %82 = math.tanh %81 : vector<8x128xf32>
    %83 = arith.mulf %78, %82 : vector<8x128xf32>
    %84 = arith.index_cast %c1_i32 : i32 to index
    %c0_32 = arith.constant 0 : index
    %c0_33 = arith.constant 0 : index
    %85 = vector.load %arg3[%84, %c0_32, %c0_33] : memref<8x8x128xf32, #tpu.memory_space<vmem>>, vector<1x8x128xf32>
    %86 = vector.shape_cast %85 : vector<1x8x128xf32> to vector<8x128xf32>
    %87 = vector.shape_cast %83 : vector<8x128xf32> to vector<1x8x128xf32>
    tpu.vector_store %arg3[%84, %c0_32, %c0_33], %87 {strides = array<i32>} : memref<8x8x128xf32, #tpu.memory_space<vmem>>, vector<1x8x128xf32>,
    %c2_i32 = arith.constant 2 : i32
    %88 = arith.index_cast %c2_i32 : i32 to index
    %c0_34 = arith.constant 0 : index
    %c0_35 = arith.constant 0 : index
    %89 = vector.load %arg1[%88, %c0_34, %c0_35] : memref<8x8x512xf32, #tpu.memory_space<vmem>>, vector<1x8x512xf32>
    %90 = vector.shape_cast %89 : vector<1x8x512xf32> to vector<8x512xf32>
    %91 = arith.truncf %83 : vector<8x128xf32> to vector<8x128xbf16>
    %cst_36 = arith.constant dense<0.000000e+00> : vector<8x512xf32>
    %92 = tpu.matmul %91, %3, %cst_36 {dimension_numbers = #tpu.dot_dimension_numbers<[1], [0], [0], [1], [0, 0, 1, 1], [], []>} : vector<8x128xbf16>, vector<128x512xbf16>, vector<8x512xf32> -> vector<8x512xf32>
    %93 = arith.addf %90, %92 : vector<8x512xf32>
    %94 = vector.extract_strided_slice %93 {offsets = [0, 0], sizes = [8, 128], strides = [1, 1]} : vector<8x512xf32> to vector<8x128xf32>
    %cst_37 = arith.constant 5.000000e-01 : f32
    %95 = vector.broadcast %cst_37 : f32 to vector<8x128xf32>
    %96 = arith.mulf %95, %94 : vector<8x128xf32>
    %97 = math.tanh %96 : vector<8x128xf32>
    %cst_38 = arith.constant 5.000000e-01 : f32
    %98 = vector.broadcast %cst_38 : f32 to vector<8x128xf32>
    %99 = arith.mulf %98, %97 : vector<8x128xf32>
    %cst_39 = arith.constant 5.000000e-01 : f32
    %100 = vector.broadcast %cst_39 : f32 to vector<8x128xf32>
    %101 = arith.addf %99, %100 : vector<8x128xf32>
    %102 = vector.extract_strided_slice %93 {offsets = [0, 128], sizes = [8, 128], strides = [1, 1]} : vector<8x512xf32> to vector<8x128xf32>
    %cst_40 = arith.constant 5.000000e-01 : f32
    %103 = vector.broadcast %cst_40 : f32 to vector<8x128xf32>
    %104 = arith.mulf %103, %102 : vector<8x128xf32>
    %105 = math.tanh %104 : vector<8x128xf32>
    %cst_41 = arith.constant 5.000000e-01 : f32
    %106 = vector.broadcast %cst_41 : f32 to vector<8x128xf32>
    %107 = arith.mulf %106, %105 : vector<8x128xf32>
    %cst_42 = arith.constant 5.000000e-01 : f32
    %108 = vector.broadcast %cst_42 : f32 to vector<8x128xf32>
    %109 = arith.addf %107, %108 : vector<8x128xf32>
    %110 = vector.extract_strided_slice %93 {offsets = [0, 256], sizes = [8, 128], strides = [1, 1]} : vector<8x512xf32> to vector<8x128xf32>
    %111 = math.tanh %110 : vector<8x128xf32>
    %112 = vector.extract_strided_slice %93 {offsets = [0, 384], sizes = [8, 128], strides = [1, 1]} : vector<8x512xf32> to vector<8x128xf32>
    %cst_43 = arith.constant 5.000000e-01 : f32
    %113 = vector.broadcast %cst_43 : f32 to vector<8x128xf32>
    %114 = arith.mulf %113, %112 : vector<8x128xf32>
    %115 = math.tanh %114 : vector<8x128xf32>
    %cst_44 = arith.constant 5.000000e-01 : f32
    %116 = vector.broadcast %cst_44 : f32 to vector<8x128xf32>
    %117 = arith.mulf %116, %115 : vector<8x128xf32>
    %cst_45 = arith.constant 5.000000e-01 : f32
    %118 = vector.broadcast %cst_45 : f32 to vector<8x128xf32>
    %119 = arith.addf %117, %118 : vector<8x128xf32>
    %120 = arith.mulf %109, %81 : vector<8x128xf32>
    %121 = arith.mulf %101, %111 : vector<8x128xf32>
    %122 = arith.addf %120, %121 : vector<8x128xf32>
    %123 = math.tanh %122 : vector<8x128xf32>
    %124 = arith.mulf %119, %123 : vector<8x128xf32>
    %125 = arith.index_cast %c2_i32 : i32 to index
    %c0_46 = arith.constant 0 : index
    %c0_47 = arith.constant 0 : index
    %126 = vector.load %arg3[%125, %c0_46, %c0_47] : memref<8x8x128xf32, #tpu.memory_space<vmem>>, vector<1x8x128xf32>
    %127 = vector.shape_cast %126 : vector<1x8x128xf32> to vector<8x128xf32>
    %128 = vector.shape_cast %124 : vector<8x128xf32> to vector<1x8x128xf32>
    tpu.vector_store %arg3[%125, %c0_46, %c0_47], %128 {strides = array<i32>} : memref<8x8x128xf32, #tpu.memory_space<vmem>>, vector<1x8x128xf32>,
    %c3_i32 = arith.constant 3 : i32
    %129 = arith.index_cast %c3_i32 : i32 to index
    %c0_48 = arith.constant 0 : index
    %c0_49 = arith.constant 0 : index
    %130 = vector.load %arg1[%129, %c0_48, %c0_49] : memref<8x8x512xf32, #tpu.memory_space<vmem>>, vector<1x8x512xf32>
    %131 = vector.shape_cast %130 : vector<1x8x512xf32> to vector<8x512xf32>
    %132 = arith.truncf %124 : vector<8x128xf32> to vector<8x128xbf16>
    %cst_50 = arith.constant dense<0.000000e+00> : vector<8x512xf32>
    %133 = tpu.matmul %132, %3, %cst_50 {dimension_numbers = #tpu.dot_dimension_numbers<[1], [0], [0], [1], [0, 0, 1, 1], [], []>} : vector<8x128xbf16>, vector<128x512xbf16>, vector<8x512xf32> -> vector<8x512xf32>
    %134 = arith.addf %131, %133 : vector<8x512xf32>
    %135 = vector.extract_strided_slice %134 {offsets = [0, 0], sizes = [8, 128], strides = [1, 1]} : vector<8x512xf32> to vector<8x128xf32>
    %cst_51 = arith.constant 5.000000e-01 : f32
    %136 = vector.broadcast %cst_51 : f32 to vector<8x128xf32>
    %137 = arith.mulf %136, %135 : vector<8x128xf32>
    %138 = math.tanh %137 : vector<8x128xf32>
    %cst_52 = arith.constant 5.000000e-01 : f32
    %139 = vector.broadcast %cst_52 : f32 to vector<8x128xf32>
    %140 = arith.mulf %139, %138 : vector<8x128xf32>
    %cst_53 = arith.constant 5.000000e-01 : f32
    %141 = vector.broadcast %cst_53 : f32 to vector<8x128xf32>
    %142 = arith.addf %140, %141 : vector<8x128xf32>
    %143 = vector.extract_strided_slice %134 {offsets = [0, 128], sizes = [8, 128], strides = [1, 1]} : vector<8x512xf32> to vector<8x128xf32>
    %cst_54 = arith.constant 5.000000e-01 : f32
    %144 = vector.broadcast %cst_54 : f32 to vector<8x128xf32>
    %145 = arith.mulf %144, %143 : vector<8x128xf32>
    %146 = math.tanh %145 : vector<8x128xf32>
    %cst_55 = arith.constant 5.000000e-01 : f32
    %147 = vector.broadcast %cst_55 : f32 to vector<8x128xf32>
    %148 = arith.mulf %147, %146 : vector<8x128xf32>
    %cst_56 = arith.constant 5.000000e-01 : f32
    %149 = vector.broadcast %cst_56 : f32 to vector<8x128xf32>
    %150 = arith.addf %148, %149 : vector<8x128xf32>
    %151 = vector.extract_strided_slice %134 {offsets = [0, 256], sizes = [8, 128], strides = [1, 1]} : vector<8x512xf32> to vector<8x128xf32>
    %152 = math.tanh %151 : vector<8x128xf32>
    %153 = vector.extract_strided_slice %134 {offsets = [0, 384], sizes = [8, 128], strides = [1, 1]} : vector<8x512xf32> to vector<8x128xf32>
    %cst_57 = arith.constant 5.000000e-01 : f32
    %154 = vector.broadcast %cst_57 : f32 to vector<8x128xf32>
    %155 = arith.mulf %154, %153 : vector<8x128xf32>
    %156 = math.tanh %155 : vector<8x128xf32>
    %cst_58 = arith.constant 5.000000e-01 : f32
    %157 = vector.broadcast %cst_58 : f32 to vector<8x128xf32>
    %158 = arith.mulf %157, %156 : vector<8x128xf32>
    %cst_59 = arith.constant 5.000000e-01 : f32
    %159 = vector.broadcast %cst_59 : f32 to vector<8x128xf32>
    %160 = arith.addf %158, %159 : vector<8x128xf32>
    %161 = arith.mulf %150, %122 : vector<8x128xf32>
    %162 = arith.mulf %142, %152 : vector<8x128xf32>
    %163 = arith.addf %161, %162 : vector<8x128xf32>
    %164 = math.tanh %163 : vector<8x128xf32>
    %165 = arith.mulf %160, %164 : vector<8x128xf32>
    %166 = arith.index_cast %c3_i32 : i32 to index
    %c0_60 = arith.constant 0 : index
    %c0_61 = arith.constant 0 : index
    %167 = vector.load %arg3[%166, %c0_60, %c0_61] : memref<8x8x128xf32, #tpu.memory_space<vmem>>, vector<1x8x128xf32>
    %168 = vector.shape_cast %167 : vector<1x8x128xf32> to vector<8x128xf32>
    %169 = vector.shape_cast %165 : vector<8x128xf32> to vector<1x8x128xf32>
    tpu.vector_store %arg3[%166, %c0_60, %c0_61], %169 {strides = array<i32>} : memref<8x8x128xf32, #tpu.memory_space<vmem>>, vector<1x8x128xf32>,
    %c4_i32 = arith.constant 4 : i32
    %170 = arith.index_cast %c4_i32 : i32 to index
    %c0_62 = arith.constant 0 : index
    %c0_63 = arith.constant 0 : index
    %171 = vector.load %arg1[%170, %c0_62, %c0_63] : memref<8x8x512xf32, #tpu.memory_space<vmem>>, vector<1x8x512xf32>
    %172 = vector.shape_cast %171 : vector<1x8x512xf32> to vector<8x512xf32>
    %173 = arith.truncf %165 : vector<8x128xf32> to vector<8x128xbf16>
    %cst_64 = arith.constant dense<0.000000e+00> : vector<8x512xf32>
    %174 = tpu.matmul %173, %3, %cst_64 {dimension_numbers = #tpu.dot_dimension_numbers<[1], [0], [0], [1], [0, 0, 1, 1], [], []>} : vector<8x128xbf16>, vector<128x512xbf16>, vector<8x512xf32> -> vector<8x512xf32>
    %175 = arith.addf %172, %174 : vector<8x512xf32>
    %176 = vector.extract_strided_slice %175 {offsets = [0, 0], sizes = [8, 128], strides = [1, 1]} : vector<8x512xf32> to vector<8x128xf32>
    %cst_65 = arith.constant 5.000000e-01 : f32
    %177 = vector.broadcast %cst_65 : f32 to vector<8x128xf32>
    %178 = arith.mulf %177, %176 : vector<8x128xf32>
    %179 = math.tanh %178 : vector<8x128xf32>
    %cst_66 = arith.constant 5.000000e-01 : f32
    %180 = vector.broadcast %cst_66 : f32 to vector<8x128xf32>
    %181 = arith.mulf %180, %179 : vector<8x128xf32>
    %cst_67 = arith.constant 5.000000e-01 : f32
    %182 = vector.broadcast %cst_67 : f32 to vector<8x128xf32>
    %183 = arith.addf %181, %182 : vector<8x128xf32>
    %184 = vector.extract_strided_slice %175 {offsets = [0, 128], sizes = [8, 128], strides = [1, 1]} : vector<8x512xf32> to vector<8x128xf32>
    %cst_68 = arith.constant 5.000000e-01 : f32
    %185 = vector.broadcast %cst_68 : f32 to vector<8x128xf32>
    %186 = arith.mulf %185, %184 : vector<8x128xf32>
    %187 = math.tanh %186 : vector<8x128xf32>
    %cst_69 = arith.constant 5.000000e-01 : f32
    %188 = vector.broadcast %cst_69 : f32 to vector<8x128xf32>
    %189 = arith.mulf %188, %187 : vector<8x128xf32>
    %cst_70 = arith.constant 5.000000e-01 : f32
    %190 = vector.broadcast %cst_70 : f32 to vector<8x128xf32>
    %191 = arith.addf %189, %190 : vector<8x128xf32>
    %192 = vector.extract_strided_slice %175 {offsets = [0, 256], sizes = [8, 128], strides = [1, 1]} : vector<8x512xf32> to vector<8x128xf32>
    %193 = math.tanh %192 : vector<8x128xf32>
    %194 = vector.extract_strided_slice %175 {offsets = [0, 384], sizes = [8, 128], strides = [1, 1]} : vector<8x512xf32> to vector<8x128xf32>
    %cst_71 = arith.constant 5.000000e-01 : f32
    %195 = vector.broadcast %cst_71 : f32 to vector<8x128xf32>
    %196 = arith.mulf %195, %194 : vector<8x128xf32>
    %197 = math.tanh %196 : vector<8x128xf32>
    %cst_72 = arith.constant 5.000000e-01 : f32
    %198 = vector.broadcast %cst_72 : f32 to vector<8x128xf32>
    %199 = arith.mulf %198, %197 : vector<8x128xf32>
    %cst_73 = arith.constant 5.000000e-01 : f32
    %200 = vector.broadcast %cst_73 : f32 to vector<8x128xf32>
    %201 = arith.addf %199, %200 : vector<8x128xf32>
    %202 = arith.mulf %191, %163 : vector<8x128xf32>
    %203 = arith.mulf %183, %193 : vector<8x128xf32>
    %204 = arith.addf %202, %203 : vector<8x128xf32>
    %205 = math.tanh %204 : vector<8x128xf32>
    %206 = arith.mulf %201, %205 : vector<8x128xf32>
    %207 = arith.index_cast %c4_i32 : i32 to index
    %c0_74 = arith.constant 0 : index
    %c0_75 = arith.constant 0 : index
    %208 = vector.load %arg3[%207, %c0_74, %c0_75] : memref<8x8x128xf32, #tpu.memory_space<vmem>>, vector<1x8x128xf32>
    %209 = vector.shape_cast %208 : vector<1x8x128xf32> to vector<8x128xf32>
    %210 = vector.shape_cast %206 : vector<8x128xf32> to vector<1x8x128xf32>
    tpu.vector_store %arg3[%207, %c0_74, %c0_75], %210 {strides = array<i32>} : memref<8x8x128xf32, #tpu.memory_space<vmem>>, vector<1x8x128xf32>,
    %c5_i32 = arith.constant 5 : i32
    %211 = arith.index_cast %c5_i32 : i32 to index
    %c0_76 = arith.constant 0 : index
    %c0_77 = arith.constant 0 : index
    %212 = vector.load %arg1[%211, %c0_76, %c0_77] : memref<8x8x512xf32, #tpu.memory_space<vmem>>, vector<1x8x512xf32>
    %213 = vector.shape_cast %212 : vector<1x8x512xf32> to vector<8x512xf32>
    %214 = arith.truncf %206 : vector<8x128xf32> to vector<8x128xbf16>
    %cst_78 = arith.constant dense<0.000000e+00> : vector<8x512xf32>
    %215 = tpu.matmul %214, %3, %cst_78 {dimension_numbers = #tpu.dot_dimension_numbers<[1], [0], [0], [1], [0, 0, 1, 1], [], []>} : vector<8x128xbf16>, vector<128x512xbf16>, vector<8x512xf32> -> vector<8x512xf32>
    %216 = arith.addf %213, %215 : vector<8x512xf32>
    %217 = vector.extract_strided_slice %216 {offsets = [0, 0], sizes = [8, 128], strides = [1, 1]} : vector<8x512xf32> to vector<8x128xf32>
    %cst_79 = arith.constant 5.000000e-01 : f32
    %218 = vector.broadcast %cst_79 : f32 to vector<8x128xf32>
    %219 = arith.mulf %218, %217 : vector<8x128xf32>
    %220 = math.tanh %219 : vector<8x128xf32>
    %cst_80 = arith.constant 5.000000e-01 : f32
    %221 = vector.broadcast %cst_80 : f32 to vector<8x128xf32>
    %222 = arith.mulf %221, %220 : vector<8x128xf32>
    %cst_81 = arith.constant 5.000000e-01 : f32
    %223 = vector.broadcast %cst_81 : f32 to vector<8x128xf32>
    %224 = arith.addf %222, %223 : vector<8x128xf32>
    %225 = vector.extract_strided_slice %216 {offsets = [0, 128], sizes = [8, 128], strides = [1, 1]} : vector<8x512xf32> to vector<8x128xf32>
    %cst_82 = arith.constant 5.000000e-01 : f32
    %226 = vector.broadcast %cst_82 : f32 to vector<8x128xf32>
    %227 = arith.mulf %226, %225 : vector<8x128xf32>
    %228 = math.tanh %227 : vector<8x128xf32>
    %cst_83 = arith.constant 5.000000e-01 : f32
    %229 = vector.broadcast %cst_83 : f32 to vector<8x128xf32>
    %230 = arith.mulf %229, %228 : vector<8x128xf32>
    %cst_84 = arith.constant 5.000000e-01 : f32
    %231 = vector.broadcast %cst_84 : f32 to vector<8x128xf32>
    %232 = arith.addf %230, %231 : vector<8x128xf32>
    %233 = vector.extract_strided_slice %216 {offsets = [0, 256], sizes = [8, 128], strides = [1, 1]} : vector<8x512xf32> to vector<8x128xf32>
    %234 = math.tanh %233 : vector<8x128xf32>
    %235 = vector.extract_strided_slice %216 {offsets = [0, 384], sizes = [8, 128], strides = [1, 1]} : vector<8x512xf32> to vector<8x128xf32>
    %cst_85 = arith.constant 5.000000e-01 : f32
    %236 = vector.broadcast %cst_85 : f32 to vector<8x128xf32>
    %237 = arith.mulf %236, %235 : vector<8x128xf32>
    %238 = math.tanh %237 : vector<8x128xf32>
    %cst_86 = arith.constant 5.000000e-01 : f32
    %239 = vector.broadcast %cst_86 : f32 to vector<8x128xf32>
    %240 = arith.mulf %239, %238 : vector<8x128xf32>
    %cst_87 = arith.constant 5.000000e-01 : f32
    %241 = vector.broadcast %cst_87 : f32 to vector<8x128xf32>
    %242 = arith.addf %240, %241 : vector<8x128xf32>
    %243 = arith.mulf %232, %204 : vector<8x128xf32>
    %244 = arith.mulf %224, %234 : vector<8x128xf32>
    %245 = arith.addf %243, %244 : vector<8x128xf32>
    %246 = math.tanh %245 : vector<8x128xf32>
    %247 = arith.mulf %242, %246 : vector<8x128xf32>
    %248 = arith.index_cast %c5_i32 : i32 to index
    %c0_88 = arith.constant 0 : index
    %c0_89 = arith.constant 0 : index
    %249 = vector.load %arg3[%248, %c0_88, %c0_89] : memref<8x8x128xf32, #tpu.memory_space<vmem>>, vector<1x8x128xf32>
    %250 = vector.shape_cast %249 : vector<1x8x128xf32> to vector<8x128xf32>
    %251 = vector.shape_cast %247 : vector<8x128xf32> to vector<1x8x128xf32>
    tpu.vector_store %arg3[%248, %c0_88, %c0_89], %251 {strides = array<i32>} : memref<8x8x128xf32, #tpu.memory_space<vmem>>, vector<1x8x128xf32>,
    %c6_i32 = arith.constant 6 : i32
    %252 = arith.index_cast %c6_i32 : i32 to index
    %c0_90 = arith.constant 0 : index
    %c0_91 = arith.constant 0 : index
    %253 = vector.load %arg1[%252, %c0_90, %c0_91] : memref<8x8x512xf32, #tpu.memory_space<vmem>>, vector<1x8x512xf32>
    %254 = vector.shape_cast %253 : vector<1x8x512xf32> to vector<8x512xf32>
    %255 = arith.truncf %247 : vector<8x128xf32> to vector<8x128xbf16>
    %cst_92 = arith.constant dense<0.000000e+00> : vector<8x512xf32>
    %256 = tpu.matmul %255, %3, %cst_92 {dimension_numbers = #tpu.dot_dimension_numbers<[1], [0], [0], [1], [0, 0, 1, 1], [], []>} : vector<8x128xbf16>, vector<128x512xbf16>, vector<8x512xf32> -> vector<8x512xf32>
    %257 = arith.addf %254, %256 : vector<8x512xf32>
    %258 = vector.extract_strided_slice %257 {offsets = [0, 0], sizes = [8, 128], strides = [1, 1]} : vector<8x512xf32> to vector<8x128xf32>
    %cst_93 = arith.constant 5.000000e-01 : f32
    %259 = vector.broadcast %cst_93 : f32 to vector<8x128xf32>
    %260 = arith.mulf %259, %258 : vector<8x128xf32>
    %261 = math.tanh %260 : vector<8x128xf32>
    %cst_94 = arith.constant 5.000000e-01 : f32
    %262 = vector.broadcast %cst_94 : f32 to vector<8x128xf32>
    %263 = arith.mulf %262, %261 : vector<8x128xf32>
    %cst_95 = arith.constant 5.000000e-01 : f32
    %264 = vector.broadcast %cst_95 : f32 to vector<8x128xf32>
    %265 = arith.addf %263, %264 : vector<8x128xf32>
    %266 = vector.extract_strided_slice %257 {offsets = [0, 128], sizes = [8, 128], strides = [1, 1]} : vector<8x512xf32> to vector<8x128xf32>
    %cst_96 = arith.constant 5.000000e-01 : f32
    %267 = vector.broadcast %cst_96 : f32 to vector<8x128xf32>
    %268 = arith.mulf %267, %266 : vector<8x128xf32>
    %269 = math.tanh %268 : vector<8x128xf32>
    %cst_97 = arith.constant 5.000000e-01 : f32
    %270 = vector.broadcast %cst_97 : f32 to vector<8x128xf32>
    %271 = arith.mulf %270, %269 : vector<8x128xf32>
    %cst_98 = arith.constant 5.000000e-01 : f32
    %272 = vector.broadcast %cst_98 : f32 to vector<8x128xf32>
    %273 = arith.addf %271, %272 : vector<8x128xf32>
    %274 = vector.extract_strided_slice %257 {offsets = [0, 256], sizes = [8, 128], strides = [1, 1]} : vector<8x512xf32> to vector<8x128xf32>
    %275 = math.tanh %274 : vector<8x128xf32>
    %276 = vector.extract_strided_slice %257 {offsets = [0, 384], sizes = [8, 128], strides = [1, 1]} : vector<8x512xf32> to vector<8x128xf32>
    %cst_99 = arith.constant 5.000000e-01 : f32
    %277 = vector.broadcast %cst_99 : f32 to vector<8x128xf32>
    %278 = arith.mulf %277, %276 : vector<8x128xf32>
    %279 = math.tanh %278 : vector<8x128xf32>
    %cst_100 = arith.constant 5.000000e-01 : f32
    %280 = vector.broadcast %cst_100 : f32 to vector<8x128xf32>
    %281 = arith.mulf %280, %279 : vector<8x128xf32>
    %cst_101 = arith.constant 5.000000e-01 : f32
    %282 = vector.broadcast %cst_101 : f32 to vector<8x128xf32>
    %283 = arith.addf %281, %282 : vector<8x128xf32>
    %284 = arith.mulf %273, %245 : vector<8x128xf32>
    %285 = arith.mulf %265, %275 : vector<8x128xf32>
    %286 = arith.addf %284, %285 : vector<8x128xf32>
    %287 = math.tanh %286 : vector<8x128xf32>
    %288 = arith.mulf %283, %287 : vector<8x128xf32>
    %289 = arith.index_cast %c6_i32 : i32 to index
    %c0_102 = arith.constant 0 : index
    %c0_103 = arith.constant 0 : index
    %290 = vector.load %arg3[%289, %c0_102, %c0_103] : memref<8x8x128xf32, #tpu.memory_space<vmem>>, vector<1x8x128xf32>
    %291 = vector.shape_cast %290 : vector<1x8x128xf32> to vector<8x128xf32>
    %292 = vector.shape_cast %288 : vector<8x128xf32> to vector<1x8x128xf32>
    tpu.vector_store %arg3[%289, %c0_102, %c0_103], %292 {strides = array<i32>} : memref<8x8x128xf32, #tpu.memory_space<vmem>>, vector<1x8x128xf32>,
    %c7_i32 = arith.constant 7 : i32
    %293 = arith.index_cast %c7_i32 : i32 to index
    %c0_104 = arith.constant 0 : index
    %c0_105 = arith.constant 0 : index
    %294 = vector.load %arg1[%293, %c0_104, %c0_105] : memref<8x8x512xf32, #tpu.memory_space<vmem>>, vector<1x8x512xf32>
    %295 = vector.shape_cast %294 : vector<1x8x512xf32> to vector<8x512xf32>
    %296 = arith.truncf %288 : vector<8x128xf32> to vector<8x128xbf16>
    %cst_106 = arith.constant dense<0.000000e+00> : vector<8x512xf32>
    %297 = tpu.matmul %296, %3, %cst_106 {dimension_numbers = #tpu.dot_dimension_numbers<[1], [0], [0], [1], [0, 0, 1, 1], [], []>} : vector<8x128xbf16>, vector<128x512xbf16>, vector<8x512xf32> -> vector<8x512xf32>
    %298 = arith.addf %295, %297 : vector<8x512xf32>
    %299 = vector.extract_strided_slice %298 {offsets = [0, 0], sizes = [8, 128], strides = [1, 1]} : vector<8x512xf32> to vector<8x128xf32>
    %cst_107 = arith.constant 5.000000e-01 : f32
    %300 = vector.broadcast %cst_107 : f32 to vector<8x128xf32>
    %301 = arith.mulf %300, %299 : vector<8x128xf32>
    %302 = math.tanh %301 : vector<8x128xf32>
    %cst_108 = arith.constant 5.000000e-01 : f32
    %303 = vector.broadcast %cst_108 : f32 to vector<8x128xf32>
    %304 = arith.mulf %303, %302 : vector<8x128xf32>
    %cst_109 = arith.constant 5.000000e-01 : f32
    %305 = vector.broadcast %cst_109 : f32 to vector<8x128xf32>
    %306 = arith.addf %304, %305 : vector<8x128xf32>
    %307 = vector.extract_strided_slice %298 {offsets = [0, 128], sizes = [8, 128], strides = [1, 1]} : vector<8x512xf32> to vector<8x128xf32>
    %cst_110 = arith.constant 5.000000e-01 : f32
    %308 = vector.broadcast %cst_110 : f32 to vector<8x128xf32>
    %309 = arith.mulf %308, %307 : vector<8x128xf32>
    %310 = math.tanh %309 : vector<8x128xf32>
    %cst_111 = arith.constant 5.000000e-01 : f32
    %311 = vector.broadcast %cst_111 : f32 to vector<8x128xf32>
    %312 = arith.mulf %311, %310 : vector<8x128xf32>
    %cst_112 = arith.constant 5.000000e-01 : f32
    %313 = vector.broadcast %cst_112 : f32 to vector<8x128xf32>
    %314 = arith.addf %312, %313 : vector<8x128xf32>
    %315 = vector.extract_strided_slice %298 {offsets = [0, 256], sizes = [8, 128], strides = [1, 1]} : vector<8x512xf32> to vector<8x128xf32>
    %316 = math.tanh %315 : vector<8x128xf32>
    %317 = vector.extract_strided_slice %298 {offsets = [0, 384], sizes = [8, 128], strides = [1, 1]} : vector<8x512xf32> to vector<8x128xf32>
    %cst_113 = arith.constant 5.000000e-01 : f32
    %318 = vector.broadcast %cst_113 : f32 to vector<8x128xf32>
    %319 = arith.mulf %318, %317 : vector<8x128xf32>
    %320 = math.tanh %319 : vector<8x128xf32>
    %cst_114 = arith.constant 5.000000e-01 : f32
    %321 = vector.broadcast %cst_114 : f32 to vector<8x128xf32>
    %322 = arith.mulf %321, %320 : vector<8x128xf32>
    %cst_115 = arith.constant 5.000000e-01 : f32
    %323 = vector.broadcast %cst_115 : f32 to vector<8x128xf32>
    %324 = arith.addf %322, %323 : vector<8x128xf32>
    %325 = arith.mulf %314, %286 : vector<8x128xf32>
    %326 = arith.mulf %306, %316 : vector<8x128xf32>
    %327 = arith.addf %325, %326 : vector<8x128xf32>
    %328 = math.tanh %327 : vector<8x128xf32>
    %329 = arith.mulf %324, %328 : vector<8x128xf32>
    %330 = arith.index_cast %c7_i32 : i32 to index
    %c0_116 = arith.constant 0 : index
    %c0_117 = arith.constant 0 : index
    %331 = vector.load %arg3[%330, %c0_116, %c0_117] : memref<8x8x128xf32, #tpu.memory_space<vmem>>, vector<1x8x128xf32>
    %332 = vector.shape_cast %331 : vector<1x8x128xf32> to vector<8x128xf32>
    %333 = vector.shape_cast %329 : vector<8x128xf32> to vector<1x8x128xf32>
    tpu.vector_store %arg3[%330, %c0_116, %c0_117], %333 {strides = array<i32>} : memref<8x8x128xf32, #tpu.memory_space<vmem>>, vector<1x8x128xf32>,
    %c8_i32 = arith.constant 8 : i32
    %c0_118 = arith.constant 0 : index
    %c0_119 = arith.constant 0 : index
    %334 = vector.load %arg5[%c0_118, %c0_119] : memref<8x128xf32, #tpu.memory_space<vmem>>, vector<8x128xf32>
    tpu.vector_store %arg5[%c0_118, %c0_119], %329 {strides = array<i32>} : memref<8x128xf32, #tpu.memory_space<vmem>>, vector<8x128xf32>,
    %c0_120 = arith.constant 0 : index
    %c0_121 = arith.constant 0 : index
    %335 = vector.load %arg6[%c0_120, %c0_121] : memref<8x128xf32, #tpu.memory_space<vmem>>, vector<8x128xf32>
    tpu.vector_store %arg6[%c0_120, %c0_121], %327 {strides = array<i32>} : memref<8x128xf32, #tpu.memory_space<vmem>>, vector<8x128xf32>,
    return
  }
  func.func @transform_0(%arg0: i32) -> (i32, i32, i32) {
    %c0_i32 = arith.constant 0 : i32
    %c0_i32_0 = arith.constant 0 : i32
    %c0_i32_1 = arith.constant 0 : i32
    return %arg0, %c0_i32, %c0_i32_0 : i32, i32, i32
  }
  func.func @transform_2(%arg0: i32) -> (i32, i32, i32) {
    %c0_i32 = arith.constant 0 : i32
    %c0_i32_0 = arith.constant 0 : i32
    %c0_i32_1 = arith.constant 0 : i32
    return %arg0, %c0_i32, %c0_i32_0 : i32, i32, i32
  }
}

module attributes {stable_mosaic.version = 11 : i64} {
  func.func @_lstm_recurrence_kernel(%arg0: i32, %arg1: memref<8x8x512xf32, #tpu.memory_space<vmem>>, %arg2: memref<128x512xbf16, #tpu.memory_space<any>>, %arg3: memref<8x8x128xf32, #tpu.memory_space<vmem>>, %arg4: memref<128x512xbf16, #tpu.memory_space<vmem>>, %arg5: memref<8x128xf32, #tpu.memory_space<vmem>>, %arg6: memref<8x128xf32, #tpu.memory_space<vmem>>, %arg7: memref<!tpu.dma_semaphore, #tpu.memory_space<semaphore_mem>>) attributes {dimension_semantics = [#tpu.dimension_semantics<arbitrary>], iteration_bounds = array<i64: 4>, scalar_prefetch = 0 : i64, scratch_operands = 4 : i64, tpu.core_type = #tpu.core_type<tc>, window_params = [{transform_indices = @transform_0, window_bounds = array<i64: 8, 8, 512>}, {}, {transform_indices = @transform_2, window_bounds = array<i64: 8, 8, 128>}]} {
    %c0_i32 = arith.constant 0 : i32
    %0 = arith.cmpi eq, %arg0, %c0_i32 : i32
    %1 = arith.extui %0 : i1 to i32
    %c0_i32_0 = arith.constant 0 : i32
    %2 = arith.cmpi ne, %1, %c0_i32_0 : i32
    scf.if %2 {
      %cst_122 = arith.constant 0.000000e+00 : f32
      %336 = vector.broadcast %cst_122 : f32 to vector<8x128xf32>
      %c0_123 = arith.constant 0 : index
      %c0_124 = arith.constant 0 : index
      %337 = vector.load %arg5[%c0_123, %c0_124] : memref<8x128xf32, #tpu.memory_space<vmem>>, vector<8x128xf32>
      tpu.vector_store %arg5[%c0_123, %c0_124], %336 {strides = array<i32>} : memref<8x128xf32, #tpu.memory_space<vmem>>, vector<8x128xf32>,
      %cst_125 = arith.constant 0.000000e+00 : f32
      %338 = vector.broadcast %cst_125 : f32 to vector<8x128xf32>
      %c0_126 = arith.constant 0 : index
      %c0_127 = arith.constant 0 : index
      %339 = vector.load %arg6[%c0_126, %c0_127] : memref<8x128xf32, #tpu.memory_space<vmem>>, vector<8x128xf32>
      tpu.vector_store %arg6[%c0_126, %c0_127], %338 {strides = array<i32>} : memref<8x128xf32, #tpu.memory_space<vmem>>, vector<8x128xf32>,
      tpu.enqueue_dma source(%arg2 : memref<128x512xbf16, #tpu.memory_space<any>>) target(%arg4 : memref<128x512xbf16, #tpu.memory_space<vmem>>) target_semaphore(%arg7 : memref<!tpu.dma_semaphore, #tpu.memory_space<semaphore_mem>>)
      tpu.wait_dma2 semaphore(%arg7 : memref<!tpu.dma_semaphore, #tpu.memory_space<semaphore_mem>>) src(%arg2 : memref<128x512xbf16, #tpu.memory_space<any>>) dst(%arg4 : memref<128x512xbf16, #tpu.memory_space<vmem>>)
    } else {
    }
    %c0 = arith.constant 0 : index
    %c0_1 = arith.constant 0 : index
    %3 = vector.load %arg4[%c0, %c0_1] : memref<128x512xbf16, #tpu.memory_space<vmem>>, vector<128x512xbf16>
    %c0_2 = arith.constant 0 : index
    %c0_3 = arith.constant 0 : index
    %4 = vector.load %arg5[%c0_2, %c0_3] : memref<8x128xf32, #tpu.memory_space<vmem>>, vector<8x128xf32>
    %c0_4 = arith.constant 0 : index
    %c0_5 = arith.constant 0 : index
    %5 = vector.load %arg6[%c0_4, %c0_5] : memref<8x128xf32, #tpu.memory_space<vmem>>, vector<8x128xf32>
    %c0_i32_6 = arith.constant 0 : i32
    %6 = arith.index_cast %c0_i32_6 : i32 to index
    %c0_7 = arith.constant 0 : index
    %c0_8 = arith.constant 0 : index
    %7 = vector.load %arg1[%6, %c0_7, %c0_8] : memref<8x8x512xf32, #tpu.memory_space<vmem>>, vector<1x8x512xf32>
    %8 = vector.shape_cast %7 : vector<1x8x512xf32> to vector<8x512xf32>
    %9 = arith.truncf %4 : vector<8x128xf32> to vector<8x128xbf16>
    %cst = arith.constant dense<0.000000e+00> : vector<8x512xf32>
    %10 = tpu.matmul %9, %3, %cst {dimension_numbers = #tpu.dot_dimension_numbers<[1], [0], [0], [1], [0, 0, 1, 1], [], []>} : vector<8x128xbf16>, vector<128x512xbf16>, vector<8x512xf32> -> vector<8x512xf32>
    %11 = arith.addf %8, %10 : vector<8x512xf32>
    %12 = vector.extract_strided_slice %11 {offsets = [0, 0], sizes = [8, 128], strides = [1, 1]} : vector<8x512xf32> to vector<8x128xf32>
    %cst_9 = arith.constant 5.000000e-01 : f32
    %13 = vector.broadcast %cst_9 : f32 to vector<8x128xf32>
    %14 = arith.mulf %13, %12 : vector<8x128xf32>
    %15 = math.tanh %14 : vector<8x128xf32>
    %cst_10 = arith.constant 5.000000e-01 : f32
    %16 = vector.broadcast %cst_10 : f32 to vector<8x128xf32>
    %17 = arith.mulf %16, %15 : vector<8x128xf32>
    %cst_11 = arith.constant 5.000000e-01 : f32
    %18 = vector.broadcast %cst_11 : f32 to vector<8x128xf32>
    %19 = arith.addf %17, %18 : vector<8x128xf32>
    %20 = vector.extract_strided_slice %11 {offsets = [0, 128], sizes = [8, 128], strides = [1, 1]} : vector<8x512xf32> to vector<8x128xf32>
    %cst_12 = arith.constant 5.000000e-01 : f32
    %21 = vector.broadcast %cst_12 : f32 to vector<8x128xf32>
    %22 = arith.mulf %21, %20 : vector<8x128xf32>
    %23 = math.tanh %22 : vector<8x128xf32>
    %cst_13 = arith.constant 5.000000e-01 : f32
    %24 = vector.broadcast %cst_13 : f32 to vector<8x128xf32>
    %25 = arith.mulf %24, %23 : vector<8x128xf32>
    %cst_14 = arith.constant 5.000000e-01 : f32
    %26 = vector.broadcast %cst_14 : f32 to vector<8x128xf32>
    %27 = arith.addf %25, %26 : vector<8x128xf32>
    %28 = vector.extract_strided_slice %11 {offsets = [0, 256], sizes = [8, 128], strides = [1, 1]} : vector<8x512xf32> to vector<8x128xf32>
    %29 = math.tanh %28 : vector<8x128xf32>
    %30 = vector.extract_strided_slice %11 {offsets = [0, 384], sizes = [8, 128], strides = [1, 1]} : vector<8x512xf32> to vector<8x128xf32>
    %cst_15 = arith.constant 5.000000e-01 : f32
    %31 = vector.broadcast %cst_15 : f32 to vector<8x128xf32>
    %32 = arith.mulf %31, %30 : vector<8x128xf32>
    %33 = math.tanh %32 : vector<8x128xf32>
    %cst_16 = arith.constant 5.000000e-01 : f32
    %34 = vector.broadcast %cst_16 : f32 to vector<8x128xf32>
    %35 = arith.mulf %34, %33 : vector<8x128xf32>
    %cst_17 = arith.constant 5.000000e-01 : f32
    %36 = vector.broadcast %cst_17 : f32 to vector<8x128xf32>
    %37 = arith.addf %35, %36 : vector<8x128xf32>
    %38 = arith.mulf %27, %5 : vector<8x128xf32>
    %39 = arith.mulf %19, %29 : vector<8x128xf32>
    %40 = arith.addf %38, %39 : vector<8x128xf32>
    %41 = math.tanh %40 : vector<8x128xf32>
    %42 = arith.mulf %37, %41 : vector<8x128xf32>
    %43 = arith.index_cast %c0_i32_6 : i32 to index
    %c0_18 = arith.constant 0 : index
    %c0_19 = arith.constant 0 : index
    %44 = vector.load %arg3[%43, %c0_18, %c0_19] : memref<8x8x128xf32, #tpu.memory_space<vmem>>, vector<1x8x128xf32>
    %45 = vector.shape_cast %44 : vector<1x8x128xf32> to vector<8x128xf32>
    %46 = vector.shape_cast %42 : vector<8x128xf32> to vector<1x8x128xf32>
    tpu.vector_store %arg3[%43, %c0_18, %c0_19], %46 {strides = array<i32>} : memref<8x8x128xf32, #tpu.memory_space<vmem>>, vector<1x8x128xf32>,
    %c1_i32 = arith.constant 1 : i32
    %47 = arith.index_cast %c1_i32 : i32 to index
    %c0_20 = arith.constant 0 : index
    %c0_21 = arith.constant 0 : index
    %48 = vector.load %arg1[%47, %c0_20, %c0_21] : memref<8x8x512xf32, #tpu.memory_space<vmem>>, vector<1x8x512xf32>
    %49 = vector.shape_cast %48 : vector<1x8x512xf32> to vector<8x512xf32>
    %50 = arith.truncf %42 : vector<8x128xf32> to vector<8x128xbf16>
    %cst_22 = arith.constant dense<0.000000e+00> : vector<8x512xf32>
    %51 = tpu.matmul %50, %3, %cst_22 {dimension_numbers = #tpu.dot_dimension_numbers<[1], [0], [0], [1], [0, 0, 1, 1], [], []>} : vector<8x128xbf16>, vector<128x512xbf16>, vector<8x512xf32> -> vector<8x512xf32>
    %52 = arith.addf %49, %51 : vector<8x512xf32>
    %53 = vector.extract_strided_slice %52 {offsets = [0, 0], sizes = [8, 128], strides = [1, 1]} : vector<8x512xf32> to vector<8x128xf32>
    %cst_23 = arith.constant 5.000000e-01 : f32
    %54 = vector.broadcast %cst_23 : f32 to vector<8x128xf32>
    %55 = arith.mulf %54, %53 : vector<8x128xf32>
    %56 = math.tanh %55 : vector<8x128xf32>
    %cst_24 = arith.constant 5.000000e-01 : f32
    %57 = vector.broadcast %cst_24 : f32 to vector<8x128xf32>
    %58 = arith.mulf %57, %56 : vector<8x128xf32>
    %cst_25 = arith.constant 5.000000e-01 : f32
    %59 = vector.broadcast %cst_25 : f32 to vector<8x128xf32>
    %60 = arith.addf %58, %59 : vector<8x128xf32>
    %61 = vector.extract_strided_slice %52 {offsets = [0, 128], sizes = [8, 128], strides = [1, 1]} : vector<8x512xf32> to vector<8x128xf32>
    %cst_26 = arith.constant 5.000000e-01 : f32
    %62 = vector.broadcast %cst_26 : f32 to vector<8x128xf32>
    %63 = arith.mulf %62, %61 : vector<8x128xf32>
    %64 = math.tanh %63 : vector<8x128xf32>
    %cst_27 = arith.constant 5.000000e-01 : f32
    %65 = vector.broadcast %cst_27 : f32 to vector<8x128xf32>
    %66 = arith.mulf %65, %64 : vector<8x128xf32>
    %cst_28 = arith.constant 5.000000e-01 : f32
    %67 = vector.broadcast %cst_28 : f32 to vector<8x128xf32>
    %68 = arith.addf %66, %67 : vector<8x128xf32>
    %69 = vector.extract_strided_slice %52 {offsets = [0, 256], sizes = [8, 128], strides = [1, 1]} : vector<8x512xf32> to vector<8x128xf32>
    %70 = math.tanh %69 : vector<8x128xf32>
    %71 = vector.extract_strided_slice %52 {offsets = [0, 384], sizes = [8, 128], strides = [1, 1]} : vector<8x512xf32> to vector<8x128xf32>
    %cst_29 = arith.constant 5.000000e-01 : f32
    %72 = vector.broadcast %cst_29 : f32 to vector<8x128xf32>
    %73 = arith.mulf %72, %71 : vector<8x128xf32>
    %74 = math.tanh %73 : vector<8x128xf32>
    %cst_30 = arith.constant 5.000000e-01 : f32
    %75 = vector.broadcast %cst_30 : f32 to vector<8x128xf32>
    %76 = arith.mulf %75, %74 : vector<8x128xf32>
    %cst_31 = arith.constant 5.000000e-01 : f32
    %77 = vector.broadcast %cst_31 : f32 to vector<8x128xf32>
    %78 = arith.addf %76, %77 : vector<8x128xf32>
    %79 = arith.mulf %68, %40 : vector<8x128xf32>
    %80 = arith.mulf %60, %70 : vector<8x128xf32>
    %81 = arith.addf %79, %80 : vector<8x128xf32>
    %82 = math.tanh %81 : vector<8x128xf32>
    %83 = arith.mulf %78, %82 : vector<8x128xf32>
    %84 = arith.index_cast %c1_i32 : i32 to index
    %c0_32 = arith.constant 0 : index
    %c0_33 = arith.constant 0 : index
    %85 = vector.load %arg3[%84, %c0_32, %c0_33] : memref<8x8x128xf32, #tpu.memory_space<vmem>>, vector<1x8x128xf32>
    %86 = vector.shape_cast %85 : vector<1x8x128xf32> to vector<8x128xf32>
    %87 = vector.shape_cast %83 : vector<8x128xf32> to vector<1x8x128xf32>
    tpu.vector_store %arg3[%84, %c0_32, %c0_33], %87 {strides = array<i32>} : memref<8x8x128xf32, #tpu.memory_space<vmem>>, vector<1x8x128xf32>,
    %c2_i32 = arith.constant 2 : i32
    %88 = arith.index_cast %c2_i32 : i32 to index
    %c0_34 = arith.constant 0 : index
    %c0_35 = arith.constant 0 : index
    %89 = vector.load %arg1[%88, %c0_34, %c0_35] : memref<8x8x512xf32, #tpu.memory_space<vmem>>, vector<1x8x512xf32>
    %90 = vector.shape_cast %89 : vector<1x8x512xf32> to vector<8x512xf32>
    %91 = arith.truncf %83 : vector<8x128xf32> to vector<8x128xbf16>
    %cst_36 = arith.constant dense<0.000000e+00> : vector<8x512xf32>
    %92 = tpu.matmul %91, %3, %cst_36 {dimension_numbers = #tpu.dot_dimension_numbers<[1], [0], [0], [1], [0, 0, 1, 1], [], []>} : vector<8x128xbf16>, vector<128x512xbf16>, vector<8x512xf32> -> vector<8x512xf32>
    %93 = arith.addf %90, %92 : vector<8x512xf32>
    %94 = vector.extract_strided_slice %93 {offsets = [0, 0], sizes = [8, 128], strides = [1, 1]} : vector<8x512xf32> to vector<8x128xf32>
    %cst_37 = arith.constant 5.000000e-01 : f32
    %95 = vector.broadcast %cst_37 : f32 to vector<8x128xf32>
    %96 = arith.mulf %95, %94 : vector<8x128xf32>
    %97 = math.tanh %96 : vector<8x128xf32>
    %cst_38 = arith.constant 5.000000e-01 : f32
    %98 = vector.broadcast %cst_38 : f32 to vector<8x128xf32>
    %99 = arith.mulf %98, %97 : vector<8x128xf32>
    %cst_39 = arith.constant 5.000000e-01 : f32
    %100 = vector.broadcast %cst_39 : f32 to vector<8x128xf32>
    %101 = arith.addf %99, %100 : vector<8x128xf32>
    %102 = vector.extract_strided_slice %93 {offsets = [0, 128], sizes = [8, 128], strides = [1, 1]} : vector<8x512xf32> to vector<8x128xf32>
    %cst_40 = arith.constant 5.000000e-01 : f32
    %103 = vector.broadcast %cst_40 : f32 to vector<8x128xf32>
    %104 = arith.mulf %103, %102 : vector<8x128xf32>
    %105 = math.tanh %104 : vector<8x128xf32>
    %cst_41 = arith.constant 5.000000e-01 : f32
    %106 = vector.broadcast %cst_41 : f32 to vector<8x128xf32>
    %107 = arith.mulf %106, %105 : vector<8x128xf32>
    %cst_42 = arith.constant 5.000000e-01 : f32
    %108 = vector.broadcast %cst_42 : f32 to vector<8x128xf32>
    %109 = arith.addf %107, %108 : vector<8x128xf32>
    %110 = vector.extract_strided_slice %93 {offsets = [0, 256], sizes = [8, 128], strides = [1, 1]} : vector<8x512xf32> to vector<8x128xf32>
    %111 = math.tanh %110 : vector<8x128xf32>
    %112 = vector.extract_strided_slice %93 {offsets = [0, 384], sizes = [8, 128], strides = [1, 1]} : vector<8x512xf32> to vector<8x128xf32>
    %cst_43 = arith.constant 5.000000e-01 : f32
    %113 = vector.broadcast %cst_43 : f32 to vector<8x128xf32>
    %114 = arith.mulf %113, %112 : vector<8x128xf32>
    %115 = math.tanh %114 : vector<8x128xf32>
    %cst_44 = arith.constant 5.000000e-01 : f32
    %116 = vector.broadcast %cst_44 : f32 to vector<8x128xf32>
    %117 = arith.mulf %116, %115 : vector<8x128xf32>
    %cst_45 = arith.constant 5.000000e-01 : f32
    %118 = vector.broadcast %cst_45 : f32 to vector<8x128xf32>
    %119 = arith.addf %117, %118 : vector<8x128xf32>
    %120 = arith.mulf %109, %81 : vector<8x128xf32>
    %121 = arith.mulf %101, %111 : vector<8x128xf32>
    %122 = arith.addf %120, %121 : vector<8x128xf32>
    %123 = math.tanh %122 : vector<8x128xf32>
    %124 = arith.mulf %119, %123 : vector<8x128xf32>
    %125 = arith.index_cast %c2_i32 : i32 to index
    %c0_46 = arith.constant 0 : index
    %c0_47 = arith.constant 0 : index
    %126 = vector.load %arg3[%125, %c0_46, %c0_47] : memref<8x8x128xf32, #tpu.memory_space<vmem>>, vector<1x8x128xf32>
    %127 = vector.shape_cast %126 : vector<1x8x128xf32> to vector<8x128xf32>
    %128 = vector.shape_cast %124 : vector<8x128xf32> to vector<1x8x128xf32>
    tpu.vector_store %arg3[%125, %c0_46, %c0_47], %128 {strides = array<i32>} : memref<8x8x128xf32, #tpu.memory_space<vmem>>, vector<1x8x128xf32>,
    %c3_i32 = arith.constant 3 : i32
    %129 = arith.index_cast %c3_i32 : i32 to index
    %c0_48 = arith.constant 0 : index
    %c0_49 = arith.constant 0 : index
    %130 = vector.load %arg1[%129, %c0_48, %c0_49] : memref<8x8x512xf32, #tpu.memory_space<vmem>>, vector<1x8x512xf32>
    %131 = vector.shape_cast %130 : vector<1x8x512xf32> to vector<8x512xf32>
    %132 = arith.truncf %124 : vector<8x128xf32> to vector<8x128xbf16>
    %cst_50 = arith.constant dense<0.000000e+00> : vector<8x512xf32>
    %133 = tpu.matmul %132, %3, %cst_50 {dimension_numbers = #tpu.dot_dimension_numbers<[1], [0], [0], [1], [0, 0, 1, 1], [], []>} : vector<8x128xbf16>, vector<128x512xbf16>, vector<8x512xf32> -> vector<8x512xf32>
    %134 = arith.addf %131, %133 : vector<8x512xf32>
    %135 = vector.extract_strided_slice %134 {offsets = [0, 0], sizes = [8, 128], strides = [1, 1]} : vector<8x512xf32> to vector<8x128xf32>
    %cst_51 = arith.constant 5.000000e-01 : f32
    %136 = vector.broadcast %cst_51 : f32 to vector<8x128xf32>
    %137 = arith.mulf %136, %135 : vector<8x128xf32>
    %138 = math.tanh %137 : vector<8x128xf32>
    %cst_52 = arith.constant 5.000000e-01 : f32
    %139 = vector.broadcast %cst_52 : f32 to vector<8x128xf32>
    %140 = arith.mulf %139, %138 : vector<8x128xf32>
    %cst_53 = arith.constant 5.000000e-01 : f32
    %141 = vector.broadcast %cst_53 : f32 to vector<8x128xf32>
    %142 = arith.addf %140, %141 : vector<8x128xf32>
    %143 = vector.extract_strided_slice %134 {offsets = [0, 128], sizes = [8, 128], strides = [1, 1]} : vector<8x512xf32> to vector<8x128xf32>
    %cst_54 = arith.constant 5.000000e-01 : f32
    %144 = vector.broadcast %cst_54 : f32 to vector<8x128xf32>
    %145 = arith.mulf %144, %143 : vector<8x128xf32>
    %146 = math.tanh %145 : vector<8x128xf32>
    %cst_55 = arith.constant 5.000000e-01 : f32
    %147 = vector.broadcast %cst_55 : f32 to vector<8x128xf32>
    %148 = arith.mulf %147, %146 : vector<8x128xf32>
    %cst_56 = arith.constant 5.000000e-01 : f32
    %149 = vector.broadcast %cst_56 : f32 to vector<8x128xf32>
    %150 = arith.addf %148, %149 : vector<8x128xf32>
    %151 = vector.extract_strided_slice %134 {offsets = [0, 256], sizes = [8, 128], strides = [1, 1]} : vector<8x512xf32> to vector<8x128xf32>
    %152 = math.tanh %151 : vector<8x128xf32>
    %153 = vector.extract_strided_slice %134 {offsets = [0, 384], sizes = [8, 128], strides = [1, 1]} : vector<8x512xf32> to vector<8x128xf32>
    %cst_57 = arith.constant 5.000000e-01 : f32
    %154 = vector.broadcast %cst_57 : f32 to vector<8x128xf32>
    %155 = arith.mulf %154, %153 : vector<8x128xf32>
    %156 = math.tanh %155 : vector<8x128xf32>
    %cst_58 = arith.constant 5.000000e-01 : f32
    %157 = vector.broadcast %cst_58 : f32 to vector<8x128xf32>
    %158 = arith.mulf %157, %156 : vector<8x128xf32>
    %cst_59 = arith.constant 5.000000e-01 : f32
    %159 = vector.broadcast %cst_59 : f32 to vector<8x128xf32>
    %160 = arith.addf %158, %159 : vector<8x128xf32>
    %161 = arith.mulf %150, %122 : vector<8x128xf32>
    %162 = arith.mulf %142, %152 : vector<8x128xf32>
    %163 = arith.addf %161, %162 : vector<8x128xf32>
    %164 = math.tanh %163 : vector<8x128xf32>
    %165 = arith.mulf %160, %164 : vector<8x128xf32>
    %166 = arith.index_cast %c3_i32 : i32 to index
    %c0_60 = arith.constant 0 : index
    %c0_61 = arith.constant 0 : index
    %167 = vector.load %arg3[%166, %c0_60, %c0_61] : memref<8x8x128xf32, #tpu.memory_space<vmem>>, vector<1x8x128xf32>
    %168 = vector.shape_cast %167 : vector<1x8x128xf32> to vector<8x128xf32>
    %169 = vector.shape_cast %165 : vector<8x128xf32> to vector<1x8x128xf32>
    tpu.vector_store %arg3[%166, %c0_60, %c0_61], %169 {strides = array<i32>} : memref<8x8x128xf32, #tpu.memory_space<vmem>>, vector<1x8x128xf32>,
    %c4_i32 = arith.constant 4 : i32
    %170 = arith.index_cast %c4_i32 : i32 to index
    %c0_62 = arith.constant 0 : index
    %c0_63 = arith.constant 0 : index
    %171 = vector.load %arg1[%170, %c0_62, %c0_63] : memref<8x8x512xf32, #tpu.memory_space<vmem>>, vector<1x8x512xf32>
    %172 = vector.shape_cast %171 : vector<1x8x512xf32> to vector<8x512xf32>
    %173 = arith.truncf %165 : vector<8x128xf32> to vector<8x128xbf16>
    %cst_64 = arith.constant dense<0.000000e+00> : vector<8x512xf32>
    %174 = tpu.matmul %173, %3, %cst_64 {dimension_numbers = #tpu.dot_dimension_numbers<[1], [0], [0], [1], [0, 0, 1, 1], [], []>} : vector<8x128xbf16>, vector<128x512xbf16>, vector<8x512xf32> -> vector<8x512xf32>
    %175 = arith.addf %172, %174 : vector<8x512xf32>
    %176 = vector.extract_strided_slice %175 {offsets = [0, 0], sizes = [8, 128], strides = [1, 1]} : vector<8x512xf32> to vector<8x128xf32>
    %cst_65 = arith.constant 5.000000e-01 : f32
    %177 = vector.broadcast %cst_65 : f32 to vector<8x128xf32>
    %178 = arith.mulf %177, %176 : vector<8x128xf32>
    %179 = math.tanh %178 : vector<8x128xf32>
    %cst_66 = arith.constant 5.000000e-01 : f32
    %180 = vector.broadcast %cst_66 : f32 to vector<8x128xf32>
    %181 = arith.mulf %180, %179 : vector<8x128xf32>
    %cst_67 = arith.constant 5.000000e-01 : f32
    %182 = vector.broadcast %cst_67 : f32 to vector<8x128xf32>
    %183 = arith.addf %181, %182 : vector<8x128xf32>
    %184 = vector.extract_strided_slice %175 {offsets = [0, 128], sizes = [8, 128], strides = [1, 1]} : vector<8x512xf32> to vector<8x128xf32>
    %cst_68 = arith.constant 5.000000e-01 : f32
    %185 = vector.broadcast %cst_68 : f32 to vector<8x128xf32>
    %186 = arith.mulf %185, %184 : vector<8x128xf32>
    %187 = math.tanh %186 : vector<8x128xf32>
    %cst_69 = arith.constant 5.000000e-01 : f32
    %188 = vector.broadcast %cst_69 : f32 to vector<8x128xf32>
    %189 = arith.mulf %188, %187 : vector<8x128xf32>
    %cst_70 = arith.constant 5.000000e-01 : f32
    %190 = vector.broadcast %cst_70 : f32 to vector<8x128xf32>
    %191 = arith.addf %189, %190 : vector<8x128xf32>
    %192 = vector.extract_strided_slice %175 {offsets = [0, 256], sizes = [8, 128], strides = [1, 1]} : vector<8x512xf32> to vector<8x128xf32>
    %193 = math.tanh %192 : vector<8x128xf32>
    %194 = vector.extract_strided_slice %175 {offsets = [0, 384], sizes = [8, 128], strides = [1, 1]} : vector<8x512xf32> to vector<8x128xf32>
    %cst_71 = arith.constant 5.000000e-01 : f32
    %195 = vector.broadcast %cst_71 : f32 to vector<8x128xf32>
    %196 = arith.mulf %195, %194 : vector<8x128xf32>
    %197 = math.tanh %196 : vector<8x128xf32>
    %cst_72 = arith.constant 5.000000e-01 : f32
    %198 = vector.broadcast %cst_72 : f32 to vector<8x128xf32>
    %199 = arith.mulf %198, %197 : vector<8x128xf32>
    %cst_73 = arith.constant 5.000000e-01 : f32
    %200 = vector.broadcast %cst_73 : f32 to vector<8x128xf32>
    %201 = arith.addf %199, %200 : vector<8x128xf32>
    %202 = arith.mulf %191, %163 : vector<8x128xf32>
    %203 = arith.mulf %183, %193 : vector<8x128xf32>
    %204 = arith.addf %202, %203 : vector<8x128xf32>
    %205 = math.tanh %204 : vector<8x128xf32>
    %206 = arith.mulf %201, %205 : vector<8x128xf32>
    %207 = arith.index_cast %c4_i32 : i32 to index
    %c0_74 = arith.constant 0 : index
    %c0_75 = arith.constant 0 : index
    %208 = vector.load %arg3[%207, %c0_74, %c0_75] : memref<8x8x128xf32, #tpu.memory_space<vmem>>, vector<1x8x128xf32>
    %209 = vector.shape_cast %208 : vector<1x8x128xf32> to vector<8x128xf32>
    %210 = vector.shape_cast %206 : vector<8x128xf32> to vector<1x8x128xf32>
    tpu.vector_store %arg3[%207, %c0_74, %c0_75], %210 {strides = array<i32>} : memref<8x8x128xf32, #tpu.memory_space<vmem>>, vector<1x8x128xf32>,
    %c5_i32 = arith.constant 5 : i32
    %211 = arith.index_cast %c5_i32 : i32 to index
    %c0_76 = arith.constant 0 : index
    %c0_77 = arith.constant 0 : index
    %212 = vector.load %arg1[%211, %c0_76, %c0_77] : memref<8x8x512xf32, #tpu.memory_space<vmem>>, vector<1x8x512xf32>
    %213 = vector.shape_cast %212 : vector<1x8x512xf32> to vector<8x512xf32>
    %214 = arith.truncf %206 : vector<8x128xf32> to vector<8x128xbf16>
    %cst_78 = arith.constant dense<0.000000e+00> : vector<8x512xf32>
    %215 = tpu.matmul %214, %3, %cst_78 {dimension_numbers = #tpu.dot_dimension_numbers<[1], [0], [0], [1], [0, 0, 1, 1], [], []>} : vector<8x128xbf16>, vector<128x512xbf16>, vector<8x512xf32> -> vector<8x512xf32>
    %216 = arith.addf %213, %215 : vector<8x512xf32>
    %217 = vector.extract_strided_slice %216 {offsets = [0, 0], sizes = [8, 128], strides = [1, 1]} : vector<8x512xf32> to vector<8x128xf32>
    %cst_79 = arith.constant 5.000000e-01 : f32
    %218 = vector.broadcast %cst_79 : f32 to vector<8x128xf32>
    %219 = arith.mulf %218, %217 : vector<8x128xf32>
    %220 = math.tanh %219 : vector<8x128xf32>
    %cst_80 = arith.constant 5.000000e-01 : f32
    %221 = vector.broadcast %cst_80 : f32 to vector<8x128xf32>
    %222 = arith.mulf %221, %220 : vector<8x128xf32>
    %cst_81 = arith.constant 5.000000e-01 : f32
    %223 = vector.broadcast %cst_81 : f32 to vector<8x128xf32>
    %224 = arith.addf %222, %223 : vector<8x128xf32>
    %225 = vector.extract_strided_slice %216 {offsets = [0, 128], sizes = [8, 128], strides = [1, 1]} : vector<8x512xf32> to vector<8x128xf32>
    %cst_82 = arith.constant 5.000000e-01 : f32
    %226 = vector.broadcast %cst_82 : f32 to vector<8x128xf32>
    %227 = arith.mulf %226, %225 : vector<8x128xf32>
    %228 = math.tanh %227 : vector<8x128xf32>
    %cst_83 = arith.constant 5.000000e-01 : f32
    %229 = vector.broadcast %cst_83 : f32 to vector<8x128xf32>
    %230 = arith.mulf %229, %228 : vector<8x128xf32>
    %cst_84 = arith.constant 5.000000e-01 : f32
    %231 = vector.broadcast %cst_84 : f32 to vector<8x128xf32>
    %232 = arith.addf %230, %231 : vector<8x128xf32>
    %233 = vector.extract_strided_slice %216 {offsets = [0, 256], sizes = [8, 128], strides = [1, 1]} : vector<8x512xf32> to vector<8x128xf32>
    %234 = math.tanh %233 : vector<8x128xf32>
    %235 = vector.extract_strided_slice %216 {offsets = [0, 384], sizes = [8, 128], strides = [1, 1]} : vector<8x512xf32> to vector<8x128xf32>
    %cst_85 = arith.constant 5.000000e-01 : f32
    %236 = vector.broadcast %cst_85 : f32 to vector<8x128xf32>
    %237 = arith.mulf %236, %235 : vector<8x128xf32>
    %238 = math.tanh %237 : vector<8x128xf32>
    %cst_86 = arith.constant 5.000000e-01 : f32
    %239 = vector.broadcast %cst_86 : f32 to vector<8x128xf32>
    %240 = arith.mulf %239, %238 : vector<8x128xf32>
    %cst_87 = arith.constant 5.000000e-01 : f32
    %241 = vector.broadcast %cst_87 : f32 to vector<8x128xf32>
    %242 = arith.addf %240, %241 : vector<8x128xf32>
    %243 = arith.mulf %232, %204 : vector<8x128xf32>
    %244 = arith.mulf %224, %234 : vector<8x128xf32>
    %245 = arith.addf %243, %244 : vector<8x128xf32>
    %246 = math.tanh %245 : vector<8x128xf32>
    %247 = arith.mulf %242, %246 : vector<8x128xf32>
    %248 = arith.index_cast %c5_i32 : i32 to index
    %c0_88 = arith.constant 0 : index
    %c0_89 = arith.constant 0 : index
    %249 = vector.load %arg3[%248, %c0_88, %c0_89] : memref<8x8x128xf32, #tpu.memory_space<vmem>>, vector<1x8x128xf32>
    %250 = vector.shape_cast %249 : vector<1x8x128xf32> to vector<8x128xf32>
    %251 = vector.shape_cast %247 : vector<8x128xf32> to vector<1x8x128xf32>
    tpu.vector_store %arg3[%248, %c0_88, %c0_89], %251 {strides = array<i32>} : memref<8x8x128xf32, #tpu.memory_space<vmem>>, vector<1x8x128xf32>,
    %c6_i32 = arith.constant 6 : i32
    %252 = arith.index_cast %c6_i32 : i32 to index
    %c0_90 = arith.constant 0 : index
    %c0_91 = arith.constant 0 : index
    %253 = vector.load %arg1[%252, %c0_90, %c0_91] : memref<8x8x512xf32, #tpu.memory_space<vmem>>, vector<1x8x512xf32>
    %254 = vector.shape_cast %253 : vector<1x8x512xf32> to vector<8x512xf32>
    %255 = arith.truncf %247 : vector<8x128xf32> to vector<8x128xbf16>
    %cst_92 = arith.constant dense<0.000000e+00> : vector<8x512xf32>
    %256 = tpu.matmul %255, %3, %cst_92 {dimension_numbers = #tpu.dot_dimension_numbers<[1], [0], [0], [1], [0, 0, 1, 1], [], []>} : vector<8x128xbf16>, vector<128x512xbf16>, vector<8x512xf32> -> vector<8x512xf32>
    %257 = arith.addf %254, %256 : vector<8x512xf32>
    %258 = vector.extract_strided_slice %257 {offsets = [0, 0], sizes = [8, 128], strides = [1, 1]} : vector<8x512xf32> to vector<8x128xf32>
    %cst_93 = arith.constant 5.000000e-01 : f32
    %259 = vector.broadcast %cst_93 : f32 to vector<8x128xf32>
    %260 = arith.mulf %259, %258 : vector<8x128xf32>
    %261 = math.tanh %260 : vector<8x128xf32>
    %cst_94 = arith.constant 5.000000e-01 : f32
    %262 = vector.broadcast %cst_94 : f32 to vector<8x128xf32>
    %263 = arith.mulf %262, %261 : vector<8x128xf32>
    %cst_95 = arith.constant 5.000000e-01 : f32
    %264 = vector.broadcast %cst_95 : f32 to vector<8x128xf32>
    %265 = arith.addf %263, %264 : vector<8x128xf32>
    %266 = vector.extract_strided_slice %257 {offsets = [0, 128], sizes = [8, 128], strides = [1, 1]} : vector<8x512xf32> to vector<8x128xf32>
    %cst_96 = arith.constant 5.000000e-01 : f32
    %267 = vector.broadcast %cst_96 : f32 to vector<8x128xf32>
    %268 = arith.mulf %267, %266 : vector<8x128xf32>
    %269 = math.tanh %268 : vector<8x128xf32>
    %cst_97 = arith.constant 5.000000e-01 : f32
    %270 = vector.broadcast %cst_97 : f32 to vector<8x128xf32>
    %271 = arith.mulf %270, %269 : vector<8x128xf32>
    %cst_98 = arith.constant 5.000000e-01 : f32
    %272 = vector.broadcast %cst_98 : f32 to vector<8x128xf32>
    %273 = arith.addf %271, %272 : vector<8x128xf32>
    %274 = vector.extract_strided_slice %257 {offsets = [0, 256], sizes = [8, 128], strides = [1, 1]} : vector<8x512xf32> to vector<8x128xf32>
    %275 = math.tanh %274 : vector<8x128xf32>
    %276 = vector.extract_strided_slice %257 {offsets = [0, 384], sizes = [8, 128], strides = [1, 1]} : vector<8x512xf32> to vector<8x128xf32>
    %cst_99 = arith.constant 5.000000e-01 : f32
    %277 = vector.broadcast %cst_99 : f32 to vector<8x128xf32>
    %278 = arith.mulf %277, %276 : vector<8x128xf32>
    %279 = math.tanh %278 : vector<8x128xf32>
    %cst_100 = arith.constant 5.000000e-01 : f32
    %280 = vector.broadcast %cst_100 : f32 to vector<8x128xf32>
    %281 = arith.mulf %280, %279 : vector<8x128xf32>
    %cst_101 = arith.constant 5.000000e-01 : f32
    %282 = vector.broadcast %cst_101 : f32 to vector<8x128xf32>
    %283 = arith.addf %281, %282 : vector<8x128xf32>
    %284 = arith.mulf %273, %245 : vector<8x128xf32>
    %285 = arith.mulf %265, %275 : vector<8x128xf32>
    %286 = arith.addf %284, %285 : vector<8x128xf32>
    %287 = math.tanh %286 : vector<8x128xf32>
    %288 = arith.mulf %283, %287 : vector<8x128xf32>
    %289 = arith.index_cast %c6_i32 : i32 to index
    %c0_102 = arith.constant 0 : index
    %c0_103 = arith.constant 0 : index
    %290 = vector.load %arg3[%289, %c0_102, %c0_103] : memref<8x8x128xf32, #tpu.memory_space<vmem>>, vector<1x8x128xf32>
    %291 = vector.shape_cast %290 : vector<1x8x128xf32> to vector<8x128xf32>
    %292 = vector.shape_cast %288 : vector<8x128xf32> to vector<1x8x128xf32>
    tpu.vector_store %arg3[%289, %c0_102, %c0_103], %292 {strides = array<i32>} : memref<8x8x128xf32, #tpu.memory_space<vmem>>, vector<1x8x128xf32>,
    %c7_i32 = arith.constant 7 : i32
    %293 = arith.index_cast %c7_i32 : i32 to index
    %c0_104 = arith.constant 0 : index
    %c0_105 = arith.constant 0 : index
    %294 = vector.load %arg1[%293, %c0_104, %c0_105] : memref<8x8x512xf32, #tpu.memory_space<vmem>>, vector<1x8x512xf32>
    %295 = vector.shape_cast %294 : vector<1x8x512xf32> to vector<8x512xf32>
    %296 = arith.truncf %288 : vector<8x128xf32> to vector<8x128xbf16>
    %cst_106 = arith.constant dense<0.000000e+00> : vector<8x512xf32>
    %297 = tpu.matmul %296, %3, %cst_106 {dimension_numbers = #tpu.dot_dimension_numbers<[1], [0], [0], [1], [0, 0, 1, 1], [], []>} : vector<8x128xbf16>, vector<128x512xbf16>, vector<8x512xf32> -> vector<8x512xf32>
    %298 = arith.addf %295, %297 : vector<8x512xf32>
    %299 = vector.extract_strided_slice %298 {offsets = [0, 0], sizes = [8, 128], strides = [1, 1]} : vector<8x512xf32> to vector<8x128xf32>
    %cst_107 = arith.constant 5.000000e-01 : f32
    %300 = vector.broadcast %cst_107 : f32 to vector<8x128xf32>
    %301 = arith.mulf %300, %299 : vector<8x128xf32>
    %302 = math.tanh %301 : vector<8x128xf32>
    %cst_108 = arith.constant 5.000000e-01 : f32
    %303 = vector.broadcast %cst_108 : f32 to vector<8x128xf32>
    %304 = arith.mulf %303, %302 : vector<8x128xf32>
    %cst_109 = arith.constant 5.000000e-01 : f32
    %305 = vector.broadcast %cst_109 : f32 to vector<8x128xf32>
    %306 = arith.addf %304, %305 : vector<8x128xf32>
    %307 = vector.extract_strided_slice %298 {offsets = [0, 128], sizes = [8, 128], strides = [1, 1]} : vector<8x512xf32> to vector<8x128xf32>
    %cst_110 = arith.constant 5.000000e-01 : f32
    %308 = vector.broadcast %cst_110 : f32 to vector<8x128xf32>
    %309 = arith.mulf %308, %307 : vector<8x128xf32>
    %310 = math.tanh %309 : vector<8x128xf32>
    %cst_111 = arith.constant 5.000000e-01 : f32
    %311 = vector.broadcast %cst_111 : f32 to vector<8x128xf32>
    %312 = arith.mulf %311, %310 : vector<8x128xf32>
    %cst_112 = arith.constant 5.000000e-01 : f32
    %313 = vector.broadcast %cst_112 : f32 to vector<8x128xf32>
    %314 = arith.addf %312, %313 : vector<8x128xf32>
    %315 = vector.extract_strided_slice %298 {offsets = [0, 256], sizes = [8, 128], strides = [1, 1]} : vector<8x512xf32> to vector<8x128xf32>
    %316 = math.tanh %315 : vector<8x128xf32>
    %317 = vector.extract_strided_slice %298 {offsets = [0, 384], sizes = [8, 128], strides = [1, 1]} : vector<8x512xf32> to vector<8x128xf32>
    %cst_113 = arith.constant 5.000000e-01 : f32
    %318 = vector.broadcast %cst_113 : f32 to vector<8x128xf32>
    %319 = arith.mulf %318, %317 : vector<8x128xf32>
    %320 = math.tanh %319 : vector<8x128xf32>
    %cst_114 = arith.constant 5.000000e-01 : f32
    %321 = vector.broadcast %cst_114 : f32 to vector<8x128xf32>
    %322 = arith.mulf %321, %320 : vector<8x128xf32>
    %cst_115 = arith.constant 5.000000e-01 : f32
    %323 = vector.broadcast %cst_115 : f32 to vector<8x128xf32>
    %324 = arith.addf %322, %323 : vector<8x128xf32>
    %325 = arith.mulf %314, %286 : vector<8x128xf32>
    %326 = arith.mulf %306, %316 : vector<8x128xf32>
    %327 = arith.addf %325, %326 : vector<8x128xf32>
    %328 = math.tanh %327 : vector<8x128xf32>
    %329 = arith.mulf %324, %328 : vector<8x128xf32>
    %330 = arith.index_cast %c7_i32 : i32 to index
    %c0_116 = arith.constant 0 : index
    %c0_117 = arith.constant 0 : index
    %331 = vector.load %arg3[%330, %c0_116, %c0_117] : memref<8x8x128xf32, #tpu.memory_space<vmem>>, vector<1x8x128xf32>
    %332 = vector.shape_cast %331 : vector<1x8x128xf32> to vector<8x128xf32>
    %333 = vector.shape_cast %329 : vector<8x128xf32> to vector<1x8x128xf32>
    tpu.vector_store %arg3[%330, %c0_116, %c0_117], %333 {strides = array<i32>} : memref<8x8x128xf32, #tpu.memory_space<vmem>>, vector<1x8x128xf32>,
    %c8_i32 = arith.constant 8 : i32
    %c0_118 = arith.constant 0 : index
    %c0_119 = arith.constant 0 : index
    %334 = vector.load %arg5[%c0_118, %c0_119] : memref<8x128xf32, #tpu.memory_space<vmem>>, vector<8x128xf32>
    tpu.vector_store %arg5[%c0_118, %c0_119], %329 {strides = array<i32>} : memref<8x128xf32, #tpu.memory_space<vmem>>, vector<8x128xf32>,
    %c0_120 = arith.constant 0 : index
    %c0_121 = arith.constant 0 : index
    %335 = vector.load %arg6[%c0_120, %c0_121] : memref<8x128xf32, #tpu.memory_space<vmem>>, vector<8x128xf32>
    tpu.vector_store %arg6[%c0_120, %c0_121], %327 {strides = array<i32>} : memref<8x128xf32, #tpu.memory_space<vmem>>, vector<8x128xf32>,
    return
  }
  func.func @transform_0(%arg0: i32) -> (i32, i32, i32) {
    %c0_i32 = arith.constant 0 : i32
    %c0_i32_0 = arith.constant 0 : i32
    %c0_i32_1 = arith.constant 0 : i32
    return %arg0, %c0_i32, %c0_i32_0 : i32, i32, i32
  }
  func.func @transform_2(%arg0: i32) -> (i32, i32, i32) {
    %c0_i32 = arith.constant 0 : i32
    %c0_i32_0 = arith.constant 0 : i32
    %c0_i32_1 = arith.constant 0 : i32
    return %arg0, %c0_i32, %c0_i32_0 : i32, i32, i32
  }
}

</mosaic_0001>

<bundles_post_ra>
// kernel: elstm_forward.2
= control target key start
LH: loop header
LB: loop body
LE: loop exit
PB: predicated region body
PF: predicated region fallthrough
CT: control target
= control target key end

     0   :  { %s1634_s9 = smov 0   ;;  %s2204_s0 = inlined_call_operand.vmem [shape: f32[32,8,512], index: 0, kind: input, shape index: {}]   ;;  %s2205_s1 = inlined_call_operand.vmem [shape: bf16[128,512], index: 1, kind: input, shape index: {}]   ;;  %s2206_s2 = inlined_call_operand.vmem [shape: f32[32,8,128], index: 2, kind: output, shape index: {}]  }
   0x1 LB: > { %s1445_s10 = sadd.s32 4294967295, %s1615_s9   ;;  %p1449_p0 = scmp.ge.s32.totalorder %s1615_s9, 1  ;;  %s1615_s9 = sphi %s1634_s9, %s12_s9  }
   0x2   : > { %p90_p1 = scmp.lt.s32.totalorder %s1615_s9, 5 }
   0x4   : > { %p91_p2 = pnand %p1449_p0, %p90_p1 }
   0x5   : > { %s1450_s11 = sshll.u32 (!%p91_p2), %s1445_s10, 3  ;;  %p1455_p4 = scmp.ne.s32.totalorder (!%p91_p2), %s1445_s10, 0 }
   0x6   : > { %94 = sbr.rel (%p91_p2) target bundleno = 2099 (0x833), region = 24  ;;  %p112_p3 = scmp.lt.s32.totalorder (!%p91_p2), %s1450_s11, 31 }
   0xd   : > { %s2208_s11 = smov (!%p112_p3, %s1450_s11), 31  ;;  %128 = sbr.rel (%p1455_p4) target bundleno = 54 (0x36), region = 28 }
   0xe   : > { %s1494_s12 = sshll.u32 %s2208_s11, 5  ;;  %s1454_s13 = sshll.u32 %s2208_s11, 3  ;;  %v148_v0 = vld [vmem:[%s2205_s1] sm:$0xf] (!%p1455_p4)  ;;  %v150_v1 = vld [vmem:[%s2205_s1 + $0x10] sm:$0xf] (!%p1455_p4) }
   0xf   : > { %s1645_s16 = scalar_lea.vmem %s2204_s0, %s1494_s12  ;;  %s1650_s19 = scalar_lea.vmem %s2206_s2, %s1454_s13  ;;  %v162_v2 = vld [vmem:[%s2205_s1 + $0x1c] sm:$0xff] (!%p1455_p4)   ;;  %v1617_v3 = vmov (!%p1455_p4), 0.0   ;;  %149 = vst [vmem:[#allocation2] sm:$0xf] (!%p1455_p4), %v148_v0  ;;  %151 = vst [vmem:[#allocation2 + $0x4] sm:$0xf] (!%p1455_p4), %v150_v1 }
  0x10   : > { %129 = vst [vmem:[#allocation3] sm:$0xff] (!%p1455_p4), %v1617_v3  ;;  %130 = vst [vmem:[#allocation4] sm:$0xff] (!%p1455_p4), %v1617_v3  ;;  %v152_v4 = vld [vmem:[%s2205_s1 + $0x4] sm:$0xf] (!%p1455_p4)  ;;  %v154_v5 = vld [vmem:[%s2205_s1 + $0x14] sm:$0xf] (!%p1455_p4) }
  0x11   : > { %v156_v6 = vld [vmem:[%s2205_s1 + $0x8] sm:$0xf] (!%p1455_p4)  ;;  %163 = vst [vmem:[#allocation2 + $0x1c] sm:$0xff] (!%p1455_p4), %v162_v2   ;;  %153 = vst [vmem:[#allocation2 + $0x8] sm:$0xf] (!%p1455_p4), %v152_v4  ;;  %v178_v15 = vld [vmem:[%s2205_s1 + $0x3c] sm:$0xff] (!%p1455_p4)  }
  0x12   : > { %155 = vst [vmem:[#allocation2 + $0xc] sm:$0xf] (!%p1455_p4), %v154_v5  ;;  %157 = vst [vmem:[#allocation2 + $0x10] sm:$0xf] (!%p1455_p4), %v156_v6  ;;  %v158_v7 = vld [vmem:[%s2205_s1 + $0x18] sm:$0xf] (!%p1455_p4) }
  0x13   : > { %v160_v8 = vld [vmem:[%s2205_s1 + $0xc] sm:$0xf] (!%p1455_p4)  ;;  %v166_v9 = vld [vmem:[%s2205_s1 + $0x30] sm:$0xf] (!%p1455_p4)  ;;  %159 = vst [vmem:[#allocation2 + $0x14] sm:$0xf] (!%p1455_p4), %v158_v7 }
  0x14   : > { %161 = vst [vmem:[#allocation2 + $0x18] sm:$0xf] %v160_v8  ;;  %167 = vst [vmem:[#allocation2 + $0x24] sm:$0xf] %v166_v9  ;;  %v168_v10 = vld [vmem:[%s2205_s1 + $0x24] sm:$0xf] }
  0x15   : > { %v170_v11 = vld [vmem:[%s2205_s1 + $0x34] sm:$0xf]  ;;  %v172_v12 = vld [vmem:[%s2205_s1 + $0x28] sm:$0xf]  ;;  %169 = vst [vmem:[#allocation2 + $0x28] sm:$0xf] %v168_v10 }
  0x16   : > { %171 = vst [vmem:[#allocation2 + $0x2c] sm:$0xf] %v170_v11  ;;  %173 = vst [vmem:[#allocation2 + $0x30] sm:$0xf] %v172_v12  ;;  %v174_v13 = vld [vmem:[%s2205_s1 + $0x38] sm:$0xf] }
  0x17   : > { %v176_v14 = vld [vmem:[%s2205_s1 + $0x2c] sm:$0xf]  ;;  %175 = vst [vmem:[#allocation2 + $0x34] sm:$0xf] %v174_v13  ;;  %179 = vst [vmem:[#allocation2 + $0x3c] sm:$0xff] %v178_v15   ;;  %v194_v22 = vld [vmem:[%s2205_s1 + $0x5c] sm:$0xff]  }
  0x18   : > { %177 = vst [vmem:[#allocation2 + $0x38] sm:$0xf] %v176_v14  ;;  %v182_v16 = vld [vmem:[%s2205_s1 + $0x50] sm:$0xf]  ;;  %v184_v17 = vld [vmem:[%s2205_s1 + $0x44] sm:$0xf] }
  0x19   : > { %v186_v18 = vld [vmem:[%s2205_s1 + $0x54] sm:$0xf]  ;;  %183 = vst [vmem:[#allocation2 + $0x44] sm:$0xf] %v182_v16  ;;  %185 = vst [vmem:[#allocation2 + $0x48] sm:$0xf] %v184_v17 }
  0x1a   : > { %187 = vst [vmem:[#allocation2 + $0x4c] sm:$0xf] %v186_v18  ;;  %v188_v19 = vld [vmem:[%s2205_s1 + $0x48] sm:$0xf]  ;;  %v190_v20 = vld [vmem:[%s2205_s1 + $0x58] sm:$0xf] }
  0x1b   : > { %v192_v21 = vld [vmem:[%s2205_s1 + $0x4c] sm:$0xf]  ;;  %189 = vst [vmem:[#allocation2 + $0x50] sm:$0xf] %v188_v19  ;;  %191 = vst [vmem:[#allocation2 + $0x54] sm:$0xf] %v190_v20 }
  0x1c   : > { %193 = vst [vmem:[#allocation2 + $0x58] sm:$0xf] %v192_v21  ;;  %v198_v23 = vld [vmem:[%s2205_s1 + $0x70] sm:$0xf]  ;;  %v200_v24 = vld [vmem:[%s2205_s1 + $0x64] sm:$0xf] }
  0x1d   : > { %195 = vst [vmem:[#allocation2 + $0x5c] sm:$0xff] %v194_v22   ;;  %199 = vst [vmem:[#allocation2 + $0x64] sm:$0xf] %v198_v23  ;;  %v202_v25 = vld [vmem:[%s2205_s1 + $0x74] sm:$0xf]  ;;  %v210_v29 = vld [vmem:[%s2205_s1 + $0x7c] sm:$0xff]  }
  0x1e   : > { %201 = vst [vmem:[#allocation2 + $0x68] sm:$0xf] %v200_v24  ;;  %v204_v26 = vld [vmem:[%s2205_s1 + $0x68] sm:$0xf]  ;;  %v206_v27 = vld [vmem:[%s2205_s1 + $0x78] sm:$0xf] }
  0x1f   : > { %203 = vst [vmem:[#allocation2 + $0x6c] sm:$0xf] %v202_v25  ;;  %205 = vst [vmem:[#allocation2 + $0x70] sm:$0xf] %v204_v26  ;;  %v208_v28 = vld [vmem:[%s2205_s1 + $0x6c] sm:$0xf] }
  0x20   : > { %207 = vst [vmem:[#allocation2 + $0x74] sm:$0xf] %v206_v27  ;;  %v214_v30 = vld [vmem:[%s2205_s1 + $0x90] sm:$0xf]  ;;  %209 = vst [vmem:[#allocation2 + $0x78] sm:$0xf] %v208_v28 }
  0x21   : > { %211 = vst [vmem:[#allocation2 + $0x7c] sm:$0xff] %v210_v29   ;;  %215 = vst [vmem:[#allocation2 + $0x84] sm:$0xf] %v214_v30  ;;  %v216_v31 = vld [vmem:[%s2205_s1 + $0x84] sm:$0xf]  ;;  %v226_v36 = vld [vmem:[%s2205_s1 + $0x9c] sm:$0xff]  }
  0x22   : > { %v218_v32 = vld [vmem:[%s2205_s1 + $0x94] sm:$0xf]  ;;  %v220_v33 = vld [vmem:[%s2205_s1 + $0x88] sm:$0xf]  ;;  %217 = vst [vmem:[#allocation2 + $0x88] sm:$0xf] %v216_v31 }
  0x23   : > { %219 = vst [vmem:[#allocation2 + $0x8c] sm:$0xf] %v218_v32  ;;  %221 = vst [vmem:[#allocation2 + $0x90] sm:$0xf] %v220_v33  ;;  %v222_v34 = vld [vmem:[%s2205_s1 + $0x98] sm:$0xf] }
  0x24   : > { %v224_v35 = vld [vmem:[%s2205_s1 + $0x8c] sm:$0xf]  ;;  %223 = vst [vmem:[#allocation2 + $0x94] sm:$0xf] %v222_v34  ;;  %227 = vst [vmem:[#allocation2 + $0x9c] sm:$0xff] %v226_v36   ;;  %v242_v43 = vld [vmem:[%s2205_s1 + $0xbc] sm:$0xff]  }
  0x25   : > { %225 = vst [vmem:[#allocation2 + $0x98] sm:$0xf] %v224_v35  ;;  %v230_v37 = vld [vmem:[%s2205_s1 + $0xb0] sm:$0xf]  ;;  %v232_v38 = vld [vmem:[%s2205_s1 + $0xa4] sm:$0xf] }
  0x26   : > { %v234_v39 = vld [vmem:[%s2205_s1 + $0xb4] sm:$0xf]  ;;  %231 = vst [vmem:[#allocation2 + $0xa4] sm:$0xf] %v230_v37  ;;  %233 = vst [vmem:[#allocation2 + $0xa8] sm:$0xf] %v232_v38 }
  0x27   : > { %235 = vst [vmem:[#allocation2 + $0xac] sm:$0xf] %v234_v39  ;;  %v236_v40 = vld [vmem:[%s2205_s1 + $0xa8] sm:$0xf]  ;;  %v238_v41 = vld [vmem:[%s2205_s1 + $0xb8] sm:$0xf] }
  0x28   : > { %v240_v42 = vld [vmem:[%s2205_s1 + $0xac] sm:$0xf]  ;;  %237 = vst [vmem:[#allocation2 + $0xb0] sm:$0xf] %v236_v40  ;;  %239 = vst [vmem:[#allocation2 + $0xb4] sm:$0xf] %v238_v41 }
  0x29   : > { %241 = vst [vmem:[#allocation2 + $0xb8] sm:$0xf] %v240_v42  ;;  %v246_v44 = vld [vmem:[%s2205_s1 + $0xd0] sm:$0xf]  ;;  %v248_v45 = vld [vmem:[%s2205_s1 + $0xc4] sm:$0xf] }
  0x2a   : > { %243 = vst [vmem:[#allocation2 + $0xbc] sm:$0xff] %v242_v43   ;;  %247 = vst [vmem:[#allocation2 + $0xc4] sm:$0xf] %v246_v44  ;;  %v250_v46 = vld [vmem:[%s2205_s1 + $0xd4] sm:$0xf]  ;;  %v258_v50 = vld [vmem:[%s2205_s1 + $0xdc] sm:$0xff]  }
  0x2b   : > { %249 = vst [vmem:[#allocation2 + $0xc8] sm:$0xf] %v248_v45  ;;  %v252_v47 = vld [vmem:[%s2205_s1 + $0xc8] sm:$0xf]  ;;  %v254_v48 = vld [vmem:[%s2205_s1 + $0xd8] sm:$0xf] }
  0x2c   : > { %251 = vst [vmem:[#allocation2 + $0xcc] sm:$0xf] %v250_v46  ;;  %253 = vst [vmem:[#allocation2 + $0xd0] sm:$0xf] %v252_v47  ;;  %v256_v49 = vld [vmem:[%s2205_s1 + $0xcc] sm:$0xf] }
  0x2d   : > { %255 = vst [vmem:[#allocation2 + $0xd4] sm:$0xf] %v254_v48  ;;  %v262_v51 = vld [vmem:[%s2205_s1 + $0xf0] sm:$0xf]  ;;  %257 = vst [vmem:[#allocation2 + $0xd8] sm:$0xf] %v256_v49 }
  0x2e   : > { %259 = vst [vmem:[#allocation2 + $0xdc] sm:$0xff] %v258_v50   ;;  %263 = vst [vmem:[#allocation2 + $0xe4] sm:$0xf] %v262_v51  ;;  %v264_v52 = vld [vmem:[%s2205_s1 + $0xe4] sm:$0xf] }
  0x2f   : > { %v266_v53 = vld [vmem:[%s2205_s1 + $0xf4] sm:$0xf]  ;;  %v268_v54 = vld [vmem:[%s2205_s1 + $0xe8] sm:$0xf]  ;;  %265 = vst [vmem:[#allocation2 + $0xe8] sm:$0xf] %v264_v52 }
  0x30   : > { %267 = vst [vmem:[#allocation2 + $0xec] sm:$0xf] %v266_v53  ;;  %269 = vst [vmem:[#allocation2 + $0xf0] sm:$0xf] %v268_v54  ;;  %v270_v55 = vld [vmem:[%s2205_s1 + $0xf8] sm:$0xf] }
  0x31   : > { %v272_v56 = vld [vmem:[%s2205_s1 + $0xec] sm:$0xf]  ;;  %v274_v57 = vld [vmem:[%s2205_s1 + $0xfc] sm:$0xf]  ;;  %271 = vst [vmem:[#allocation2 + $0xf4] sm:$0xf] %v270_v55 }
  0x32   : > { %273 = vst [vmem:[#allocation2 + $0xf8] sm:$0xf] %v272_v56  ;;  %275 = vst [vmem:[#allocation2 + $0xfc] sm:$0xf] %v274_v57 }
  0x33   : > { %434 = vsyncadd [#allocation5], 4096 }
  0x34   : > { %1611 = dma.done.wait [#allocation5], 4096 }
  0x35   : > { %1612 = vsyncadd [#allocation5], 4294963200 }
  0x36 PF: > { %v1827_v60 = vld [vmem:[#allocation2 + $0x28] sm:$0xff]  ;;  %v1618_v63 = vmov 0   ;;  %v1837_v0 = vld [vmem:[#allocation2 + $0x38] sm:$0xff]  ;;  %v1846_v3 = vld [vmem:[#allocation2 + $0x30] sm:$0xff] }
  0x37   : > { %510 = vmatprep.mubr.bf16.mxu0 %v1618_v63  ;;  %v1843_v2 = vld [vmem:[#allocation2 + $0x48] sm:$0xff]  ;;  %551 = vmatprep.mubr.bf16.mxu1 %v1618_v63  ;;  %v1849_v4 = vld [vmem:[#allocation2 + $0x58] sm:$0xff]  ;;  %v1853_v5 = vld [vmem:[#allocation2 + $0x40] sm:$0xff] }
  0x38   : > { %v1825_v59 = vld [vmem:[#allocation2] sm:$0xff]  ;;  %v1856_v6 = vld [vmem:[#allocation2 + $0x68] sm:$0xff]  ;;  %v1859_v7 = vld [vmem:[#allocation2 + $0x50] sm:$0xff] }
  0x39   : > { %v1861_v8 = vld [vmem:[#allocation2 + $0x78] sm:$0xff]  ;;  %v1865_v9 = vld [vmem:[#allocation2 + $0x60] sm:$0xff]  ;;  %v1868_v10 = vld [vmem:[#allocation2 + $0x88] sm:$0xff] }
  0x3a   : > { %v1871_v11 = vld [vmem:[#allocation2 + $0x70] sm:$0xff]  ;;  %v1873_v12 = vld [vmem:[#allocation2 + $0x98] sm:$0xff]  ;;  %v1877_v13 = vld [vmem:[#allocation2 + $0x80] sm:$0xff] }
  0x3b   : > { %v1823_v58 = vld [vmem:[#allocation2 + $0x8] sm:$0xff]  ;;  %v1883_v15 = vld [vmem:[#allocation2 + $0x90] sm:$0xff]  ;;  %v1885_v16 = vld [vmem:[#allocation2 + $0xb8] sm:$0xff] }
  0x3c   : > { %478 = vmatprep.subr.bf16.mxu0 %v1823_v58  ;;  %v1832_v62 = vld [vmem:[#allocation2 + $0x10] sm:$0xff]  ;;  %v1880_v14 = vld [vmem:[#allocation2 + $0xa8] sm:$0xff]  ;;  %v1889_v17 = vld [vmem:[#allocation2 + $0xa0] sm:$0xff] }
  0x3d   : > { %v1830_v61 = vld [vmem:[#allocation2 + $0x18] sm:$0xff]  ;;  %479 = vmatpush1.bf16.msra.mxu0 %v1825_v59  ;;  %v1840_v1 = vld [vmem:[#allocation2 + $0x20] sm:$0xff]  ;;  %v1892_v18 = vld [vmem:[#allocation2 + $0xc8] sm:$0xff] }
  0x3e   : > { %519 = vmatprep.subr.bf16.mxu1 %v1830_v61  ;;  %480 = vmatprep.subr.bf16.mxu0 %v1827_v60  ;;  %v1895_v19 = vld [vmem:[#allocation2 + $0xb0] sm:$0xff]  ;;  %v1897_v20 = vld [vmem:[#allocation2 + $0xd8] sm:$0xff]  ;;  %v1901_v21 = vld [vmem:[#allocation2 + $0xc0] sm:$0xff] }
  0x3f   : > { %520 = vmatpush1.bf16.msra.mxu1 %v1832_v62  ;;  %v1904_v22 = vld [vmem:[#allocation2 + $0xe8] sm:$0xff]  ;;  %v1907_v23 = vld [vmem:[#allocation2 + $0xd0] sm:$0xff]  ;;  %v1909_v24 = vld [vmem:[#allocation2 + $0xf8] sm:$0xff] }
  0x40   : > { %521 = vmatprep.subr.bf16.mxu1 %v1837_v0  ;;  %v471_v25 = vld [vmem:[#allocation3] sm:$0xff]  ;;  %v1917_v27 = vld [vmem:[#allocation2 + $0xf0] sm:$0xff]  ;;  %v474_v30 = vld [vmem:[%s1645_s16 + $0x8] sm:$0xff] }
  0x41   : > { %481 = vmatpush1.bf16.msra.mxu0 %v1840_v1  ;;  %v1913_v26 = vld [vmem:[#allocation2 + $0xe0] sm:$0xff]  ;;  %v477_v28 = vpack.c.bf16 %v471_v25, %v471_v25  ;;  %v475_v32 = vld [vmem:[%s1645_s16 + $0x10] sm:$0xff]  ;;  %v476_v45 = vld [vmem:[%s1645_s16 + $0x18] sm:$0xff] }
  0x42   : > { %482 = vmatprep.subr.bf16.mxu0 %v1843_v2  ;;  %v473_v29 = vld [vmem:[%s1645_s16] sm:$0xff]  ;;  %v472_v54 = vld [vmem:[#allocation4] sm:$0xff] }
  0x43   : > { %522 = vmatpush1.bf16.msra.mxu1 %v1846_v3 }
  0x44   : > { %523 = vmatprep.subr.bf16.mxu1 %v1849_v4 }
  0x45   : > { %483 = vmatpush1.bf16.msra.mxu0 %v1853_v5 }
  0x46   : > { %484 = vmatprep.subr.bf16.mxu0 %v1856_v6 }
  0x47   : > { %524 = vmatpush1.bf16.msra.mxu1 %v1859_v7 }
  0x48   : > { %525 = vmatprep.subr.bf16.mxu1 %v1861_v8 }
  0x49   : > { %485 = vmatpush1.bf16.msra.mxu0 %v1865_v9 }
  0x4a   : > { %486 = vmatprep.subr.bf16.mxu0 %v1868_v10 }
  0x4b   : > { %526 = vmatpush1.bf16.msra.mxu1 %v1871_v11 }
  0x4c   : > { %527 = vmatprep.subr.bf16.mxu1 %v1873_v12 }
  0x4d   : > { %487 = vmatpush1.bf16.msra.mxu0 %v1877_v13 }
  0x4e   : > { %488 = vmatprep.subr.bf16.mxu0 %v1880_v14 }
  0x4f   : > { %528 = vmatpush1.bf16.msra.mxu1 %v1883_v15 }
  0x50   : > { %529 = vmatprep.subr.bf16.mxu1 %v1885_v16 }
  0x51   : > { %489 = vmatpush1.bf16.msra.mxu0 %v1889_v17 }
  0x52   : > { %490 = vmatprep.subr.bf16.mxu0 %v1892_v18 }
  0x53   : > { %530 = vmatpush1.bf16.msra.mxu1 %v1895_v19 }
  0x54   : > { %531 = vmatprep.subr.bf16.mxu1 %v1897_v20 }
  0x55   : > { %491 = vmatpush1.bf16.msra.mxu0 %v1901_v21 }
  0x56   : > { %492 = vmatprep.subr.bf16.mxu0 %v1904_v22 }
  0x57   : > { %532 = vmatpush1.bf16.msra.mxu1 %v1907_v23 }
  0x58   : > { %533 = vmatprep.subr.bf16.mxu1 %v1909_v24 }
  0x59   : > { %493 = vmatpush1.bf16.msra.mxu0 %v1913_v26 }
  0x5a   : > { %589 = vmatprep.subr.bf16.mxu0 %v1823_v58 }
  0x5b   : > { %534 = vmatpush1.bf16.msra.mxu1 %v1917_v27 }
  0x5c   : > { %630 = vmatprep.subr.bf16.mxu1 %v1830_v61  ;;  %511 = vmatmul.mubr.bf16.vlgmr.msra.gmra.mrb[0].mxu0 %v477_v28 }
  0x5d   : > { %590 = vmatpush1.bf16.msra.mxu0 %v1825_v59  ;;  %621 = vmatprep.mubr.bf16.mxu0 %v1618_v63 }
  0x5e   : > { %552 = vmatmul.mubr.bf16.vlgmr.msra.gmra.mrb[0].mxu1 %v477_v28  ;;  %591 = vmatprep.subr.bf16.mxu0 %v1827_v60 }
  0x5f   : > { %631 = vmatpush1.bf16.msra.mxu1 %v1832_v62  ;;  %662 = vmatprep.mubr.bf16.mxu1 %v1618_v63 }
  0x60   : > { %632 = vmatprep.subr.bf16.mxu1 %v1837_v0 }
  0x61   : > { %592 = vmatpush1.bf16.msra.mxu0 %v1840_v1 }
  0x62   : > { %593 = vmatprep.subr.bf16.mxu0 %v1843_v2 }
  0x63   : > { %633 = vmatpush1.bf16.msra.mxu1 %v1846_v3 }
  0x64   : > { %634 = vmatprep.subr.bf16.mxu1 %v1849_v4 }
  0x65   : > { %594 = vmatpush1.bf16.msra.mxu0 %v1853_v5 }
  0x66   : > { %595 = vmatprep.subr.bf16.mxu0 %v1856_v6 }
  0x67   : > { %635 = vmatpush1.bf16.msra.mxu1 %v1859_v7 }
  0x68   : > { %636 = vmatprep.subr.bf16.mxu1 %v1861_v8 }
  0x69   : > { %596 = vmatpush1.bf16.msra.mxu0 %v1865_v9 }
  0x6a   : > { %597 = vmatprep.subr.bf16.mxu0 %v1868_v10 }
  0x6b   : > { %637 = vmatpush1.bf16.msra.mxu1 %v1871_v11 }
  0x6c   : > { %638 = vmatprep.subr.bf16.mxu1 %v1873_v12 }
  0x6d   : > { %598 = vmatpush1.bf16.msra.mxu0 %v1877_v13 }
  0x6e   : > { %599 = vmatprep.subr.bf16.mxu0 %v1880_v14 }
  0x6f   : > { %639 = vmatpush1.bf16.msra.mxu1 %v1883_v15 }
  0x70   : > { %640 = vmatprep.subr.bf16.mxu1 %v1885_v16 }
  0x71   : > { %600 = vmatpush1.bf16.msra.mxu0 %v1889_v17 }
  0x72   : > { %601 = vmatprep.subr.bf16.mxu0 %v1892_v18 }
  0x73   : > { %641 = vmatpush1.bf16.msra.mxu1 %v1895_v19 }
  0x74   : > { %642 = vmatprep.subr.bf16.mxu1 %v1897_v20 }
  0x75   : > { %602 = vmatpush1.bf16.msra.mxu0 %v1901_v21 }
  0x76   : > { %603 = vmatprep.subr.bf16.mxu0 %v1904_v22 }
  0x77   : > { %643 = vmatpush1.bf16.msra.mxu1 %v1907_v23 }
  0x78   : > { %644 = vmatprep.subr.bf16.mxu1 %v1909_v24 }
  0x79   : > { %604 = vmatpush1.bf16.msra.mxu0 %v1913_v26 }
  0x7a   : > { %701 = vmatprep.subr.bf16.mxu0 %v1823_v58 }
  0x7b   : > { %645 = vmatpush1.bf16.msra.mxu1 %v1917_v27 }
  0x7c   : > { %742 = vmatprep.subr.bf16.mxu1 %v1830_v61 }
 0x12f   : > { %v512_v31 = vpop.f32.mrb[0].mxu0 }
 0x130   : > { %v560_v33 = vadd.f32 %v512_v31, %v473_v29  ;;  %v514_v34 = vpop.f32.mrb[1].mxu0 }
 0x131   : > { %v553_v35 = vpop.f32.mrb[0].mxu1  ;;  %v561_v36 = vadd.f32 %v514_v34, %v474_v30  ;;  %v516_v37 = vpop.f32.mrb[2].mxu0  ;;  %v1456_v34 = vld [vmem:[%s1645_s16 + $0x20] sm:$0xff] }
 0x132   : > { %v555_v38 = vpop.f32.mrb[1].mxu1  ;;  %v564_v39 = vmul.f32 0.5, %v560_v33  ;;  %v517_v40 = vpop.f32.mrb[3].mxu0  ;;  %v562_v41 = vadd.f32 %v553_v35, %v475_v32  ;;  %v1457_v35 = vld [vmem:[%s1645_s16 + $0x28] sm:$0xff] }
 0x133   : > { %v557_v42 = vpop.f32.mrb[2].mxu1  ;;  %v568_v43 = vmul.f32 0.5, %v561_v36  ;;  %v563_v46 = vadd.f32 %v555_v38, %v476_v45 }
 0x134   : > { %v558_v44 = vpop.f32.mrb[3].mxu1  ;;  %1505 = vtanh.f32 %v564_v39 }
 0x135   : > { %1507 = vtanh.f32 %v568_v43  ;;  %v573_v47 = vmul.f32 0.5, %v563_v46 }
 0x136   : > { %1509 = vtanh.f32 %v562_v41  ;;  %v1458_v41 = vld [vmem:[%s1645_s16 + $0x30] sm:$0xff] }
 0x137   : > { %1511 = vtanh.f32 %v573_v47 }
 0x13e   : > { %v1506_v48 = vpop.eup %1505 }
 0x13f   : > { %v1508_v49 = vpop.eup %1507  ;;  %v566_v50 = vmul.f32 0.5, %v1506_v48 }
 0x140   : > { %v1510_v51 = vpop.eup %1509  ;;  %v570_v52 = vmul.f32 0.5, %v1508_v49 }
 0x141   : > { %v567_v53 = vadd.f32 0.5, %v566_v50  ;;  %v1512_v28 = vpop.eup %1511  ;;  %v1459_v50 = vld [vmem:[%s1645_s16 + $0x38] sm:$0xff] }
 0x142   : > { %v571_v55 = vadd.f32 0.5, %v570_v52  ;;  %v575_v29 = vmul.f32 0.5, %v1512_v28 }
 0x143   : > { %v578_v56 = vmul.f32 %v1510_v51, %v567_v53 }
 0x144   : > { %v577_v57 = vmul.f32 %v571_v55, %v472_v54  ;;  %v576_v30 = vadd.f32 0.5, %v575_v29 }
 0x146   : > { %v1961_v25 = vadd.f32 %v578_v56, %v577_v57 }
 0x148   : > { %1513 = vtanh.f32 %v1961_v25 }
 0x152   : > { %v1514_v31 = vpop.eup %1513 }
 0x153   : > { %v581_v32 = vmul.f32 %v1514_v31, %v576_v30 }
 0x155   : > { %582 = vst [vmem:[%s1650_s19] sm:$0xff] %v581_v32  ;;  %v588_v33 = vpack.c.bf16 %v581_v32, %v581_v32 }
 0x157   : > { %622 = vmatmul.mubr.bf16.vlgmr.msra.gmra.mrb[4].mxu0 %v588_v33  ;;  %663 = vmatmul.mubr.bf16.vlgmr.msra.gmra.mrb[4].mxu1 %v588_v33 }
 0x158   : > { %702 = vmatpush1.bf16.msra.mxu0 %v1825_v59  ;;  %743 = vmatpush1.bf16.msra.mxu1 %v1832_v62 }
 0x159   : > { %703 = vmatprep.subr.bf16.mxu0 %v1827_v60  ;;  %744 = vmatprep.subr.bf16.mxu1 %v1837_v0 }
 0x15a   : > { %733 = vmatprep.mubr.bf16.mxu0 %v1618_v63  ;;  %774 = vmatprep.mubr.bf16.mxu1 %v1618_v63 }
 0x15c   : > { %704 = vmatpush1.bf16.msra.mxu0 %v1840_v1  ;;  %745 = vmatpush1.bf16.msra.mxu1 %v1846_v3 }
 0x15d   : > { %705 = vmatprep.subr.bf16.mxu0 %v1843_v2  ;;  %746 = vmatprep.subr.bf16.mxu1 %v1849_v4 }
 0x160   : > { %706 = vmatpush1.bf16.msra.mxu0 %v1853_v5  ;;  %747 = vmatpush1.bf16.msra.mxu1 %v1859_v7 }
 0x161   : > { %707 = vmatprep.subr.bf16.mxu0 %v1856_v6  ;;  %748 = vmatprep.subr.bf16.mxu1 %v1861_v8 }
 0x164   : > { %708 = vmatpush1.bf16.msra.mxu0 %v1865_v9  ;;  %749 = vmatpush1.bf16.msra.mxu1 %v1871_v11 }
 0x165   : > { %709 = vmatprep.subr.bf16.mxu0 %v1868_v10  ;;  %750 = vmatprep.subr.bf16.mxu1 %v1873_v12 }
 0x168   : > { %710 = vmatpush1.bf16.msra.mxu0 %v1877_v13  ;;  %751 = vmatpush1.bf16.msra.mxu1 %v1883_v15 }
 0x169   : > { %711 = vmatprep.subr.bf16.mxu0 %v1880_v14  ;;  %752 = vmatprep.subr.bf16.mxu1 %v1885_v16 }
 0x16c   : > { %712 = vmatpush1.bf16.msra.mxu0 %v1889_v17  ;;  %753 = vmatpush1.bf16.msra.mxu1 %v1895_v19 }
 0x16d   : > { %713 = vmatprep.subr.bf16.mxu0 %v1892_v18  ;;  %754 = vmatprep.subr.bf16.mxu1 %v1897_v20 }
 0x170   : > { %714 = vmatpush1.bf16.msra.mxu0 %v1901_v21  ;;  %755 = vmatpush1.bf16.msra.mxu1 %v1907_v23 }
 0x171   : > { %715 = vmatprep.subr.bf16.mxu0 %v1904_v22  ;;  %756 = vmatprep.subr.bf16.mxu1 %v1909_v24 }
 0x174   : > { %716 = vmatpush1.bf16.msra.mxu0 %v1913_v26  ;;  %757 = vmatpush1.bf16.msra.mxu1 %v1917_v27 }
 0x175   : > { %813 = vmatprep.subr.bf16.mxu0 %v1823_v58  ;;  %854 = vmatprep.subr.bf16.mxu1 %v1830_v61 }
 0x22a   : > { %v623_v36 = vpop.f32.mrb[4].mxu0  ;;  %v664_v37 = vpop.f32.mrb[4].mxu1 }
 0x22b   : > { %v671_v38 = vadd.f32 %v1456_v34, %v623_v36  ;;  %v625_v39 = vpop.f32.mrb[5].mxu0  ;;  %v666_v40 = vpop.f32.mrb[5].mxu1  ;;  %v673_v49 = vadd.f32 %v1458_v41, %v664_v37 }
 0x22c   : > { %v672_v42 = vadd.f32 %v1457_v35, %v625_v39  ;;  %v627_v43 = vpop.f32.mrb[6].mxu0  ;;  %v668_v44 = vpop.f32.mrb[6].mxu1  ;;  %v674_v51 = vadd.f32 %v1459_v50, %v666_v40  ;;  %v1462_v39 = vld [vmem:[%s1645_s16 + $0x48] sm:$0xff] }
 0x22d   : > { %v675_v45 = vmul.f32 0.5, %v671_v38  ;;  %v628_v46 = vpop.f32.mrb[7].mxu0  ;;  %v669_v47 = vpop.f32.mrb[7].mxu1 }
 0x22e   : > { %v679_v48 = vmul.f32 0.5, %v672_v42  ;;  %v684_v52 = vmul.f32 0.5, %v674_v51 }
 0x22f   : > { %1515 = vtanh.f32 %v675_v45  ;;  %v1463_v45 = vld [vmem:[%s1645_s16 + $0x50] sm:$0xff] }
 0x230   : > { %1517 = vtanh.f32 %v679_v48 }
 0x231   : > { %1519 = vtanh.f32 %v673_v49 }
 0x232   : > { %1521 = vtanh.f32 %v684_v52 }
 0x239   : > { %v1516_v53 = vpop.eup %1515 }
 0x23a   : > { %v1518_v54 = vpop.eup %1517  ;;  %v677_v55 = vmul.f32 0.5, %v1516_v53 }
 0x23b   : > { %v681_v56 = vmul.f32 0.5, %v1518_v54  ;;  %v1520_v28 = vpop.eup %1519  ;;  %v1464_v54 = vld [vmem:[%s1645_s16 + $0x58] sm:$0xff] }
 0x23c   : > { %v678_v57 = vadd.f32 0.5, %v677_v55  ;;  %v1522_v33 = vpop.eup %1521 }
 0x23d   : > { %v682_v29 = vadd.f32 0.5, %v681_v56  ;;  %v686_v34 = vmul.f32 0.5, %v1522_v33 }
 0x23e   : > { %v689_v30 = vmul.f32 %v1520_v28, %v678_v57 }
 0x23f   : > { %v688_v31 = vmul.f32 %v682_v29, %v1961_v25  ;;  %v687_v35 = vadd.f32 0.5, %v686_v34  ;;  %v1461_v25 = vld [vmem:[%s1645_s16 + $0x40] sm:$0xff] }
 0x241   : > { %v2004_v32 = vadd.f32 %v689_v30, %v688_v31 }
 0x243   : > { %1523 = vtanh.f32 %v2004_v32 }
 0x24d   : > { %v1524_v36 = vpop.eup %1523 }
 0x24e   : > { %v692_v37 = vmul.f32 %v1524_v36, %v687_v35 }
 0x250   : > { %1460 = vst [vmem:[%s1650_s19 + $0x8] sm:$0xff] %v692_v37  ;;  %v700_v38 = vpack.c.bf16 %v692_v37, %v692_v37 }
 0x252   : > { %734 = vmatmul.mubr.bf16.vlgmr.msra.gmra.mrb[8].mxu0 %v700_v38  ;;  %775 = vmatmul.mubr.bf16.vlgmr.msra.gmra.mrb[8].mxu1 %v700_v38 }
 0x253   : > { %814 = vmatpush1.bf16.msra.mxu0 %v1825_v59  ;;  %855 = vmatpush1.bf16.msra.mxu1 %v1832_v62 }
 0x254   : > { %815 = vmatprep.subr.bf16.mxu0 %v1827_v60  ;;  %856 = vmatprep.subr.bf16.mxu1 %v1837_v0 }
 0x255   : > { %845 = vmatprep.mubr.bf16.mxu0 %v1618_v63  ;;  %886 = vmatprep.mubr.bf16.mxu1 %v1618_v63 }
 0x257   : > { %816 = vmatpush1.bf16.msra.mxu0 %v1840_v1  ;;  %857 = vmatpush1.bf16.msra.mxu1 %v1846_v3 }
 0x258   : > { %817 = vmatprep.subr.bf16.mxu0 %v1843_v2  ;;  %858 = vmatprep.subr.bf16.mxu1 %v1849_v4 }
 0x25b   : > { %818 = vmatpush1.bf16.msra.mxu0 %v1853_v5  ;;  %859 = vmatpush1.bf16.msra.mxu1 %v1859_v7 }
 0x25c   : > { %819 = vmatprep.subr.bf16.mxu0 %v1856_v6  ;;  %860 = vmatprep.subr.bf16.mxu1 %v1861_v8 }
 0x25f   : > { %820 = vmatpush1.bf16.msra.mxu0 %v1865_v9  ;;  %861 = vmatpush1.bf16.msra.mxu1 %v1871_v11 }
 0x260   : > { %821 = vmatprep.subr.bf16.mxu0 %v1868_v10  ;;  %862 = vmatprep.subr.bf16.mxu1 %v1873_v12 }
 0x263   : > { %822 = vmatpush1.bf16.msra.mxu0 %v1877_v13  ;;  %863 = vmatpush1.bf16.msra.mxu1 %v1883_v15 }
 0x264   : > { %823 = vmatprep.subr.bf16.mxu0 %v1880_v14  ;;  %864 = vmatprep.subr.bf16.mxu1 %v1885_v16 }
 0x267   : > { %824 = vmatpush1.bf16.msra.mxu0 %v1889_v17  ;;  %865 = vmatpush1.bf16.msra.mxu1 %v1895_v19 }
 0x268   : > { %825 = vmatprep.subr.bf16.mxu0 %v1892_v18  ;;  %866 = vmatprep.subr.bf16.mxu1 %v1897_v20 }
 0x26b   : > { %826 = vmatpush1.bf16.msra.mxu0 %v1901_v21  ;;  %867 = vmatpush1.bf16.msra.mxu1 %v1907_v23 }
 0x26c   : > { %827 = vmatprep.subr.bf16.mxu0 %v1904_v22  ;;  %868 = vmatprep.subr.bf16.mxu1 %v1909_v24 }
 0x26f   : > { %828 = vmatpush1.bf16.msra.mxu0 %v1913_v26  ;;  %869 = vmatpush1.bf16.msra.mxu1 %v1917_v27 }
 0x270   : > { %925 = vmatprep.subr.bf16.mxu0 %v1823_v58  ;;  %966 = vmatprep.subr.bf16.mxu1 %v1830_v61 }
 0x325   : > { %v735_v40 = vpop.f32.mrb[8].mxu0  ;;  %v776_v41 = vpop.f32.mrb[8].mxu1 }
 0x326   : > { %v783_v42 = vadd.f32 %v1461_v25, %v735_v40  ;;  %v737_v43 = vpop.f32.mrb[9].mxu0  ;;  %v778_v44 = vpop.f32.mrb[9].mxu1  ;;  %v785_v53 = vadd.f32 %v1463_v45, %v776_v41 }
 0x327   : > { %v784_v46 = vadd.f32 %v1462_v39, %v737_v43  ;;  %v739_v47 = vpop.f32.mrb[10].mxu0  ;;  %v780_v48 = vpop.f32.mrb[10].mxu1  ;;  %v786_v55 = vadd.f32 %v1464_v54, %v778_v44  ;;  %v1467_v43 = vld [vmem:[%s1645_s16 + $0x68] sm:$0xff] }
 0x328   : > { %v787_v49 = vmul.f32 0.5, %v783_v42  ;;  %v740_v50 = vpop.f32.mrb[11].mxu0  ;;  %v781_v51 = vpop.f32.mrb[11].mxu1 }
 0x329   : > { %v791_v52 = vmul.f32 0.5, %v784_v46  ;;  %v796_v56 = vmul.f32 0.5, %v786_v55 }
 0x32a   : > { %1525 = vtanh.f32 %v787_v49  ;;  %v1468_v49 = vld [vmem:[%s1645_s16 + $0x70] sm:$0xff] }
 0x32b   : > { %1527 = vtanh.f32 %v791_v52 }
 0x32c   : > { %1529 = vtanh.f32 %v785_v53 }
 0x32d   : > { %1531 = vtanh.f32 %v796_v56 }
 0x334   : > { %v1526_v57 = vpop.eup %1525 }
 0x335   : > { %v1528_v28 = vpop.eup %1527  ;;  %v789_v29 = vmul.f32 0.5, %v1526_v57 }
 0x336   : > { %v793_v30 = vmul.f32 0.5, %v1528_v28  ;;  %v1530_v33 = vpop.eup %1529  ;;  %v1469_v28 = vld [vmem:[%s1645_s16 + $0x78] sm:$0xff] }
 0x337   : > { %v790_v31 = vadd.f32 0.5, %v789_v29  ;;  %v1532_v38 = vpop.eup %1531 }
 0x338   : > { %v794_v34 = vadd.f32 0.5, %v793_v30  ;;  %v798_v25 = vmul.f32 0.5, %v1532_v38 }
 0x339   : > { %v801_v35 = vmul.f32 %v1530_v33, %v790_v31 }
 0x33a   : > { %v800_v36 = vmul.f32 %v794_v34, %v2004_v32  ;;  %v799_v39 = vadd.f32 0.5, %v798_v25  ;;  %v1466_v32 = vld [vmem:[%s1645_s16 + $0x60] sm:$0xff] }
 0x33c   : > { %v2047_v37 = vadd.f32 %v801_v35, %v800_v36 }
 0x33e   : > { %1533 = vtanh.f32 %v2047_v37 }
 0x348   : > { %v1534_v40 = vpop.eup %1533 }
 0x349   : > { %v804_v41 = vmul.f32 %v1534_v40, %v799_v39 }
 0x34b   : > { %1465 = vst [vmem:[%s1650_s19 + $0x10] sm:$0xff] %v804_v41  ;;  %v812_v42 = vpack.c.bf16 %v804_v41, %v804_v41 }
 0x34d   : > { %846 = vmatmul.mubr.bf16.vlgmr.msra.gmra.mrb[12].mxu0 %v812_v42  ;;  %887 = vmatmul.mubr.bf16.vlgmr.msra.gmra.mrb[12].mxu1 %v812_v42 }
 0x34e   : > { %926 = vmatpush1.bf16.msra.mxu0 %v1825_v59  ;;  %967 = vmatpush1.bf16.msra.mxu1 %v1832_v62 }
 0x34f   : > { %927 = vmatprep.subr.bf16.mxu0 %v1827_v60  ;;  %968 = vmatprep.subr.bf16.mxu1 %v1837_v0 }
 0x350   : > { %957 = vmatprep.mubr.bf16.mxu0 %v1618_v63  ;;  %998 = vmatprep.mubr.bf16.mxu1 %v1618_v63 }
 0x352   : > { %928 = vmatpush1.bf16.msra.mxu0 %v1840_v1  ;;  %969 = vmatpush1.bf16.msra.mxu1 %v1846_v3 }
 0x353   : > { %929 = vmatprep.subr.bf16.mxu0 %v1843_v2  ;;  %970 = vmatprep.subr.bf16.mxu1 %v1849_v4 }
 0x356   : > { %930 = vmatpush1.bf16.msra.mxu0 %v1853_v5  ;;  %971 = vmatpush1.bf16.msra.mxu1 %v1859_v7 }
 0x357   : > { %931 = vmatprep.subr.bf16.mxu0 %v1856_v6  ;;  %972 = vmatprep.subr.bf16.mxu1 %v1861_v8 }
 0x35a   : > { %932 = vmatpush1.bf16.msra.mxu0 %v1865_v9  ;;  %973 = vmatpush1.bf16.msra.mxu1 %v1871_v11 }
 0x35b   : > { %933 = vmatprep.subr.bf16.mxu0 %v1868_v10  ;;  %974 = vmatprep.subr.bf16.mxu1 %v1873_v12 }
 0x35e   : > { %934 = vmatpush1.bf16.msra.mxu0 %v1877_v13  ;;  %975 = vmatpush1.bf16.msra.mxu1 %v1883_v15 }
 0x35f   : > { %935 = vmatprep.subr.bf16.mxu0 %v1880_v14  ;;  %976 = vmatprep.subr.bf16.mxu1 %v1885_v16 }
 0x362   : > { %936 = vmatpush1.bf16.msra.mxu0 %v1889_v17  ;;  %977 = vmatpush1.bf16.msra.mxu1 %v1895_v19 }
 0x363   : > { %937 = vmatprep.subr.bf16.mxu0 %v1892_v18  ;;  %978 = vmatprep.subr.bf16.mxu1 %v1897_v20 }
 0x366   : > { %938 = vmatpush1.bf16.msra.mxu0 %v1901_v21  ;;  %979 = vmatpush1.bf16.msra.mxu1 %v1907_v23 }
 0x367   : > { %939 = vmatprep.subr.bf16.mxu0 %v1904_v22  ;;  %980 = vmatprep.subr.bf16.mxu1 %v1909_v24 }
 0x36a   : > { %940 = vmatpush1.bf16.msra.mxu0 %v1913_v26  ;;  %981 = vmatpush1.bf16.msra.mxu1 %v1917_v27 }
 0x36b   : > { %1037 = vmatprep.subr.bf16.mxu0 %v1823_v58  ;;  %1078 = vmatprep.subr.bf16.mxu1 %v1830_v61 }
 0x420   : > { %v847_v44 = vpop.f32.mrb[12].mxu0  ;;  %v888_v45 = vpop.f32.mrb[12].mxu1 }
 0x421   : > { %v895_v46 = vadd.f32 %v1466_v32, %v847_v44  ;;  %v849_v47 = vpop.f32.mrb[13].mxu0  ;;  %v890_v48 = vpop.f32.mrb[13].mxu1  ;;  %v897_v57 = vadd.f32 %v1468_v49, %v888_v45 }
 0x422   : > { %v896_v50 = vadd.f32 %v1467_v43, %v849_v47  ;;  %v851_v51 = vpop.f32.mrb[14].mxu0  ;;  %v892_v52 = vpop.f32.mrb[14].mxu1  ;;  %v898_v29 = vadd.f32 %v1469_v28, %v890_v48  ;;  %v1472_v47 = vld [vmem:[%s1645_s16 + $0x88] sm:$0xff] }
 0x423   : > { %v899_v53 = vmul.f32 0.5, %v895_v46  ;;  %v852_v54 = vpop.f32.mrb[15].mxu0  ;;  %v893_v55 = vpop.f32.mrb[15].mxu1 }
 0x424   : > { %v903_v56 = vmul.f32 0.5, %v896_v50  ;;  %v908_v30 = vmul.f32 0.5, %v898_v29 }
 0x425   : > { %1535 = vtanh.f32 %v899_v53  ;;  %v1473_v53 = vld [vmem:[%s1645_s16 + $0x90] sm:$0xff] }
 0x426   : > { %1537 = vtanh.f32 %v903_v56 }
 0x427   : > { %1539 = vtanh.f32 %v897_v57 }
 0x428   : > { %1541 = vtanh.f32 %v908_v30 }
 0x42f   : > { %v1536_v31 = vpop.eup %1535 }
 0x430   : > { %v1538_v33 = vpop.eup %1537  ;;  %v901_v34 = vmul.f32 0.5, %v1536_v31 }
 0x431   : > { %v905_v35 = vmul.f32 0.5, %v1538_v33  ;;  %v1540_v38 = vpop.eup %1539  ;;  %v1474_v33 = vld [vmem:[%s1645_s16 + $0x98] sm:$0xff] }
 0x432   : > { %v902_v36 = vadd.f32 0.5, %v901_v34  ;;  %v1542_v42 = vpop.eup %1541 }
 0x433   : > { %v906_v25 = vadd.f32 0.5, %v905_v35  ;;  %v910_v32 = vmul.f32 0.5, %v1542_v42 }
 0x434   : > { %v913_v39 = vmul.f32 %v1540_v38, %v902_v36 }
 0x435   : > { %v912_v40 = vmul.f32 %v906_v25, %v2047_v37  ;;  %v911_v43 = vadd.f32 0.5, %v910_v32  ;;  %v1471_v37 = vld [vmem:[%s1645_s16 + $0x80] sm:$0xff] }
 0x437   : > { %v2090_v41 = vadd.f32 %v913_v39, %v912_v40 }
 0x439   : > { %1543 = vtanh.f32 %v2090_v41 }
 0x443   : > { %v1544_v44 = vpop.eup %1543 }
 0x444   : > { %v916_v45 = vmul.f32 %v1544_v44, %v911_v43 }
 0x446   : > { %1470 = vst [vmem:[%s1650_s19 + $0x18] sm:$0xff] %v916_v45  ;;  %v924_v46 = vpack.c.bf16 %v916_v45, %v916_v45 }
 0x448   : > { %958 = vmatmul.mubr.bf16.vlgmr.msra.gmra.mrb[16].mxu0 %v924_v46  ;;  %999 = vmatmul.mubr.bf16.vlgmr.msra.gmra.mrb[16].mxu1 %v924_v46 }
 0x449   : > { %1038 = vmatpush1.bf16.msra.mxu0 %v1825_v59  ;;  %1079 = vmatpush1.bf16.msra.mxu1 %v1832_v62 }
 0x44a   : > { %1039 = vmatprep.subr.bf16.mxu0 %v1827_v60  ;;  %1080 = vmatprep.subr.bf16.mxu1 %v1837_v0 }
 0x44b   : > { %1069 = vmatprep.mubr.bf16.mxu0 %v1618_v63  ;;  %1110 = vmatprep.mubr.bf16.mxu1 %v1618_v63 }
 0x44d   : > { %1040 = vmatpush1.bf16.msra.mxu0 %v1840_v1  ;;  %1081 = vmatpush1.bf16.msra.mxu1 %v1846_v3 }
 0x44e   : > { %1041 = vmatprep.subr.bf16.mxu0 %v1843_v2  ;;  %1082 = vmatprep.subr.bf16.mxu1 %v1849_v4 }
 0x451   : > { %1042 = vmatpush1.bf16.msra.mxu0 %v1853_v5  ;;  %1083 = vmatpush1.bf16.msra.mxu1 %v1859_v7 }
 0x452   : > { %1043 = vmatprep.subr.bf16.mxu0 %v1856_v6  ;;  %1084 = vmatprep.subr.bf16.mxu1 %v1861_v8 }
 0x455   : > { %1044 = vmatpush1.bf16.msra.mxu0 %v1865_v9  ;;  %1085 = vmatpush1.bf16.msra.mxu1 %v1871_v11 }
 0x456   : > { %1045 = vmatprep.subr.bf16.mxu0 %v1868_v10  ;;  %1086 = vmatprep.subr.bf16.mxu1 %v1873_v12 }
 0x459   : > { %1046 = vmatpush1.bf16.msra.mxu0 %v1877_v13  ;;  %1087 = vmatpush1.bf16.msra.mxu1 %v1883_v15 }
 0x45a   : > { %1047 = vmatprep.subr.bf16.mxu0 %v1880_v14  ;;  %1088 = vmatprep.subr.bf16.mxu1 %v1885_v16 }
 0x45d   : > { %1048 = vmatpush1.bf16.msra.mxu0 %v1889_v17  ;;  %1089 = vmatpush1.bf16.msra.mxu1 %v1895_v19 }
 0x45e   : > { %1049 = vmatprep.subr.bf16.mxu0 %v1892_v18  ;;  %1090 = vmatprep.subr.bf16.mxu1 %v1897_v20 }
 0x461   : > { %1050 = vmatpush1.bf16.msra.mxu0 %v1901_v21  ;;  %1091 = vmatpush1.bf16.msra.mxu1 %v1907_v23 }
 0x462   : > { %1051 = vmatprep.subr.bf16.mxu0 %v1904_v22  ;;  %1092 = vmatprep.subr.bf16.mxu1 %v1909_v24 }
 0x465   : > { %1052 = vmatpush1.bf16.msra.mxu0 %v1913_v26  ;;  %1093 = vmatpush1.bf16.msra.mxu1 %v1917_v27 }
 0x466   : > { %1149 = vmatprep.subr.bf16.mxu0 %v1823_v58  ;;  %1190 = vmatprep.subr.bf16.mxu1 %v1830_v61 }
 0x51b   : > { %v959_v48 = vpop.f32.mrb[16].mxu0  ;;  %v1000_v49 = vpop.f32.mrb[16].mxu1 }
 0x51c   : > { %v1007_v50 = vadd.f32 %v1471_v37, %v959_v48  ;;  %v961_v51 = vpop.f32.mrb[17].mxu0  ;;  %v1002_v52 = vpop.f32.mrb[17].mxu1  ;;  %v1009_v31 = vadd.f32 %v1473_v53, %v1000_v49 }
 0x51d   : > { %v1008_v54 = vadd.f32 %v1472_v47, %v961_v51  ;;  %v963_v55 = vpop.f32.mrb[18].mxu0  ;;  %v1004_v56 = vpop.f32.mrb[18].mxu1  ;;  %v1010_v34 = vadd.f32 %v1474_v33, %v1002_v52  ;;  %v1586_v33 = vld [vmem:[#allocation2 + $0x10] sm:$0xff] }
 0x51e   : > { %v1011_v57 = vmul.f32 0.5, %v1007_v50  ;;  %v964_v28 = vpop.f32.mrb[19].mxu0  ;;  %v1005_v29 = vpop.f32.mrb[19].mxu1 }
 0x51f   : > { %v1015_v30 = vmul.f32 0.5, %v1008_v54  ;;  %v1020_v35 = vmul.f32 0.5, %v1010_v34  ;;  %v1587_v34 = vld [vmem:[#allocation2 + $0x28] sm:$0xff] }
 0x520   : > { %1545 = vtanh.f32 %v1011_v57 }
 0x521   : > { %1547 = vtanh.f32 %v1015_v30 }
 0x522   : > { %1549 = vtanh.f32 %v1009_v31  ;;  %v1585_v31 = vld [vmem:[#allocation2] sm:$0xff] }
 0x523   : > { %1551 = vtanh.f32 %v1020_v35  ;;  %v1588_v35 = vld [vmem:[#allocation2 + $0x38] sm:$0xff] }
 0x52a   : > { %v1546_v36 = vpop.eup %1545 }
 0x52b   : > { %v1548_v38 = vpop.eup %1547  ;;  %v1013_v25 = vmul.f32 0.5, %v1546_v36  ;;  %v1589_v36 = vld [vmem:[#allocation2 + $0x20] sm:$0xff] }
 0x52c   : > { %v1017_v39 = vmul.f32 0.5, %v1548_v38  ;;  %v1550_v42 = vpop.eup %1549  ;;  %v1590_v38 = vld [vmem:[#allocation2 + $0x30] sm:$0xff] }
 0x52d   : > { %v1014_v40 = vadd.f32 0.5, %v1013_v25  ;;  %v1552_v46 = vpop.eup %1551  ;;  %v1591_v25 = vld [vmem:[#allocation2 + $0x48] sm:$0xff] }
 0x52e   : > { %v1018_v32 = vadd.f32 0.5, %v1017_v39  ;;  %v1022_v37 = vmul.f32 0.5, %v1552_v46  ;;  %v1592_v39 = vld [vmem:[#allocation2 + $0x58] sm:$0xff] }
 0x52f   : > { %v1025_v43 = vmul.f32 %v1550_v42, %v1014_v40  ;;  %v1593_v40 = vld [vmem:[#allocation2 + $0x40] sm:$0xff]  ;;  %v1594_v42 = vld [vmem:[#allocation2 + $0x50] sm:$0xff]  ;;  %v1600_v46 = vld [vmem:[#allocation2 + $0x98] sm:$0xff] }
 0x530   : > { %v1024_v44 = vmul.f32 %v1018_v32, %v2090_v41  ;;  %v1023_v47 = vadd.f32 0.5, %v1022_v37  ;;  %v1595_v32 = vld [vmem:[#allocation2 + $0x68] sm:$0xff]  ;;  %v1601_v37 = vld [vmem:[#allocation2 + $0x80] sm:$0xff] }
 0x532   : > { %v2133_v45 = vadd.f32 %v1025_v43, %v1024_v44  ;;  %v1596_v43 = vld [vmem:[#allocation2 + $0x78] sm:$0xff]  ;;  %v1597_v44 = vld [vmem:[#allocation2 + $0x60] sm:$0xff] }
 0x534   : > { %1553 = vtanh.f32 %v2133_v45 }
 0x53e   : > { %v1554_v48 = vpop.eup %1553 }
 0x53f   : > { %v1028_v49 = vmul.f32 %v1554_v48, %v1023_v47  ;;  %v1602_v47 = vld [vmem:[#allocation2 + $0x90] sm:$0xff]  ;;  %v1603_v48 = vld [vmem:[#allocation2 + $0xa8] sm:$0xff] }
 0x541   : > { %1475 = vst [vmem:[%s1650_s19 + $0x20] sm:$0xff] %v1028_v49  ;;  %v1036_v50 = vpack.c.bf16 %v1028_v49, %v1028_v49  ;;  %v1604_v49 = vld [vmem:[#allocation2 + $0xb8] sm:$0xff] }
 0x543   : > { %1070 = vmatmul.mubr.bf16.vlgmr.msra.gmra.mrb[20].mxu0 %v1036_v50  ;;  %1111 = vmatmul.mubr.bf16.vlgmr.msra.gmra.mrb[20].mxu1 %v1036_v50  ;;  %v1605_v50 = vld [vmem:[#allocation2 + $0xa0] sm:$0xff] }
 0x544   : > { %1150 = vmatpush1.bf16.msra.mxu0 %v1825_v59  ;;  %1191 = vmatpush1.bf16.msra.mxu1 %v1832_v62  ;;  %v1476_v59 = vld [vmem:[%s1645_s16 + $0xa0] sm:$0xff] }
 0x545   : > { %1151 = vmatprep.subr.bf16.mxu0 %v1827_v60  ;;  %1192 = vmatprep.subr.bf16.mxu1 %v1837_v0  ;;  %v1477_v60 = vld [vmem:[%s1645_s16 + $0xa8] sm:$0xff] }
 0x546   : > { %1181 = vmatprep.mubr.bf16.mxu0 %v1618_v63  ;;  %1222 = vmatprep.mubr.bf16.mxu1 %v1618_v63 }
 0x548   : > { %1152 = vmatpush1.bf16.msra.mxu0 %v1840_v1  ;;  %1193 = vmatpush1.bf16.msra.mxu1 %v1846_v3 }
 0x549   : > { %1153 = vmatprep.subr.bf16.mxu0 %v1843_v2  ;;  %1194 = vmatprep.subr.bf16.mxu1 %v1849_v4  ;;  %v1478_v4 = vld [vmem:[%s1645_s16 + $0xb0] sm:$0xff] }
 0x54c   : > { %1154 = vmatpush1.bf16.msra.mxu0 %v1853_v5  ;;  %1195 = vmatpush1.bf16.msra.mxu1 %v1859_v7 }
 0x54d   : > { %1155 = vmatprep.subr.bf16.mxu0 %v1856_v6  ;;  %1196 = vmatprep.subr.bf16.mxu1 %v1861_v8 }
 0x550   : > { %1156 = vmatpush1.bf16.msra.mxu0 %v1865_v9  ;;  %1197 = vmatpush1.bf16.msra.mxu1 %v1871_v11 }
 0x551   : > { %1157 = vmatprep.subr.bf16.mxu0 %v1868_v10  ;;  %1198 = vmatprep.subr.bf16.mxu1 %v1873_v12 }
 0x554   : > { %1158 = vmatpush1.bf16.msra.mxu0 %v1877_v13  ;;  %1199 = vmatpush1.bf16.msra.mxu1 %v1883_v15 }
 0x555   : > { %1159 = vmatprep.subr.bf16.mxu0 %v1880_v14  ;;  %1200 = vmatprep.subr.bf16.mxu1 %v1885_v16 }
 0x558   : > { %1160 = vmatpush1.bf16.msra.mxu0 %v1889_v17  ;;  %1201 = vmatpush1.bf16.msra.mxu1 %v1895_v19 }
 0x559   : > { %1161 = vmatprep.subr.bf16.mxu0 %v1892_v18  ;;  %1202 = vmatprep.subr.bf16.mxu1 %v1897_v20 }
 0x55c   : > { %1162 = vmatpush1.bf16.msra.mxu0 %v1901_v21  ;;  %1203 = vmatpush1.bf16.msra.mxu1 %v1907_v23 }
 0x55d   : > { %1163 = vmatprep.subr.bf16.mxu0 %v1904_v22  ;;  %1204 = vmatprep.subr.bf16.mxu1 %v1909_v24 }
 0x560   : > { %1164 = vmatpush1.bf16.msra.mxu0 %v1913_v26  ;;  %1205 = vmatpush1.bf16.msra.mxu1 %v1917_v27 }
 0x561   : > { %1261 = vmatprep.subr.bf16.mxu0 %v1823_v58  ;;  %1302 = vmatprep.subr.bf16.mxu1 %v1830_v61  ;;  %v1479_v61 = vld [vmem:[%s1645_s16 + $0xb8] sm:$0xff] }
 0x616   : > { %v1071_v62 = vpop.f32.mrb[20].mxu0  ;;  %v1112_v0 = vpop.f32.mrb[20].mxu1 }
 0x617   : > { %v1119_v1 = vadd.f32 %v1476_v59, %v1071_v62  ;;  %v1073_v2 = vpop.f32.mrb[21].mxu0  ;;  %v1114_v3 = vpop.f32.mrb[21].mxu1  ;;  %v1121_v58 = vadd.f32 %v1478_v4, %v1112_v0  ;;  %v1606_v59 = vld [vmem:[#allocation2 + $0xc8] sm:$0xff] }
 0x618   : > { %v1120_v5 = vadd.f32 %v1477_v60, %v1073_v2  ;;  %v1075_v6 = vpop.f32.mrb[22].mxu0  ;;  %v1116_v7 = vpop.f32.mrb[22].mxu1  ;;  %v1122_v12 = vadd.f32 %v1479_v61, %v1114_v3  ;;  %v1481_v60 = vld [vmem:[%s1645_s16 + $0xc0] sm:$0xff]  ;;  %v1482_v62 = vld [vmem:[%s1645_s16 + $0xc8] sm:$0xff]  ;;  %v1483_v3 = vld [vmem:[%s1645_s16 + $0xd0] sm:$0xff] }
 0x619   : > { %v1123_v8 = vmul.f32 0.5, %v1119_v1  ;;  %v1076_v9 = vpop.f32.mrb[23].mxu0  ;;  %v1117_v10 = vpop.f32.mrb[23].mxu1 }
 0x61a   : > { %v1127_v11 = vmul.f32 0.5, %v1120_v5  ;;  %v1132_v13 = vmul.f32 0.5, %v1122_v12 }
 0x61b   : > { %1555 = vtanh.f32 %v1123_v8 }
 0x61c   : > { %1557 = vtanh.f32 %v1127_v11 }
 0x61d   : > { %1559 = vtanh.f32 %v1121_v58 }
 0x61e   : > { %1561 = vtanh.f32 %v1132_v13 }
 0x625   : > { %v1556_v14 = vpop.eup %1555 }
 0x626   : > { %v1558_v15 = vpop.eup %1557  ;;  %v1125_v16 = vmul.f32 0.5, %v1556_v14 }
 0x627   : > { %v1129_v17 = vmul.f32 0.5, %v1558_v15  ;;  %v1560_v41 = vpop.eup %1559 }
 0x628   : > { %v1126_v18 = vadd.f32 0.5, %v1125_v16  ;;  %v1562_v55 = vpop.eup %1561 }
 0x629   : > { %v1130_v51 = vadd.f32 0.5, %v1129_v17  ;;  %v1134_v56 = vmul.f32 0.5, %v1562_v55  ;;  %v1486_v55 = vld [vmem:[%s1645_s16 + $0xe0] sm:$0xff] }
 0x62a   : > { %v1137_v52 = vmul.f32 %v1560_v41, %v1126_v18 }
 0x62b   : > { %v1136_v53 = vmul.f32 %v1130_v51, %v2133_v45  ;;  %v1135_v57 = vadd.f32 0.5, %v1134_v56  ;;  %v1598_v45 = vld [vmem:[#allocation2 + $0x70] sm:$0xff]  ;;  %v1487_v56 = vld [vmem:[%s1645_s16 + $0xe8] sm:$0xff] }
 0x62d   : > { %v2176_v54 = vadd.f32 %v1137_v52, %v1136_v53 }
 0x62f   : > { %1563 = vtanh.f32 %v2176_v54 }
 0x639   : > { %v1564_v28 = vpop.eup %1563 }
 0x63a   : > { %v1140_v29 = vmul.f32 %v1564_v28, %v1135_v57 }
 0x63c   : > { %1480 = vst [vmem:[%s1650_s19 + $0x28] sm:$0xff] %v1140_v29  ;;  %v1148_v30 = vpack.c.bf16 %v1140_v29, %v1140_v29 }
 0x63e   : > { %1182 = vmatmul.mubr.bf16.vlgmr.msra.gmra.mrb[24].mxu0 %v1148_v30  ;;  %1223 = vmatmul.mubr.bf16.vlgmr.msra.gmra.mrb[24].mxu1 %v1148_v30 }
 0x63f   : > { %1262 = vmatpush1.bf16.msra.mxu0 %v1585_v31  ;;  %1303 = vmatpush1.bf16.msra.mxu1 %v1586_v33  ;;  %v1488_v31 = vld [vmem:[%s1645_s16 + $0xf0] sm:$0xff] }
 0x640   : > { %1263 = vmatprep.subr.bf16.mxu0 %v1587_v34  ;;  %1304 = vmatprep.subr.bf16.mxu1 %v1588_v35 }
 0x641   : > { %1293 = vmatprep.mubr.bf16.mxu0 %v1618_v63  ;;  %1334 = vmatprep.mubr.bf16.mxu1 %v1618_v63  ;;  %v1599_v63 = vld [vmem:[#allocation2 + $0x88] sm:$0xff] }
 0x643   : > { %1264 = vmatpush1.bf16.msra.mxu0 %v1589_v36  ;;  %1305 = vmatpush1.bf16.msra.mxu1 %v1590_v38 }
 0x644   : > { %1265 = vmatprep.subr.bf16.mxu0 %v1591_v25  ;;  %1306 = vmatprep.subr.bf16.mxu1 %v1592_v39 }
 0x647   : > { %1266 = vmatpush1.bf16.msra.mxu0 %v1593_v40  ;;  %1307 = vmatpush1.bf16.msra.mxu1 %v1594_v42  ;;  %v1489_v42 = vld [vmem:[%s1645_s16 + $0xf8] sm:$0xff] }
 0x648   : > { %1267 = vmatprep.subr.bf16.mxu0 %v1595_v32  ;;  %1308 = vmatprep.subr.bf16.mxu1 %v1596_v43 }
 0x64b   : > { %1268 = vmatpush1.bf16.msra.mxu0 %v1597_v44  ;;  %1309 = vmatpush1.bf16.msra.mxu1 %v1598_v45 }
 0x64c   : > { %1269 = vmatprep.subr.bf16.mxu0 %v1599_v63  ;;  %1310 = vmatprep.subr.bf16.mxu1 %v1600_v46 }
 0x64f   : > { %1270 = vmatpush1.bf16.msra.mxu0 %v1601_v37  ;;  %1311 = vmatpush1.bf16.msra.mxu1 %v1602_v47 }
 0x650   : > { %1271 = vmatprep.subr.bf16.mxu0 %v1603_v48  ;;  %1312 = vmatprep.subr.bf16.mxu1 %v1604_v49 }
 0x653   : > { %1272 = vmatpush1.bf16.msra.mxu0 %v1605_v50  ;;  %1313 = vmatpush1.bf16.msra.mxu1 %v1895_v19 }
 0x654   : > { %1273 = vmatprep.subr.bf16.mxu0 %v1606_v59  ;;  %1314 = vmatprep.subr.bf16.mxu1 %v1897_v20 }
 0x657   : > { %1274 = vmatpush1.bf16.msra.mxu0 %v1901_v21  ;;  %1315 = vmatpush1.bf16.msra.mxu1 %v1907_v23 }
 0x658   : > { %1275 = vmatprep.subr.bf16.mxu0 %v1904_v22  ;;  %1316 = vmatprep.subr.bf16.mxu1 %v1909_v24 }
 0x65b   : > { %1276 = vmatpush1.bf16.msra.mxu0 %v1913_v26  ;;  %1317 = vmatpush1.bf16.msra.mxu1 %v1917_v27  ;;  %v1484_v27 = vld [vmem:[%s1645_s16 + $0xd8] sm:$0xff] }
 0x711   : > { %v1183_v19 = vpop.f32.mrb[24].mxu0  ;;  %v1224_v0 = vpop.f32.mrb[24].mxu1 }
 0x712   : > { %v1231_v1 = vadd.f32 %v1481_v60, %v1183_v19  ;;  %v1185_v2 = vpop.f32.mrb[25].mxu0  ;;  %v1226_v20 = vpop.f32.mrb[25].mxu1  ;;  %v1233_v26 = vadd.f32 %v1483_v3, %v1224_v0 }
 0x713   : > { %v1232_v21 = vadd.f32 %v1482_v62, %v1185_v2  ;;  %v1187_v4 = vpop.f32.mrb[26].mxu0  ;;  %v1228_v23 = vpop.f32.mrb[26].mxu1  ;;  %v1234_v7 = vadd.f32 %v1484_v27, %v1226_v20 }
 0x714   : > { %v1235_v5 = vmul.f32 0.5, %v1231_v1  ;;  %v1188_v22 = vpop.f32.mrb[27].mxu0  ;;  %v1229_v6 = vpop.f32.mrb[27].mxu1 }
 0x715   : > { %v1239_v24 = vmul.f32 0.5, %v1232_v21  ;;  %v1244_v8 = vmul.f32 0.5, %v1234_v7 }
 0x716   : > { %1565 = vtanh.f32 %v1235_v5 }
 0x717   : > { %1567 = vtanh.f32 %v1239_v24 }
 0x718   : > { %1569 = vtanh.f32 %v1233_v26 }
 0x719   : > { %1571 = vtanh.f32 %v1244_v8 }
 0x720   : > { %v1566_v9 = vpop.eup %1565 }
 0x721   : > { %v1568_v10 = vpop.eup %1567  ;;  %v1237_v11 = vmul.f32 0.5, %v1566_v9 }
 0x722   : > { %v1241_v58 = vmul.f32 0.5, %v1568_v10  ;;  %v1570_v12 = vpop.eup %1569 }
 0x723   : > { %v1238_v61 = vadd.f32 0.5, %v1237_v11  ;;  %v1572_v17 = vpop.eup %1571 }
 0x724   : > { %v1242_v13 = vadd.f32 0.5, %v1241_v58  ;;  %v1246_v18 = vmul.f32 0.5, %v1572_v17 }
 0x725   : > { %v1249_v14 = vmul.f32 %v1570_v12, %v1238_v61 }
 0x726   : > { %v1248_v15 = vmul.f32 %v1242_v13, %v2176_v54  ;;  %v1247_v41 = vadd.f32 0.5, %v1246_v18 }
 0x728   : > { %v1250_v16 = vadd.f32 %v1249_v14, %v1248_v15 }
 0x72a   : > { %1573 = vtanh.f32 %v1250_v16 }
 0x734   : > { %v1574_v51 = vpop.eup %1573 }
 0x735   : > { %v1252_v52 = vmul.f32 %v1574_v51, %v1247_v41 }
 0x737   : > { %1485 = vst [vmem:[%s1650_s19 + $0x30] sm:$0xff] %v1252_v52  ;;  %v1260_v53 = vpack.c.bf16 %v1252_v52, %v1252_v52 }
 0x739   : > { %1294 = vmatmul.mubr.bf16.vlgmr.msra.gmra.mrb[28].mxu0 %v1260_v53  ;;  %1335 = vmatmul.mubr.bf16.vlgmr.msra.gmra.mrb[28].mxu1 %v1260_v53 }
 0x80c   : > { %v1295_v57 = vpop.f32.mrb[28].mxu0  ;;  %v1336_v28 = vpop.f32.mrb[28].mxu1 }
 0x80d   : > { %v1343_v29 = vadd.f32 %v1486_v55, %v1295_v57  ;;  %v1297_v30 = vpop.f32.mrb[29].mxu0  ;;  %v1338_v54 = vpop.f32.mrb[29].mxu1  ;;  %v1345_v40 = vadd.f32 %v1488_v31, %v1336_v28 }
 0x80e   : > { %v1344_v33 = vadd.f32 %v1487_v56, %v1297_v30  ;;  %v1299_v34 = vpop.f32.mrb[30].mxu0  ;;  %v1340_v35 = vpop.f32.mrb[30].mxu1  ;;  %v1346_v32 = vadd.f32 %v1489_v42, %v1338_v54 }
 0x80f   : > { %v1347_v36 = vmul.f32 0.5, %v1343_v29  ;;  %v1300_v38 = vpop.f32.mrb[31].mxu0  ;;  %v1341_v25 = vpop.f32.mrb[31].mxu1 }
 0x810   : > { %v1351_v39 = vmul.f32 0.5, %v1344_v33  ;;  %v1356_v43 = vmul.f32 0.5, %v1346_v32 }
 0x811   : > { %1575 = vtanh.f32 %v1347_v36 }
 0x812   : > { %1577 = vtanh.f32 %v1351_v39 }
 0x813   : > { %1579 = vtanh.f32 %v1345_v40 }
 0x814   : > { %1581 = vtanh.f32 %v1356_v43 }
 0x81b   : > { %v1576_v44 = vpop.eup %1575 }
 0x81c   : > { %v1578_v45 = vpop.eup %1577  ;;  %v1349_v63 = vmul.f32 0.5, %v1576_v44 }
 0x81d   : > { %v1353_v46 = vmul.f32 0.5, %v1578_v45  ;;  %v1580_v47 = vpop.eup %1579 }
 0x81e   : > { %v1350_v37 = vadd.f32 0.5, %v1349_v63  ;;  %v1582_v60 = vpop.eup %1581 }
 0x81f   : > { %v1354_v48 = vadd.f32 0.5, %v1353_v46  ;;  %v1358_v62 = vmul.f32 0.5, %v1582_v60 }
 0x820   : > { %v1361_v49 = vmul.f32 %v1580_v47, %v1350_v37 }
 0x821   : > { %v1360_v50 = vmul.f32 %v1354_v48, %v1250_v16  ;;  %v1359_v19 = vadd.f32 0.5, %v1358_v62 }
 0x823   : > { %v1362_v59 = vadd.f32 %v1361_v49, %v1360_v50 }
 0x825   : > { %1583 = vtanh.f32 %v1362_v59  ;;  %1368 = vst [vmem:[#allocation4] sm:$0xff] %v1362_v59 }
 0x82f   : > { %v1584_v0 = vpop.eup %1583 }
 0x830   : > { %v1364_v1 = vmul.f32 %v1584_v0, %v1359_v19 }
 0x832   : > { %1490 = vst [vmem:[%s1650_s19 + $0x38] sm:$0xff] %v1364_v1  ;;  %1367 = vst [vmem:[#allocation3] sm:$0xff] %v1364_v1 }
 0x833 PF: > { %s12_s9 = sadd.s32 1, %s1615_s9  }
 0x834   : > { %p9_p5 = scmp.ge.s32.totalorder %s12_s9, 6  }
 0x836   :  { %11 = sbr.rel (!%p9_p5) target bundleno = 1 (0x1), region = 123 }
 0x83d   :  { %1391 = vsyncmov [#allocation5] }
 0x840   :  { %s1392_s16 = vpop.sfrf %1391 }
 0x841   :  { %p1493_p6 = scmp.ne.s32.totalorder %s1392_s16, 0 }
 0x843   :  { %1396 = shalt.err (%p1493_p6)  }

// kernel: elstm_forward.3
= control target key start
LH: loop header
LB: loop body
LE: loop exit
PB: predicated region body
PF: predicated region fallthrough
CT: control target
= control target key end

     0   :  { %7 = vsyncpa [#allocation7], 0  ;;  %s2407_s0 = inlined_call_operand.vmem [shape: f32[32,8,512], index: 0, kind: input, shape index: {}]   ;;  %s2408_s1 = inlined_call_operand.vmem [shape: bf16[128,512], index: 1, kind: input, shape index: {}]   ;;  %s2409_s2 = inlined_call_operand.hbm [shape: f32[32,8,128], index: 2, kind: output, shape index: {}]  }
   0x1   :  { %9 = vsyncpa [#allocation7 + $0x1], 0  ;;  %s1746_s9 = smov 0   ;;  %s1748_s10 = smov 0  }
   0x2   :  { %s1750_s11 = smov 0   ;;  %s1752_s12 = smov 0  }
   0x3 LB: > { %s1767_s13 = sadd.s32 4294967295, %s1724_s12   ;;  %s1463_s14 = sadd.s32 4294967294, %s1724_s12   ;;  %s1724_s12 = sphi %s1752_s12, %s2415_s12   ;;  %s1720_s11 = sphi %s1750_s11, %s2414_s11   ;;  %s1716_s10 = sphi %s1748_s10, %s2413_s10   ;;  %s1712_s9 = sphi %s1746_s9, %s2412_s9  }
   0x4   : > { %s1771_s15 = sadd.s32 1, %s1724_s12   ;;  %s48_s16 = sadd.s32 1, %s1720_s11 }
   0x5   : > { %s45_s17 = ssub.s32 %s1724_s12, %s1771_s15  ;;  %p58_p0 = scmp.ne.s32.totalorder %s1720_s11, %s1716_s10 }
   0x6   : > { %p46_p1 = scmp.eq.s32.totalorder %s45_s17, 0  ;;  %p59_p2 = scmp.eq.s32.totalorder %s1767_s13, 3 }
   0x7   : > { %p64_p3 = scmp.ne.s32.totalorder %s1716_s10, %s1712_s9  ;;  %p65_p4 = scmp.eq.s32.totalorder %s1463_s14, 3 }
   0x8   : > { %s1782_s18 = scalar_select %p46_p1, %s1720_s11, %s48_s16  }
   0x9   : > { %p1784_p5 = por %p59_p2, %p58_p0  ;;  %p1788_p6 = por %p65_p4, %p64_p3 }
   0xa   : > { %p1466_p7 = scmp.ge.s32.totalorder %s1724_s12, 1  ;;  %p93_p8 = scmp.lt.s32.totalorder %s1724_s12, 5 }
   0xc   : > { %p94_p9 = pnand %p1466_p7, %p93_p8 }
   0xd   : > { %s111_s21 = sand.u32 (!%p94_p9), 1, %s1716_s10   ;;  %s1468_s22 = sshll.u32 (!%p94_p9), %s1767_s13, 3 }
   0xe   : > { %97 = sbr.rel (%p94_p9) target bundleno = 2121 (0x849), region = 24  ;;  %s1467_s23 = sshll.u32 (!%p94_p9), %s111_s21, 6 }
   0xf   : > { %p115_p10 = scmp.lt.s32.totalorder (!%p94_p9), %s1468_s22, 31  ;;  %s1803_s28 = scalar_lea.vmem (!%p94_p9), [#allocation6], %s1467_s23 }
  0x10   : > { %p1471_p11 = scmp.ne.s32.totalorder (!%p94_p9), %s1767_s13, 0 }
  0x15   : > { %s2417_s22 = smov (!%p115_p10, %s1468_s22), 31  ;;  %126 = sbr.rel (%p1471_p11) target bundleno = 62 (0x3e), region = 28 }
  0x16   : > { %s1513_s24 = sshll.u32 %s2417_s22, 5  ;;  %v146_v0 = vld [vmem:[%s2408_s1] sm:$0xf] (!%p1471_p11)  ;;  %v148_v1 = vld [vmem:[%s2408_s1 + $0x10] sm:$0xf] (!%p1471_p11)  ;;  %v1726_v3 = vmov (!%p1471_p11), 0.0  }
  0x17   : > { %s1801_s27 = scalar_lea.vmem %s2407_s0, %s1513_s24  ;;  %v160_v2 = vld [vmem:[%s2408_s1 + $0x1c] sm:$0xff] (!%p1471_p11)   ;;  %127 = vst [vmem:[#allocation3] sm:$0xff] (!%p1471_p11), %v1726_v3  ;;  %128 = vst [vmem:[#allocation4] sm:$0xff] (!%p1471_p11), %v1726_v3  ;;  %v150_v4 = vld [vmem:[%s2408_s1 + $0x4] sm:$0xf] (!%p1471_p11) }
  0x18   : > { %147 = vst [vmem:[#allocation2] sm:$0xf] (!%p1471_p11), %v146_v0  ;;  %149 = vst [vmem:[#allocation2 + $0x4] sm:$0xf] (!%p1471_p11), %v148_v1  ;;  %v152_v5 = vld [vmem:[%s2408_s1 + $0x14] sm:$0xf] (!%p1471_p11) }
  0x19   : > { %v154_v6 = vld [vmem:[%s2408_s1 + $0x8] sm:$0xf] (!%p1471_p11)  ;;  %161 = vst [vmem:[#allocation2 + $0x1c] sm:$0xff] (!%p1471_p11), %v160_v2   ;;  %151 = vst [vmem:[#allocation2 + $0x8] sm:$0xf] (!%p1471_p11), %v150_v4  ;;  %v176_v15 = vld [vmem:[%s2408_s1 + $0x3c] sm:$0xff] (!%p1471_p11)  }
  0x1a   : > { %153 = vst [vmem:[#allocation2 + $0xc] sm:$0xf] (!%p1471_p11), %v152_v5  ;;  %155 = vst [vmem:[#allocation2 + $0x10] sm:$0xf] (!%p1471_p11), %v154_v6  ;;  %v156_v7 = vld [vmem:[%s2408_s1 + $0x18] sm:$0xf] (!%p1471_p11) }
  0x1b   : > { %v158_v8 = vld [vmem:[%s2408_s1 + $0xc] sm:$0xf] (!%p1471_p11)  ;;  %v164_v9 = vld [vmem:[%s2408_s1 + $0x30] sm:$0xf] (!%p1471_p11)  ;;  %157 = vst [vmem:[#allocation2 + $0x14] sm:$0xf] (!%p1471_p11), %v156_v7 }
  0x1c   : > { %159 = vst [vmem:[#allocation2 + $0x18] sm:$0xf] %v158_v8  ;;  %165 = vst [vmem:[#allocation2 + $0x24] sm:$0xf] %v164_v9  ;;  %v166_v10 = vld [vmem:[%s2408_s1 + $0x24] sm:$0xf] }
  0x1d   : > { %v168_v11 = vld [vmem:[%s2408_s1 + $0x34] sm:$0xf]  ;;  %v170_v12 = vld [vmem:[%s2408_s1 + $0x28] sm:$0xf]  ;;  %167 = vst [vmem:[#allocation2 + $0x28] sm:$0xf] %v166_v10 }
  0x1e   : > { %169 = vst [vmem:[#allocation2 + $0x2c] sm:$0xf] %v168_v11  ;;  %171 = vst [vmem:[#allocation2 + $0x30] sm:$0xf] %v170_v12  ;;  %v172_v13 = vld [vmem:[%s2408_s1 + $0x38] sm:$0xf] }
  0x1f   : > { %v174_v14 = vld [vmem:[%s2408_s1 + $0x2c] sm:$0xf]  ;;  %173 = vst [vmem:[#allocation2 + $0x34] sm:$0xf] %v172_v13  ;;  %177 = vst [vmem:[#allocation2 + $0x3c] sm:$0xff] %v176_v15   ;;  %v192_v22 = vld [vmem:[%s2408_s1 + $0x5c] sm:$0xff]  }
  0x20   : > { %175 = vst [vmem:[#allocation2 + $0x38] sm:$0xf] %v174_v14  ;;  %v180_v16 = vld [vmem:[%s2408_s1 + $0x50] sm:$0xf]  ;;  %v182_v17 = vld [vmem:[%s2408_s1 + $0x44] sm:$0xf] }
  0x21   : > { %v184_v18 = vld [vmem:[%s2408_s1 + $0x54] sm:$0xf]  ;;  %181 = vst [vmem:[#allocation2 + $0x44] sm:$0xf] %v180_v16  ;;  %183 = vst [vmem:[#allocation2 + $0x48] sm:$0xf] %v182_v17 }
  0x22   : > { %185 = vst [vmem:[#allocation2 + $0x4c] sm:$0xf] %v184_v18  ;;  %v186_v19 = vld [vmem:[%s2408_s1 + $0x48] sm:$0xf]  ;;  %v188_v20 = vld [vmem:[%s2408_s1 + $0x58] sm:$0xf] }
  0x23   : > { %v190_v21 = vld [vmem:[%s2408_s1 + $0x4c] sm:$0xf]  ;;  %187 = vst [vmem:[#allocation2 + $0x50] sm:$0xf] %v186_v19  ;;  %189 = vst [vmem:[#allocation2 + $0x54] sm:$0xf] %v188_v20 }
  0x24   : > { %191 = vst [vmem:[#allocation2 + $0x58] sm:$0xf] %v190_v21  ;;  %v196_v23 = vld [vmem:[%s2408_s1 + $0x70] sm:$0xf]  ;;  %v198_v24 = vld [vmem:[%s2408_s1 + $0x64] sm:$0xf] }
  0x25   : > { %193 = vst [vmem:[#allocation2 + $0x5c] sm:$0xff] %v192_v22   ;;  %197 = vst [vmem:[#allocation2 + $0x64] sm:$0xf] %v196_v23  ;;  %v200_v25 = vld [vmem:[%s2408_s1 + $0x74] sm:$0xf]  ;;  %v208_v29 = vld [vmem:[%s2408_s1 + $0x7c] sm:$0xff]  }
  0x26   : > { %199 = vst [vmem:[#allocation2 + $0x68] sm:$0xf] %v198_v24  ;;  %v202_v26 = vld [vmem:[%s2408_s1 + $0x68] sm:$0xf]  ;;  %v204_v27 = vld [vmem:[%s2408_s1 + $0x78] sm:$0xf] }
  0x27   : > { %201 = vst [vmem:[#allocation2 + $0x6c] sm:$0xf] %v200_v25  ;;  %203 = vst [vmem:[#allocation2 + $0x70] sm:$0xf] %v202_v26  ;;  %v206_v28 = vld [vmem:[%s2408_s1 + $0x6c] sm:$0xf] }
  0x28   : > { %205 = vst [vmem:[#allocation2 + $0x74] sm:$0xf] %v204_v27  ;;  %v212_v30 = vld [vmem:[%s2408_s1 + $0x90] sm:$0xf]  ;;  %207 = vst [vmem:[#allocation2 + $0x78] sm:$0xf] %v206_v28 }
  0x29   : > { %209 = vst [vmem:[#allocation2 + $0x7c] sm:$0xff] %v208_v29   ;;  %213 = vst [vmem:[#allocation2 + $0x84] sm:$0xf] %v212_v30  ;;  %v214_v31 = vld [vmem:[%s2408_s1 + $0x84] sm:$0xf]  ;;  %v224_v36 = vld [vmem:[%s2408_s1 + $0x9c] sm:$0xff]  }
  0x2a   : > { %v216_v32 = vld [vmem:[%s2408_s1 + $0x94] sm:$0xf]  ;;  %v218_v33 = vld [vmem:[%s2408_s1 + $0x88] sm:$0xf]  ;;  %215 = vst [vmem:[#allocation2 + $0x88] sm:$0xf] %v214_v31 }
  0x2b   : > { %217 = vst [vmem:[#allocation2 + $0x8c] sm:$0xf] %v216_v32  ;;  %219 = vst [vmem:[#allocation2 + $0x90] sm:$0xf] %v218_v33  ;;  %v220_v34 = vld [vmem:[%s2408_s1 + $0x98] sm:$0xf] }
  0x2c   : > { %v222_v35 = vld [vmem:[%s2408_s1 + $0x8c] sm:$0xf]  ;;  %221 = vst [vmem:[#allocation2 + $0x94] sm:$0xf] %v220_v34  ;;  %225 = vst [vmem:[#allocation2 + $0x9c] sm:$0xff] %v224_v36   ;;  %v240_v43 = vld [vmem:[%s2408_s1 + $0xbc] sm:$0xff]  }
  0x2d   : > { %223 = vst [vmem:[#allocation2 + $0x98] sm:$0xf] %v222_v35  ;;  %v228_v37 = vld [vmem:[%s2408_s1 + $0xb0] sm:$0xf]  ;;  %v230_v38 = vld [vmem:[%s2408_s1 + $0xa4] sm:$0xf] }
  0x2e   : > { %v232_v39 = vld [vmem:[%s2408_s1 + $0xb4] sm:$0xf]  ;;  %229 = vst [vmem:[#allocation2 + $0xa4] sm:$0xf] %v228_v37  ;;  %231 = vst [vmem:[#allocation2 + $0xa8] sm:$0xf] %v230_v38 }
  0x2f   : > { %233 = vst [vmem:[#allocation2 + $0xac] sm:$0xf] %v232_v39  ;;  %v234_v40 = vld [vmem:[%s2408_s1 + $0xa8] sm:$0xf]  ;;  %v236_v41 = vld [vmem:[%s2408_s1 + $0xb8] sm:$0xf] }
  0x30   : > { %v238_v42 = vld [vmem:[%s2408_s1 + $0xac] sm:$0xf]  ;;  %235 = vst [vmem:[#allocation2 + $0xb0] sm:$0xf] %v234_v40  ;;  %237 = vst [vmem:[#allocation2 + $0xb4] sm:$0xf] %v236_v41 }
  0x31   : > { %239 = vst [vmem:[#allocation2 + $0xb8] sm:$0xf] %v238_v42  ;;  %v244_v44 = vld [vmem:[%s2408_s1 + $0xd0] sm:$0xf]  ;;  %v246_v45 = vld [vmem:[%s2408_s1 + $0xc4] sm:$0xf] }
  0x32   : > { %241 = vst [vmem:[#allocation2 + $0xbc] sm:$0xff] %v240_v43   ;;  %245 = vst [vmem:[#allocation2 + $0xc4] sm:$0xf] %v244_v44  ;;  %v248_v46 = vld [vmem:[%s2408_s1 + $0xd4] sm:$0xf]  ;;  %v256_v50 = vld [vmem:[%s2408_s1 + $0xdc] sm:$0xff]  }
  0x33   : > { %247 = vst [vmem:[#allocation2 + $0xc8] sm:$0xf] %v246_v45  ;;  %v250_v47 = vld [vmem:[%s2408_s1 + $0xc8] sm:$0xf]  ;;  %v252_v48 = vld [vmem:[%s2408_s1 + $0xd8] sm:$0xf] }
  0x34   : > { %249 = vst [vmem:[#allocation2 + $0xcc] sm:$0xf] %v248_v46  ;;  %251 = vst [vmem:[#allocation2 + $0xd0] sm:$0xf] %v250_v47  ;;  %v254_v49 = vld [vmem:[%s2408_s1 + $0xcc] sm:$0xf] }
  0x35   : > { %253 = vst [vmem:[#allocation2 + $0xd4] sm:$0xf] %v252_v48  ;;  %v260_v51 = vld [vmem:[%s2408_s1 + $0xf0] sm:$0xf]  ;;  %255 = vst [vmem:[#allocation2 + $0xd8] sm:$0xf] %v254_v49 }
  0x36   : > { %257 = vst [vmem:[#allocation2 + $0xdc] sm:$0xff] %v256_v50   ;;  %261 = vst [vmem:[#allocation2 + $0xe4] sm:$0xf] %v260_v51  ;;  %v262_v52 = vld [vmem:[%s2408_s1 + $0xe4] sm:$0xf] }
  0x37   : > { %v264_v53 = vld [vmem:[%s2408_s1 + $0xf4] sm:$0xf]  ;;  %v266_v54 = vld [vmem:[%s2408_s1 + $0xe8] sm:$0xf]  ;;  %263 = vst [vmem:[#allocation2 + $0xe8] sm:$0xf] %v262_v52 }
  0x38   : > { %265 = vst [vmem:[#allocation2 + $0xec] sm:$0xf] %v264_v53  ;;  %267 = vst [vmem:[#allocation2 + $0xf0] sm:$0xf] %v266_v54  ;;  %v268_v55 = vld [vmem:[%s2408_s1 + $0xf8] sm:$0xf] }
  0x39   : > { %v270_v56 = vld [vmem:[%s2408_s1 + $0xec] sm:$0xf]  ;;  %v272_v57 = vld [vmem:[%s2408_s1 + $0xfc] sm:$0xf]  ;;  %269 = vst [vmem:[#allocation2 + $0xf4] sm:$0xf] %v268_v55 }
  0x3a   : > { %271 = vst [vmem:[#allocation2 + $0xf8] sm:$0xf] %v270_v56  ;;  %273 = vst [vmem:[#allocation2 + $0xfc] sm:$0xf] %v272_v57 }
  0x3b   : > { %432 = vsyncadd [#allocation5], 4096 }
  0x3c   : > { %1704 = dma.done.wait [#allocation5], 4096 }
  0x3d   : > { %1705 = vsyncadd [#allocation5], 4294963200 }
  0x3e PF: > { %v1981_v60 = vld [vmem:[#allocation2 + $0x28] sm:$0xff]  ;;  %v1727_v63 = vmov 0   ;;  %v1991_v0 = vld [vmem:[#allocation2 + $0x38] sm:$0xff]  ;;  %v2000_v3 = vld [vmem:[#allocation2 + $0x30] sm:$0xff]  ;;  %s1381_s3 = sshll.u32 %s1803_s28, 4  ;;  %s2366_s7 = scalar_lea.sflag [#allocation7], %s111_s21  ;;  %s2361_s3 = int_to_ptr.vmem [resolvable:$true] %s1381_s3 }
  0x3f   : > { %508 = vmatprep.mubr.bf16.mxu0 %v1727_v63  ;;  %v1997_v2 = vld [vmem:[#allocation2 + $0x48] sm:$0xff]  ;;  %549 = vmatprep.mubr.bf16.mxu1 %v1727_v63  ;;  %v2003_v4 = vld [vmem:[#allocation2 + $0x58] sm:$0xff]  ;;  %v2007_v5 = vld [vmem:[#allocation2 + $0x40] sm:$0xff]  ;;  %s1728_s8 = smov [#allocation6]  }
  0x40   : > { %v2010_v6 = vld [vmem:[#allocation2 + $0x68] sm:$0xff]  ;;  %v2013_v7 = vld [vmem:[#allocation2 + $0x50] sm:$0xff]  ;;  %v2015_v8 = vld [vmem:[#allocation2 + $0x78] sm:$0xff]  ;;  %s1664_s14 = sshll.u32 %s1728_s8, 4  ;;  %s1665_s14 = int_to_ptr.vmem [resolvable:$false] %s1664_s14 }
  0x41   : > { %v1979_v59 = vld [vmem:[#allocation2] sm:$0xff]  ;;  %v2022_v10 = vld [vmem:[#allocation2 + $0x88] sm:$0xff]  ;;  %v2025_v11 = vld [vmem:[#allocation2 + $0x70] sm:$0xff]  ;;  %s1666_s16 = scalar_lea.vmem %s1665_s14, 2048  ;;  %p1667_p1 = scmp.lt.s32.totalorder %s2361_s3, %s1665_s14 }
  0x42   : > { %v2019_v9 = vld [vmem:[#allocation2 + $0x60] sm:$0xff]  ;;  %v2027_v12 = vld [vmem:[#allocation2 + $0x98] sm:$0xff]  ;;  %v2034_v14 = vld [vmem:[#allocation2 + $0xa8] sm:$0xff] }
  0x43   : > { %v1977_v58 = vld [vmem:[#allocation2 + $0x8] sm:$0xff]  ;;  %v2031_v13 = vld [vmem:[#allocation2 + $0x80] sm:$0xff]  ;;  %v2037_v15 = vld [vmem:[#allocation2 + $0x90] sm:$0xff] }
  0x44   : > { %476 = vmatprep.subr.bf16.mxu0 %v1977_v58  ;;  %v1986_v62 = vld [vmem:[#allocation2 + $0x10] sm:$0xff]  ;;  %v2039_v16 = vld [vmem:[#allocation2 + $0xb8] sm:$0xff]  ;;  %v2043_v17 = vld [vmem:[#allocation2 + $0xa0] sm:$0xff] }
  0x45   : > { %v1984_v61 = vld [vmem:[#allocation2 + $0x18] sm:$0xff]  ;;  %477 = vmatpush1.bf16.msra.mxu0 %v1979_v59  ;;  %v1994_v1 = vld [vmem:[#allocation2 + $0x20] sm:$0xff]  ;;  %v2046_v18 = vld [vmem:[#allocation2 + $0xc8] sm:$0xff] }
  0x46   : > { %517 = vmatprep.subr.bf16.mxu1 %v1984_v61  ;;  %478 = vmatprep.subr.bf16.mxu0 %v1981_v60  ;;  %v2049_v19 = vld [vmem:[#allocation2 + $0xb0] sm:$0xff]  ;;  %v2051_v20 = vld [vmem:[#allocation2 + $0xd8] sm:$0xff]  ;;  %v2055_v21 = vld [vmem:[#allocation2 + $0xc0] sm:$0xff] }
  0x47   : > { %518 = vmatpush1.bf16.msra.mxu1 %v1986_v62  ;;  %v2058_v22 = vld [vmem:[#allocation2 + $0xe8] sm:$0xff]  ;;  %v2061_v23 = vld [vmem:[#allocation2 + $0xd0] sm:$0xff]  ;;  %v2063_v24 = vld [vmem:[#allocation2 + $0xf8] sm:$0xff] }
  0x48   : > { %519 = vmatprep.subr.bf16.mxu1 %v1991_v0  ;;  %v469_v25 = vld [vmem:[#allocation3] sm:$0xff]  ;;  %v2071_v27 = vld [vmem:[#allocation2 + $0xf0] sm:$0xff]  ;;  %v472_v30 = vld [vmem:[%s1801_s27 + $0x8] sm:$0xff] }
  0x49   : > { %479 = vmatpush1.bf16.msra.mxu0 %v1994_v1  ;;  %v2067_v26 = vld [vmem:[#allocation2 + $0xe0] sm:$0xff]  ;;  %v475_v28 = vpack.c.bf16 %v469_v25, %v469_v25  ;;  %v473_v32 = vld [vmem:[%s1801_s27 + $0x10] sm:$0xff]  ;;  %v474_v45 = vld [vmem:[%s1801_s27 + $0x18] sm:$0xff] }
  0x4a   : > { %480 = vmatprep.subr.bf16.mxu0 %v1997_v2  ;;  %v471_v29 = vld [vmem:[%s1801_s27] sm:$0xff]  ;;  %v470_v54 = vld [vmem:[#allocation4] sm:$0xff] }
  0x4b   : > { %520 = vmatpush1.bf16.msra.mxu1 %v2000_v3 }
  0x4c   : > { %521 = vmatprep.subr.bf16.mxu1 %v2003_v4 }
  0x4d   : > { %481 = vmatpush1.bf16.msra.mxu0 %v2007_v5 }
  0x4e   : > { %482 = vmatprep.subr.bf16.mxu0 %v2010_v6 }
  0x4f   : > { %522 = vmatpush1.bf16.msra.mxu1 %v2013_v7 }
  0x50   : > { %523 = vmatprep.subr.bf16.mxu1 %v2015_v8 }
  0x51   : > { %483 = vmatpush1.bf16.msra.mxu0 %v2019_v9 }
  0x52   : > { %484 = vmatprep.subr.bf16.mxu0 %v2022_v10 }
  0x53   : > { %524 = vmatpush1.bf16.msra.mxu1 %v2025_v11 }
  0x54   : > { %525 = vmatprep.subr.bf16.mxu1 %v2027_v12 }
  0x55   : > { %485 = vmatpush1.bf16.msra.mxu0 %v2031_v13 }
  0x56   : > { %486 = vmatprep.subr.bf16.mxu0 %v2034_v14 }
  0x57   : > { %526 = vmatpush1.bf16.msra.mxu1 %v2037_v15 }
  0x58   : > { %527 = vmatprep.subr.bf16.mxu1 %v2039_v16 }
  0x59   : > { %487 = vmatpush1.bf16.msra.mxu0 %v2043_v17 }
  0x5a   : > { %488 = vmatprep.subr.bf16.mxu0 %v2046_v18 }
  0x5b   : > { %528 = vmatpush1.bf16.msra.mxu1 %v2049_v19 }
  0x5c   : > { %529 = vmatprep.subr.bf16.mxu1 %v2051_v20 }
  0x5d   : > { %489 = vmatpush1.bf16.msra.mxu0 %v2055_v21 }
  0x5e   : > { %490 = vmatprep.subr.bf16.mxu0 %v2058_v22 }
  0x5f   : > { %530 = vmatpush1.bf16.msra.mxu1 %v2061_v23 }
  0x60   : > { %531 = vmatprep.subr.bf16.mxu1 %v2063_v24 }
  0x61   : > { %491 = vmatpush1.bf16.msra.mxu0 %v2067_v26 }
  0x62   : > { %587 = vmatprep.subr.bf16.mxu0 %v1977_v58 }
  0x63   : > { %532 = vmatpush1.bf16.msra.mxu1 %v2071_v27 }
  0x64   : > { %628 = vmatprep.subr.bf16.mxu1 %v1984_v61  ;;  %509 = vmatmul.mubr.bf16.vlgmr.msra.gmra.mrb[0].mxu0 %v475_v28 }
  0x65   : > { %588 = vmatpush1.bf16.msra.mxu0 %v1979_v59  ;;  %619 = vmatprep.mubr.bf16.mxu0 %v1727_v63 }
  0x66   : > { %550 = vmatmul.mubr.bf16.vlgmr.msra.gmra.mrb[0].mxu1 %v475_v28  ;;  %589 = vmatprep.subr.bf16.mxu0 %v1981_v60 }
  0x67   : > { %629 = vmatpush1.bf16.msra.mxu1 %v1986_v62  ;;  %660 = vmatprep.mubr.bf16.mxu1 %v1727_v63 }
  0x68   : > { %630 = vmatprep.subr.bf16.mxu1 %v1991_v0 }
  0x69   : > { %590 = vmatpush1.bf16.msra.mxu0 %v1994_v1 }
  0x6a   : > { %591 = vmatprep.subr.bf16.mxu0 %v1997_v2 }
  0x6b   : > { %631 = vmatpush1.bf16.msra.mxu1 %v2000_v3 }
  0x6c   : > { %632 = vmatprep.subr.bf16.mxu1 %v2003_v4 }
  0x6d   : > { %592 = vmatpush1.bf16.msra.mxu0 %v2007_v5 }
  0x6e   : > { %593 = vmatprep.subr.bf16.mxu0 %v2010_v6 }
  0x6f   : > { %633 = vmatpush1.bf16.msra.mxu1 %v2013_v7 }
  0x70   : > { %634 = vmatprep.subr.bf16.mxu1 %v2015_v8 }
  0x71   : > { %594 = vmatpush1.bf16.msra.mxu0 %v2019_v9 }
  0x72   : > { %595 = vmatprep.subr.bf16.mxu0 %v2022_v10 }
  0x73   : > { %635 = vmatpush1.bf16.msra.mxu1 %v2025_v11 }
  0x74   : > { %636 = vmatprep.subr.bf16.mxu1 %v2027_v12 }
  0x75   : > { %596 = vmatpush1.bf16.msra.mxu0 %v2031_v13 }
  0x76   : > { %597 = vmatprep.subr.bf16.mxu0 %v2034_v14 }
  0x77   : > { %637 = vmatpush1.bf16.msra.mxu1 %v2037_v15 }
  0x78   : > { %638 = vmatprep.subr.bf16.mxu1 %v2039_v16 }
  0x79   : > { %598 = vmatpush1.bf16.msra.mxu0 %v2043_v17 }
  0x7a   : > { %599 = vmatprep.subr.bf16.mxu0 %v2046_v18 }
  0x7b   : > { %639 = vmatpush1.bf16.msra.mxu1 %v2049_v19 }
  0x7c   : > { %640 = vmatprep.subr.bf16.mxu1 %v2051_v20 }
  0x7d   : > { %600 = vmatpush1.bf16.msra.mxu0 %v2055_v21 }
  0x7e   : > { %601 = vmatprep.subr.bf16.mxu0 %v2058_v22 }
  0x7f   : > { %641 = vmatpush1.bf16.msra.mxu1 %v2061_v23 }
  0x80   : > { %642 = vmatprep.subr.bf16.mxu1 %v2063_v24 }
  0x81   : > { %602 = vmatpush1.bf16.msra.mxu0 %v2067_v26 }
  0x82   : > { %699 = vmatprep.subr.bf16.mxu0 %v1977_v58 }
  0x83   : > { %643 = vmatpush1.bf16.msra.mxu1 %v2071_v27 }
  0x84   : > { %740 = vmatprep.subr.bf16.mxu1 %v1984_v61 }
 0x137   : > { %v510_v31 = vpop.f32.mrb[0].mxu0 }
 0x138   : > { %v558_v33 = vadd.f32 %v510_v31, %v471_v29  ;;  %v512_v34 = vpop.f32.mrb[1].mxu0 }
 0x139   : > { %v551_v35 = vpop.f32.mrb[0].mxu1  ;;  %v559_v36 = vadd.f32 %v512_v34, %v472_v30  ;;  %v514_v37 = vpop.f32.mrb[2].mxu0  ;;  %v1472_v34 = vld [vmem:[%s1801_s27 + $0x20] sm:$0xff] }
 0x13a   : > { %v553_v38 = vpop.f32.mrb[1].mxu1  ;;  %v562_v39 = vmul.f32 0.5, %v558_v33  ;;  %v515_v40 = vpop.f32.mrb[3].mxu0  ;;  %v560_v41 = vadd.f32 %v551_v35, %v473_v32  ;;  %v1473_v35 = vld [vmem:[%s1801_s27 + $0x28] sm:$0xff] }
 0x13b   : > { %v555_v42 = vpop.f32.mrb[2].mxu1  ;;  %v566_v43 = vmul.f32 0.5, %v559_v36  ;;  %v561_v46 = vadd.f32 %v553_v38, %v474_v45 }
 0x13c   : > { %v556_v44 = vpop.f32.mrb[3].mxu1  ;;  %1558 = vtanh.f32 %v562_v39 }
 0x13d   : > { %1560 = vtanh.f32 %v566_v43  ;;  %v571_v47 = vmul.f32 0.5, %v561_v46 }
 0x13e   : > { %1562 = vtanh.f32 %v560_v41  ;;  %v1474_v41 = vld [vmem:[%s1801_s27 + $0x30] sm:$0xff] }
 0x13f   : > { %1564 = vtanh.f32 %v571_v47 }
 0x146   : > { %v1559_v48 = vpop.eup %1558 }
 0x147   : > { %v1561_v49 = vpop.eup %1560  ;;  %v564_v50 = vmul.f32 0.5, %v1559_v48 }
 0x148   : > { %v1563_v51 = vpop.eup %1562  ;;  %v568_v52 = vmul.f32 0.5, %v1561_v49 }
 0x149   : > { %v565_v53 = vadd.f32 0.5, %v564_v50  ;;  %v1565_v28 = vpop.eup %1564  ;;  %v1475_v50 = vld [vmem:[%s1801_s27 + $0x38] sm:$0xff] }
 0x14a   : > { %v569_v55 = vadd.f32 0.5, %v568_v52  ;;  %v573_v29 = vmul.f32 0.5, %v1565_v28 }
 0x14b   : > { %v576_v56 = vmul.f32 %v1563_v51, %v565_v53 }
 0x14c   : > { %v575_v57 = vmul.f32 %v569_v55, %v470_v54  ;;  %v574_v30 = vadd.f32 0.5, %v573_v29 }
 0x14e   : > { %v2115_v25 = vadd.f32 %v576_v56, %v575_v57 }
 0x150   : > { %1566 = vtanh.f32 %v2115_v25 }
 0x15a   : > { %v1567_v31 = vpop.eup %1566 }
 0x15b   : > { %v579_v32 = vmul.f32 %v1567_v31, %v574_v30 }
 0x15d   : > { %580 = vst [vmem:[%s1803_s28] sm:$0xff] %v579_v32  ;;  %v586_v33 = vpack.c.bf16 %v579_v32, %v579_v32 }
 0x15f   : > { %620 = vmatmul.mubr.bf16.vlgmr.msra.gmra.mrb[4].mxu0 %v586_v33  ;;  %661 = vmatmul.mubr.bf16.vlgmr.msra.gmra.mrb[4].mxu1 %v586_v33 }
 0x160   : > { %700 = vmatpush1.bf16.msra.mxu0 %v1979_v59  ;;  %741 = vmatpush1.bf16.msra.mxu1 %v1986_v62 }
 0x161   : > { %701 = vmatprep.subr.bf16.mxu0 %v1981_v60  ;;  %742 = vmatprep.subr.bf16.mxu1 %v1991_v0 }
 0x162   : > { %731 = vmatprep.mubr.bf16.mxu0 %v1727_v63  ;;  %772 = vmatprep.mubr.bf16.mxu1 %v1727_v63 }
 0x164   : > { %702 = vmatpush1.bf16.msra.mxu0 %v1994_v1  ;;  %743 = vmatpush1.bf16.msra.mxu1 %v2000_v3 }
 0x165   : > { %703 = vmatprep.subr.bf16.mxu0 %v1997_v2  ;;  %744 = vmatprep.subr.bf16.mxu1 %v2003_v4 }
 0x168   : > { %704 = vmatpush1.bf16.msra.mxu0 %v2007_v5  ;;  %745 = vmatpush1.bf16.msra.mxu1 %v2013_v7 }
 0x169   : > { %705 = vmatprep.subr.bf16.mxu0 %v2010_v6  ;;  %746 = vmatprep.subr.bf16.mxu1 %v2015_v8 }
 0x16c   : > { %706 = vmatpush1.bf16.msra.mxu0 %v2019_v9  ;;  %747 = vmatpush1.bf16.msra.mxu1 %v2025_v11 }
 0x16d   : > { %707 = vmatprep.subr.bf16.mxu0 %v2022_v10  ;;  %748 = vmatprep.subr.bf16.mxu1 %v2027_v12 }
 0x170   : > { %708 = vmatpush1.bf16.msra.mxu0 %v2031_v13  ;;  %749 = vmatpush1.bf16.msra.mxu1 %v2037_v15 }
 0x171   : > { %709 = vmatprep.subr.bf16.mxu0 %v2034_v14  ;;  %750 = vmatprep.subr.bf16.mxu1 %v2039_v16 }
 0x174   : > { %710 = vmatpush1.bf16.msra.mxu0 %v2043_v17  ;;  %751 = vmatpush1.bf16.msra.mxu1 %v2049_v19 }
 0x175   : > { %711 = vmatprep.subr.bf16.mxu0 %v2046_v18  ;;  %752 = vmatprep.subr.bf16.mxu1 %v2051_v20 }
 0x178   : > { %712 = vmatpush1.bf16.msra.mxu0 %v2055_v21  ;;  %753 = vmatpush1.bf16.msra.mxu1 %v2061_v23 }
 0x179   : > { %713 = vmatprep.subr.bf16.mxu0 %v2058_v22  ;;  %754 = vmatprep.subr.bf16.mxu1 %v2063_v24 }
 0x17c   : > { %714 = vmatpush1.bf16.msra.mxu0 %v2067_v26  ;;  %755 = vmatpush1.bf16.msra.mxu1 %v2071_v27 }
 0x17d   : > { %811 = vmatprep.subr.bf16.mxu0 %v1977_v58  ;;  %852 = vmatprep.subr.bf16.mxu1 %v1984_v61 }
 0x232   : > { %v621_v36 = vpop.f32.mrb[4].mxu0  ;;  %v662_v37 = vpop.f32.mrb[4].mxu1 }
 0x233   : > { %v669_v38 = vadd.f32 %v1472_v34, %v621_v36  ;;  %v623_v39 = vpop.f32.mrb[5].mxu0  ;;  %v664_v40 = vpop.f32.mrb[5].mxu1  ;;  %v671_v49 = vadd.f32 %v1474_v41, %v662_v37 }
 0x234   : > { %v670_v42 = vadd.f32 %v1473_v35, %v623_v39  ;;  %v625_v43 = vpop.f32.mrb[6].mxu0  ;;  %v666_v44 = vpop.f32.mrb[6].mxu1  ;;  %v672_v51 = vadd.f32 %v1475_v50, %v664_v40  ;;  %v1478_v39 = vld [vmem:[%s1801_s27 + $0x48] sm:$0xff] }
 0x235   : > { %v673_v45 = vmul.f32 0.5, %v669_v38  ;;  %v626_v46 = vpop.f32.mrb[7].mxu0  ;;  %v667_v47 = vpop.f32.mrb[7].mxu1 }
 0x236   : > { %v677_v48 = vmul.f32 0.5, %v670_v42  ;;  %v682_v52 = vmul.f32 0.5, %v672_v51 }
 0x237   : > { %1568 = vtanh.f32 %v673_v45  ;;  %v1479_v45 = vld [vmem:[%s1801_s27 + $0x50] sm:$0xff] }
 0x238   : > { %1570 = vtanh.f32 %v677_v48 }
 0x239   : > { %1572 = vtanh.f32 %v671_v49 }
 0x23a   : > { %1574 = vtanh.f32 %v682_v52 }
 0x241   : > { %v1569_v53 = vpop.eup %1568 }
 0x242   : > { %v1571_v54 = vpop.eup %1570  ;;  %v675_v55 = vmul.f32 0.5, %v1569_v53 }
 0x243   : > { %v679_v56 = vmul.f32 0.5, %v1571_v54  ;;  %v1573_v28 = vpop.eup %1572  ;;  %v1480_v54 = vld [vmem:[%s1801_s27 + $0x58] sm:$0xff] }
 0x244   : > { %v676_v57 = vadd.f32 0.5, %v675_v55  ;;  %v1575_v33 = vpop.eup %1574 }
 0x245   : > { %v680_v29 = vadd.f32 0.5, %v679_v56  ;;  %v684_v34 = vmul.f32 0.5, %v1575_v33 }
 0x246   : > { %v687_v30 = vmul.f32 %v1573_v28, %v676_v57 }
 0x247   : > { %v686_v31 = vmul.f32 %v680_v29, %v2115_v25  ;;  %v685_v35 = vadd.f32 0.5, %v684_v34  ;;  %v1477_v25 = vld [vmem:[%s1801_s27 + $0x40] sm:$0xff] }
 0x249   : > { %v2158_v32 = vadd.f32 %v687_v30, %v686_v31 }
 0x24b   : > { %1576 = vtanh.f32 %v2158_v32 }
 0x255   : > { %v1577_v36 = vpop.eup %1576 }
 0x256   : > { %v690_v37 = vmul.f32 %v1577_v36, %v685_v35 }
 0x258   : > { %1476 = vst [vmem:[%s1803_s28 + $0x8] sm:$0xff] %v690_v37  ;;  %v698_v38 = vpack.c.bf16 %v690_v37, %v690_v37 }
 0x25a   : > { %732 = vmatmul.mubr.bf16.vlgmr.msra.gmra.mrb[8].mxu0 %v698_v38  ;;  %773 = vmatmul.mubr.bf16.vlgmr.msra.gmra.mrb[8].mxu1 %v698_v38 }
 0x25b   : > { %812 = vmatpush1.bf16.msra.mxu0 %v1979_v59  ;;  %853 = vmatpush1.bf16.msra.mxu1 %v1986_v62 }
 0x25c   : > { %813 = vmatprep.subr.bf16.mxu0 %v1981_v60  ;;  %854 = vmatprep.subr.bf16.mxu1 %v1991_v0 }
 0x25d   : > { %843 = vmatprep.mubr.bf16.mxu0 %v1727_v63  ;;  %884 = vmatprep.mubr.bf16.mxu1 %v1727_v63 }
 0x25f   : > { %814 = vmatpush1.bf16.msra.mxu0 %v1994_v1  ;;  %855 = vmatpush1.bf16.msra.mxu1 %v2000_v3 }
 0x260   : > { %815 = vmatprep.subr.bf16.mxu0 %v1997_v2  ;;  %856 = vmatprep.subr.bf16.mxu1 %v2003_v4 }
 0x263   : > { %816 = vmatpush1.bf16.msra.mxu0 %v2007_v5  ;;  %857 = vmatpush1.bf16.msra.mxu1 %v2013_v7 }
 0x264   : > { %817 = vmatprep.subr.bf16.mxu0 %v2010_v6  ;;  %858 = vmatprep.subr.bf16.mxu1 %v2015_v8 }
 0x267   : > { %818 = vmatpush1.bf16.msra.mxu0 %v2019_v9  ;;  %859 = vmatpush1.bf16.msra.mxu1 %v2025_v11 }
 0x268   : > { %819 = vmatprep.subr.bf16.mxu0 %v2022_v10  ;;  %860 = vmatprep.subr.bf16.mxu1 %v2027_v12 }
 0x26b   : > { %820 = vmatpush1.bf16.msra.mxu0 %v2031_v13  ;;  %861 = vmatpush1.bf16.msra.mxu1 %v2037_v15 }
 0x26c   : > { %821 = vmatprep.subr.bf16.mxu0 %v2034_v14  ;;  %862 = vmatprep.subr.bf16.mxu1 %v2039_v16 }
 0x26f   : > { %822 = vmatpush1.bf16.msra.mxu0 %v2043_v17  ;;  %863 = vmatpush1.bf16.msra.mxu1 %v2049_v19 }
 0x270   : > { %823 = vmatprep.subr.bf16.mxu0 %v2046_v18  ;;  %864 = vmatprep.subr.bf16.mxu1 %v2051_v20 }
 0x273   : > { %824 = vmatpush1.bf16.msra.mxu0 %v2055_v21  ;;  %865 = vmatpush1.bf16.msra.mxu1 %v2061_v23 }
 0x274   : > { %825 = vmatprep.subr.bf16.mxu0 %v2058_v22  ;;  %866 = vmatprep.subr.bf16.mxu1 %v2063_v24 }
 0x277   : > { %826 = vmatpush1.bf16.msra.mxu0 %v2067_v26  ;;  %867 = vmatpush1.bf16.msra.mxu1 %v2071_v27 }
 0x278   : > { %923 = vmatprep.subr.bf16.mxu0 %v1977_v58  ;;  %964 = vmatprep.subr.bf16.mxu1 %v1984_v61 }
 0x32d   : > { %v733_v40 = vpop.f32.mrb[8].mxu0  ;;  %v774_v41 = vpop.f32.mrb[8].mxu1 }
 0x32e   : > { %v781_v42 = vadd.f32 %v1477_v25, %v733_v40  ;;  %v735_v43 = vpop.f32.mrb[9].mxu0  ;;  %v776_v44 = vpop.f32.mrb[9].mxu1  ;;  %v783_v53 = vadd.f32 %v1479_v45, %v774_v41 }
 0x32f   : > { %v782_v46 = vadd.f32 %v1478_v39, %v735_v43  ;;  %v737_v47 = vpop.f32.mrb[10].mxu0  ;;  %v778_v48 = vpop.f32.mrb[10].mxu1  ;;  %v784_v55 = vadd.f32 %v1480_v54, %v776_v44  ;;  %v1483_v43 = vld [vmem:[%s1801_s27 + $0x68] sm:$0xff] }
 0x330   : > { %v785_v49 = vmul.f32 0.5, %v781_v42  ;;  %v738_v50 = vpop.f32.mrb[11].mxu0  ;;  %v779_v51 = vpop.f32.mrb[11].mxu1 }
 0x331   : > { %v789_v52 = vmul.f32 0.5, %v782_v46  ;;  %v794_v56 = vmul.f32 0.5, %v784_v55 }
 0x332   : > { %1578 = vtanh.f32 %v785_v49  ;;  %v1484_v49 = vld [vmem:[%s1801_s27 + $0x70] sm:$0xff] }
 0x333   : > { %1580 = vtanh.f32 %v789_v52 }
 0x334   : > { %1582 = vtanh.f32 %v783_v53 }
 0x335   : > { %1584 = vtanh.f32 %v794_v56 }
 0x33c   : > { %v1579_v57 = vpop.eup %1578 }
 0x33d   : > { %v1581_v28 = vpop.eup %1580  ;;  %v787_v29 = vmul.f32 0.5, %v1579_v57 }
 0x33e   : > { %v791_v30 = vmul.f32 0.5, %v1581_v28  ;;  %v1583_v33 = vpop.eup %1582  ;;  %v1485_v28 = vld [vmem:[%s1801_s27 + $0x78] sm:$0xff] }
 0x33f   : > { %v788_v31 = vadd.f32 0.5, %v787_v29  ;;  %v1585_v38 = vpop.eup %1584 }
 0x340   : > { %v792_v34 = vadd.f32 0.5, %v791_v30  ;;  %v796_v25 = vmul.f32 0.5, %v1585_v38 }
 0x341   : > { %v799_v35 = vmul.f32 %v1583_v33, %v788_v31 }
 0x342   : > { %v798_v36 = vmul.f32 %v792_v34, %v2158_v32  ;;  %v797_v39 = vadd.f32 0.5, %v796_v25  ;;  %v1482_v32 = vld [vmem:[%s1801_s27 + $0x60] sm:$0xff] }
 0x344   : > { %v2201_v37 = vadd.f32 %v799_v35, %v798_v36 }
 0x346   : > { %1586 = vtanh.f32 %v2201_v37 }
 0x350   : > { %v1587_v40 = vpop.eup %1586 }
 0x351   : > { %v802_v41 = vmul.f32 %v1587_v40, %v797_v39 }
 0x353   : > { %1481 = vst [vmem:[%s1803_s28 + $0x10] sm:$0xff] %v802_v41  ;;  %v810_v42 = vpack.c.bf16 %v802_v41, %v802_v41 }
 0x355   : > { %844 = vmatmul.mubr.bf16.vlgmr.msra.gmra.mrb[12].mxu0 %v810_v42  ;;  %885 = vmatmul.mubr.bf16.vlgmr.msra.gmra.mrb[12].mxu1 %v810_v42 }
 0x356   : > { %924 = vmatpush1.bf16.msra.mxu0 %v1979_v59  ;;  %965 = vmatpush1.bf16.msra.mxu1 %v1986_v62 }
 0x357   : > { %925 = vmatprep.subr.bf16.mxu0 %v1981_v60  ;;  %966 = vmatprep.subr.bf16.mxu1 %v1991_v0 }
 0x358   : > { %955 = vmatprep.mubr.bf16.mxu0 %v1727_v63  ;;  %996 = vmatprep.mubr.bf16.mxu1 %v1727_v63 }
 0x35a   : > { %926 = vmatpush1.bf16.msra.mxu0 %v1994_v1  ;;  %967 = vmatpush1.bf16.msra.mxu1 %v2000_v3 }
 0x35b   : > { %927 = vmatprep.subr.bf16.mxu0 %v1997_v2  ;;  %968 = vmatprep.subr.bf16.mxu1 %v2003_v4 }
 0x35e   : > { %928 = vmatpush1.bf16.msra.mxu0 %v2007_v5  ;;  %969 = vmatpush1.bf16.msra.mxu1 %v2013_v7 }
 0x35f   : > { %929 = vmatprep.subr.bf16.mxu0 %v2010_v6  ;;  %970 = vmatprep.subr.bf16.mxu1 %v2015_v8 }
 0x362   : > { %930 = vmatpush1.bf16.msra.mxu0 %v2019_v9  ;;  %971 = vmatpush1.bf16.msra.mxu1 %v2025_v11 }
 0x363   : > { %931 = vmatprep.subr.bf16.mxu0 %v2022_v10  ;;  %972 = vmatprep.subr.bf16.mxu1 %v2027_v12 }
 0x366   : > { %932 = vmatpush1.bf16.msra.mxu0 %v2031_v13  ;;  %973 = vmatpush1.bf16.msra.mxu1 %v2037_v15 }
 0x367   : > { %933 = vmatprep.subr.bf16.mxu0 %v2034_v14  ;;  %974 = vmatprep.subr.bf16.mxu1 %v2039_v16 }
 0x36a   : > { %934 = vmatpush1.bf16.msra.mxu0 %v2043_v17  ;;  %975 = vmatpush1.bf16.msra.mxu1 %v2049_v19 }
 0x36b   : > { %935 = vmatprep.subr.bf16.mxu0 %v2046_v18  ;;  %976 = vmatprep.subr.bf16.mxu1 %v2051_v20 }
 0x36e   : > { %936 = vmatpush1.bf16.msra.mxu0 %v2055_v21  ;;  %977 = vmatpush1.bf16.msra.mxu1 %v2061_v23 }
 0x36f   : > { %937 = vmatprep.subr.bf16.mxu0 %v2058_v22  ;;  %978 = vmatprep.subr.bf16.mxu1 %v2063_v24 }
 0x372   : > { %938 = vmatpush1.bf16.msra.mxu0 %v2067_v26  ;;  %979 = vmatpush1.bf16.msra.mxu1 %v2071_v27 }
 0x373   : > { %1035 = vmatprep.subr.bf16.mxu0 %v1977_v58  ;;  %1076 = vmatprep.subr.bf16.mxu1 %v1984_v61 }
 0x428   : > { %v845_v44 = vpop.f32.mrb[12].mxu0  ;;  %v886_v45 = vpop.f32.mrb[12].mxu1 }
 0x429   : > { %v893_v46 = vadd.f32 %v1482_v32, %v845_v44  ;;  %v847_v47 = vpop.f32.mrb[13].mxu0  ;;  %v888_v48 = vpop.f32.mrb[13].mxu1  ;;  %v895_v57 = vadd.f32 %v1484_v49, %v886_v45 }
 0x42a   : > { %v894_v50 = vadd.f32 %v1483_v43, %v847_v47  ;;  %v849_v51 = vpop.f32.mrb[14].mxu0  ;;  %v890_v52 = vpop.f32.mrb[14].mxu1  ;;  %v896_v29 = vadd.f32 %v1485_v28, %v888_v48  ;;  %v1488_v47 = vld [vmem:[%s1801_s27 + $0x88] sm:$0xff] }
 0x42b   : > { %v897_v53 = vmul.f32 0.5, %v893_v46  ;;  %v850_v54 = vpop.f32.mrb[15].mxu0  ;;  %v891_v55 = vpop.f32.mrb[15].mxu1 }
 0x42c   : > { %v901_v56 = vmul.f32 0.5, %v894_v50  ;;  %v906_v30 = vmul.f32 0.5, %v896_v29 }
 0x42d   : > { %1588 = vtanh.f32 %v897_v53  ;;  %v1489_v53 = vld [vmem:[%s1801_s27 + $0x90] sm:$0xff] }
 0x42e   : > { %1590 = vtanh.f32 %v901_v56 }
 0x42f   : > { %1592 = vtanh.f32 %v895_v57 }
 0x430   : > { %1594 = vtanh.f32 %v906_v30 }
 0x437   : > { %v1589_v31 = vpop.eup %1588 }
 0x438   : > { %v1591_v33 = vpop.eup %1590  ;;  %v899_v34 = vmul.f32 0.5, %v1589_v31 }
 0x439   : > { %v903_v35 = vmul.f32 0.5, %v1591_v33  ;;  %v1593_v38 = vpop.eup %1592  ;;  %v1490_v33 = vld [vmem:[%s1801_s27 + $0x98] sm:$0xff] }
 0x43a   : > { %v900_v36 = vadd.f32 0.5, %v899_v34  ;;  %v1595_v42 = vpop.eup %1594 }
 0x43b   : > { %v904_v25 = vadd.f32 0.5, %v903_v35  ;;  %v908_v32 = vmul.f32 0.5, %v1595_v42 }
 0x43c   : > { %v911_v39 = vmul.f32 %v1593_v38, %v900_v36 }
 0x43d   : > { %v910_v40 = vmul.f32 %v904_v25, %v2201_v37  ;;  %v909_v43 = vadd.f32 0.5, %v908_v32  ;;  %v1487_v37 = vld [vmem:[%s1801_s27 + $0x80] sm:$0xff] }
 0x43f   : > { %v2244_v41 = vadd.f32 %v911_v39, %v910_v40 }
 0x441   : > { %1596 = vtanh.f32 %v2244_v41 }
 0x44b   : > { %v1597_v44 = vpop.eup %1596 }
 0x44c   : > { %v914_v45 = vmul.f32 %v1597_v44, %v909_v43 }
 0x44e   : > { %1486 = vst [vmem:[%s1803_s28 + $0x18] sm:$0xff] %v914_v45  ;;  %v922_v46 = vpack.c.bf16 %v914_v45, %v914_v45 }
 0x450   : > { %956 = vmatmul.mubr.bf16.vlgmr.msra.gmra.mrb[16].mxu0 %v922_v46  ;;  %997 = vmatmul.mubr.bf16.vlgmr.msra.gmra.mrb[16].mxu1 %v922_v46 }
 0x451   : > { %1036 = vmatpush1.bf16.msra.mxu0 %v1979_v59  ;;  %1077 = vmatpush1.bf16.msra.mxu1 %v1986_v62 }
 0x452   : > { %1037 = vmatprep.subr.bf16.mxu0 %v1981_v60  ;;  %1078 = vmatprep.subr.bf16.mxu1 %v1991_v0 }
 0x453   : > { %1067 = vmatprep.mubr.bf16.mxu0 %v1727_v63  ;;  %1108 = vmatprep.mubr.bf16.mxu1 %v1727_v63 }
 0x455   : > { %1038 = vmatpush1.bf16.msra.mxu0 %v1994_v1  ;;  %1079 = vmatpush1.bf16.msra.mxu1 %v2000_v3 }
 0x456   : > { %1039 = vmatprep.subr.bf16.mxu0 %v1997_v2  ;;  %1080 = vmatprep.subr.bf16.mxu1 %v2003_v4 }
 0x459   : > { %1040 = vmatpush1.bf16.msra.mxu0 %v2007_v5  ;;  %1081 = vmatpush1.bf16.msra.mxu1 %v2013_v7 }
 0x45a   : > { %1041 = vmatprep.subr.bf16.mxu0 %v2010_v6  ;;  %1082 = vmatprep.subr.bf16.mxu1 %v2015_v8 }
 0x45d   : > { %1042 = vmatpush1.bf16.msra.mxu0 %v2019_v9  ;;  %1083 = vmatpush1.bf16.msra.mxu1 %v2025_v11 }
 0x45e   : > { %1043 = vmatprep.subr.bf16.mxu0 %v2022_v10  ;;  %1084 = vmatprep.subr.bf16.mxu1 %v2027_v12 }
 0x461   : > { %1044 = vmatpush1.bf16.msra.mxu0 %v2031_v13  ;;  %1085 = vmatpush1.bf16.msra.mxu1 %v2037_v15 }
 0x462   : > { %1045 = vmatprep.subr.bf16.mxu0 %v2034_v14  ;;  %1086 = vmatprep.subr.bf16.mxu1 %v2039_v16 }
 0x465   : > { %1046 = vmatpush1.bf16.msra.mxu0 %v2043_v17  ;;  %1087 = vmatpush1.bf16.msra.mxu1 %v2049_v19 }
 0x466   : > { %1047 = vmatprep.subr.bf16.mxu0 %v2046_v18  ;;  %1088 = vmatprep.subr.bf16.mxu1 %v2051_v20 }
 0x469   : > { %1048 = vmatpush1.bf16.msra.mxu0 %v2055_v21  ;;  %1089 = vmatpush1.bf16.msra.mxu1 %v2061_v23 }
 0x46a   : > { %1049 = vmatprep.subr.bf16.mxu0 %v2058_v22  ;;  %1090 = vmatprep.subr.bf16.mxu1 %v2063_v24 }
 0x46d   : > { %1050 = vmatpush1.bf16.msra.mxu0 %v2067_v26  ;;  %1091 = vmatpush1.bf16.msra.mxu1 %v2071_v27 }
 0x46e   : > { %1147 = vmatprep.subr.bf16.mxu0 %v1977_v58  ;;  %1188 = vmatprep.subr.bf16.mxu1 %v1984_v61 }
 0x523   : > { %v957_v48 = vpop.f32.mrb[16].mxu0  ;;  %v998_v49 = vpop.f32.mrb[16].mxu1 }
 0x524   : > { %v1005_v50 = vadd.f32 %v1487_v37, %v957_v48  ;;  %v959_v51 = vpop.f32.mrb[17].mxu0  ;;  %v1000_v52 = vpop.f32.mrb[17].mxu1  ;;  %v1007_v31 = vadd.f32 %v1489_v53, %v998_v49 }
 0x525   : > { %v1006_v54 = vadd.f32 %v1488_v47, %v959_v51  ;;  %v961_v55 = vpop.f32.mrb[18].mxu0  ;;  %v1002_v56 = vpop.f32.mrb[18].mxu1  ;;  %v1008_v34 = vadd.f32 %v1490_v33, %v1000_v52  ;;  %v1639_v33 = vld [vmem:[#allocation2 + $0x10] sm:$0xff] }
 0x526   : > { %v1009_v57 = vmul.f32 0.5, %v1005_v50  ;;  %v962_v28 = vpop.f32.mrb[19].mxu0  ;;  %v1003_v29 = vpop.f32.mrb[19].mxu1 }
 0x527   : > { %v1013_v30 = vmul.f32 0.5, %v1006_v54  ;;  %v1018_v35 = vmul.f32 0.5, %v1008_v34  ;;  %v1640_v34 = vld [vmem:[#allocation2 + $0x28] sm:$0xff] }
 0x528   : > { %1598 = vtanh.f32 %v1009_v57 }
 0x529   : > { %1600 = vtanh.f32 %v1013_v30 }
 0x52a   : > { %1602 = vtanh.f32 %v1007_v31  ;;  %v1638_v31 = vld [vmem:[#allocation2] sm:$0xff] }
 0x52b   : > { %1604 = vtanh.f32 %v1018_v35  ;;  %v1641_v35 = vld [vmem:[#allocation2 + $0x38] sm:$0xff] }
 0x532   : > { %v1599_v36 = vpop.eup %1598 }
 0x533   : > { %v1601_v38 = vpop.eup %1600  ;;  %v1011_v25 = vmul.f32 0.5, %v1599_v36  ;;  %v1642_v36 = vld [vmem:[#allocation2 + $0x20] sm:$0xff] }
 0x534   : > { %v1015_v39 = vmul.f32 0.5, %v1601_v38  ;;  %v1603_v42 = vpop.eup %1602  ;;  %v1643_v38 = vld [vmem:[#allocation2 + $0x30] sm:$0xff] }
 0x535   : > { %v1012_v40 = vadd.f32 0.5, %v1011_v25  ;;  %v1605_v46 = vpop.eup %1604  ;;  %v1644_v25 = vld [vmem:[#allocation2 + $0x48] sm:$0xff] }
 0x536   : > { %v1016_v32 = vadd.f32 0.5, %v1015_v39  ;;  %v1020_v37 = vmul.f32 0.5, %v1605_v46  ;;  %v1645_v39 = vld [vmem:[#allocation2 + $0x58] sm:$0xff] }
 0x537   : > { %v1023_v43 = vmul.f32 %v1603_v42, %v1012_v40  ;;  %v1646_v40 = vld [vmem:[#allocation2 + $0x40] sm:$0xff]  ;;  %v1647_v42 = vld [vmem:[#allocation2 + $0x50] sm:$0xff]  ;;  %v1653_v46 = vld [vmem:[#allocation2 + $0x98] sm:$0xff] }
 0x538   : > { %v1022_v44 = vmul.f32 %v1016_v32, %v2244_v41  ;;  %v1021_v47 = vadd.f32 0.5, %v1020_v37  ;;  %v1648_v32 = vld [vmem:[#allocation2 + $0x68] sm:$0xff]  ;;  %v1654_v37 = vld [vmem:[#allocation2 + $0x80] sm:$0xff] }
 0x53a   : > { %v2287_v45 = vadd.f32 %v1023_v43, %v1022_v44  ;;  %v1649_v43 = vld [vmem:[#allocation2 + $0x78] sm:$0xff]  ;;  %v1650_v44 = vld [vmem:[#allocation2 + $0x60] sm:$0xff] }
 0x53c   : > { %1606 = vtanh.f32 %v2287_v45 }
 0x546   : > { %v1607_v48 = vpop.eup %1606 }
 0x547   : > { %v1026_v49 = vmul.f32 %v1607_v48, %v1021_v47  ;;  %v1655_v47 = vld [vmem:[#allocation2 + $0x90] sm:$0xff]  ;;  %v1656_v48 = vld [vmem:[#allocation2 + $0xa8] sm:$0xff] }
 0x549   : > { %1491 = vst [vmem:[%s1803_s28 + $0x20] sm:$0xff] %v1026_v49  ;;  %v1034_v50 = vpack.c.bf16 %v1026_v49, %v1026_v49  ;;  %v1657_v49 = vld [vmem:[#allocation2 + $0xb8] sm:$0xff] }
 0x54b   : > { %1068 = vmatmul.mubr.bf16.vlgmr.msra.gmra.mrb[20].mxu0 %v1034_v50  ;;  %1109 = vmatmul.mubr.bf16.vlgmr.msra.gmra.mrb[20].mxu1 %v1034_v50  ;;  %v1658_v50 = vld [vmem:[#allocation2 + $0xa0] sm:$0xff] }
 0x54c   : > { %1148 = vmatpush1.bf16.msra.mxu0 %v1979_v59  ;;  %1189 = vmatpush1.bf16.msra.mxu1 %v1986_v62  ;;  %v1492_v59 = vld [vmem:[%s1801_s27 + $0xa0] sm:$0xff] }
 0x54d   : > { %1149 = vmatprep.subr.bf16.mxu0 %v1981_v60  ;;  %1190 = vmatprep.subr.bf16.mxu1 %v1991_v0  ;;  %v1493_v60 = vld [vmem:[%s1801_s27 + $0xa8] sm:$0xff] }
 0x54e   : > { %1179 = vmatprep.mubr.bf16.mxu0 %v1727_v63  ;;  %1220 = vmatprep.mubr.bf16.mxu1 %v1727_v63 }
 0x550   : > { %1150 = vmatpush1.bf16.msra.mxu0 %v1994_v1  ;;  %1191 = vmatpush1.bf16.msra.mxu1 %v2000_v3 }
 0x551   : > { %1151 = vmatprep.subr.bf16.mxu0 %v1997_v2  ;;  %1192 = vmatprep.subr.bf16.mxu1 %v2003_v4  ;;  %v1494_v4 = vld [vmem:[%s1801_s27 + $0xb0] sm:$0xff] }
 0x554   : > { %1152 = vmatpush1.bf16.msra.mxu0 %v2007_v5  ;;  %1193 = vmatpush1.bf16.msra.mxu1 %v2013_v7 }
 0x555   : > { %1153 = vmatprep.subr.bf16.mxu0 %v2010_v6  ;;  %1194 = vmatprep.subr.bf16.mxu1 %v2015_v8 }
 0x558   : > { %1154 = vmatpush1.bf16.msra.mxu0 %v2019_v9  ;;  %1195 = vmatpush1.bf16.msra.mxu1 %v2025_v11 }
 0x559   : > { %1155 = vmatprep.subr.bf16.mxu0 %v2022_v10  ;;  %1196 = vmatprep.subr.bf16.mxu1 %v2027_v12 }
 0x55c   : > { %1156 = vmatpush1.bf16.msra.mxu0 %v2031_v13  ;;  %1197 = vmatpush1.bf16.msra.mxu1 %v2037_v15 }
 0x55d   : > { %1157 = vmatprep.subr.bf16.mxu0 %v2034_v14  ;;  %1198 = vmatprep.subr.bf16.mxu1 %v2039_v16 }
 0x560   : > { %1158 = vmatpush1.bf16.msra.mxu0 %v2043_v17  ;;  %1199 = vmatpush1.bf16.msra.mxu1 %v2049_v19 }
 0x561   : > { %1159 = vmatprep.subr.bf16.mxu0 %v2046_v18  ;;  %1200 = vmatprep.subr.bf16.mxu1 %v2051_v20 }
 0x564   : > { %1160 = vmatpush1.bf16.msra.mxu0 %v2055_v21  ;;  %1201 = vmatpush1.bf16.msra.mxu1 %v2061_v23 }
 0x565   : > { %1161 = vmatprep.subr.bf16.mxu0 %v2058_v22  ;;  %1202 = vmatprep.subr.bf16.mxu1 %v2063_v24 }
 0x568   : > { %1162 = vmatpush1.bf16.msra.mxu0 %v2067_v26  ;;  %1203 = vmatpush1.bf16.msra.mxu1 %v2071_v27 }
 0x569   : > { %1259 = vmatprep.subr.bf16.mxu0 %v1977_v58  ;;  %1300 = vmatprep.subr.bf16.mxu1 %v1984_v61  ;;  %v1495_v61 = vld [vmem:[%s1801_s27 + $0xb8] sm:$0xff] }
 0x61e   : > { %v1069_v62 = vpop.f32.mrb[20].mxu0  ;;  %v1110_v0 = vpop.f32.mrb[20].mxu1 }
 0x61f   : > { %v1117_v1 = vadd.f32 %v1492_v59, %v1069_v62  ;;  %v1071_v2 = vpop.f32.mrb[21].mxu0  ;;  %v1112_v3 = vpop.f32.mrb[21].mxu1  ;;  %v1119_v58 = vadd.f32 %v1494_v4, %v1110_v0  ;;  %v1659_v59 = vld [vmem:[#allocation2 + $0xc8] sm:$0xff] }
 0x620   : > { %v1118_v5 = vadd.f32 %v1493_v60, %v1071_v2  ;;  %v1073_v6 = vpop.f32.mrb[22].mxu0  ;;  %v1114_v7 = vpop.f32.mrb[22].mxu1  ;;  %v1120_v12 = vadd.f32 %v1495_v61, %v1112_v3  ;;  %v1497_v60 = vld [vmem:[%s1801_s27 + $0xc0] sm:$0xff]  ;;  %v1498_v62 = vld [vmem:[%s1801_s27 + $0xc8] sm:$0xff]  ;;  %v1499_v3 = vld [vmem:[%s1801_s27 + $0xd0] sm:$0xff] }
 0x621   : > { %v1121_v8 = vmul.f32 0.5, %v1117_v1  ;;  %v1074_v9 = vpop.f32.mrb[23].mxu0  ;;  %v1115_v10 = vpop.f32.mrb[23].mxu1 }
 0x622   : > { %v1125_v11 = vmul.f32 0.5, %v1118_v5  ;;  %v1130_v13 = vmul.f32 0.5, %v1120_v12 }
 0x623   : > { %1608 = vtanh.f32 %v1121_v8 }
 0x624   : > { %1610 = vtanh.f32 %v1125_v11 }
 0x625   : > { %1612 = vtanh.f32 %v1119_v58 }
 0x626   : > { %1614 = vtanh.f32 %v1130_v13 }
 0x62d   : > { %v1609_v14 = vpop.eup %1608 }
 0x62e   : > { %v1611_v15 = vpop.eup %1610  ;;  %v1123_v16 = vmul.f32 0.5, %v1609_v14 }
 0x62f   : > { %v1127_v17 = vmul.f32 0.5, %v1611_v15  ;;  %v1613_v41 = vpop.eup %1612 }
 0x630   : > { %v1124_v18 = vadd.f32 0.5, %v1123_v16  ;;  %v1615_v55 = vpop.eup %1614 }
 0x631   : > { %v1128_v51 = vadd.f32 0.5, %v1127_v17  ;;  %v1132_v56 = vmul.f32 0.5, %v1615_v55  ;;  %v1502_v55 = vld [vmem:[%s1801_s27 + $0xe0] sm:$0xff] }
 0x632   : > { %v1135_v52 = vmul.f32 %v1613_v41, %v1124_v18 }
 0x633   : > { %v1134_v53 = vmul.f32 %v1128_v51, %v2287_v45  ;;  %v1133_v57 = vadd.f32 0.5, %v1132_v56  ;;  %v1651_v45 = vld [vmem:[#allocation2 + $0x70] sm:$0xff]  ;;  %v1503_v56 = vld [vmem:[%s1801_s27 + $0xe8] sm:$0xff] }
 0x635   : > { %v2330_v54 = vadd.f32 %v1135_v52, %v1134_v53 }
 0x637   : > { %1616 = vtanh.f32 %v2330_v54 }
 0x641   : > { %v1617_v28 = vpop.eup %1616 }
 0x642   : > { %v1138_v29 = vmul.f32 %v1617_v28, %v1133_v57 }
 0x644   : > { %1496 = vst [vmem:[%s1803_s28 + $0x28] sm:$0xff] %v1138_v29  ;;  %v1146_v30 = vpack.c.bf16 %v1138_v29, %v1138_v29 }
 0x646   : > { %1180 = vmatmul.mubr.bf16.vlgmr.msra.gmra.mrb[24].mxu0 %v1146_v30  ;;  %1221 = vmatmul.mubr.bf16.vlgmr.msra.gmra.mrb[24].mxu1 %v1146_v30 }
 0x647   : > { %1260 = vmatpush1.bf16.msra.mxu0 %v1638_v31  ;;  %1301 = vmatpush1.bf16.msra.mxu1 %v1639_v33  ;;  %v1504_v31 = vld [vmem:[%s1801_s27 + $0xf0] sm:$0xff] }
 0x648   : > { %1261 = vmatprep.subr.bf16.mxu0 %v1640_v34  ;;  %1302 = vmatprep.subr.bf16.mxu1 %v1641_v35 }
 0x649   : > { %1291 = vmatprep.mubr.bf16.mxu0 %v1727_v63  ;;  %1332 = vmatprep.mubr.bf16.mxu1 %v1727_v63  ;;  %v1652_v63 = vld [vmem:[#allocation2 + $0x88] sm:$0xff] }
 0x64b   : > { %1262 = vmatpush1.bf16.msra.mxu0 %v1642_v36  ;;  %1303 = vmatpush1.bf16.msra.mxu1 %v1643_v38 }
 0x64c   : > { %1263 = vmatprep.subr.bf16.mxu0 %v1644_v25  ;;  %1304 = vmatprep.subr.bf16.mxu1 %v1645_v39 }
 0x64f   : > { %1264 = vmatpush1.bf16.msra.mxu0 %v1646_v40  ;;  %1305 = vmatpush1.bf16.msra.mxu1 %v1647_v42  ;;  %v1505_v42 = vld [vmem:[%s1801_s27 + $0xf8] sm:$0xff] }
 0x650   : > { %1265 = vmatprep.subr.bf16.mxu0 %v1648_v32  ;;  %1306 = vmatprep.subr.bf16.mxu1 %v1649_v43 }
 0x653   : > { %1266 = vmatpush1.bf16.msra.mxu0 %v1650_v44  ;;  %1307 = vmatpush1.bf16.msra.mxu1 %v1651_v45 }
 0x654   : > { %1267 = vmatprep.subr.bf16.mxu0 %v1652_v63  ;;  %1308 = vmatprep.subr.bf16.mxu1 %v1653_v46 }
 0x657   : > { %1268 = vmatpush1.bf16.msra.mxu0 %v1654_v37  ;;  %1309 = vmatpush1.bf16.msra.mxu1 %v1655_v47 }
 0x658   : > { %1269 = vmatprep.subr.bf16.mxu0 %v1656_v48  ;;  %1310 = vmatprep.subr.bf16.mxu1 %v1657_v49 }
 0x65b   : > { %1270 = vmatpush1.bf16.msra.mxu0 %v1658_v50  ;;  %1311 = vmatpush1.bf16.msra.mxu1 %v2049_v19 }
 0x65c   : > { %1271 = vmatprep.subr.bf16.mxu0 %v1659_v59  ;;  %1312 = vmatprep.subr.bf16.mxu1 %v2051_v20 }
 0x65f   : > { %1272 = vmatpush1.bf16.msra.mxu0 %v2055_v21  ;;  %1313 = vmatpush1.bf16.msra.mxu1 %v2061_v23 }
 0x660   : > { %1273 = vmatprep.subr.bf16.mxu0 %v2058_v22  ;;  %1314 = vmatprep.subr.bf16.mxu1 %v2063_v24 }
 0x663   : > { %1274 = vmatpush1.bf16.msra.mxu0 %v2067_v26  ;;  %1315 = vmatpush1.bf16.msra.mxu1 %v2071_v27  ;;  %v1500_v27 = vld [vmem:[%s1801_s27 + $0xd8] sm:$0xff]  ;;  %s1514_s27 = sshll.u32 %s1767_s13, 10  ;;  %s1660_s13 = scalar_lea.vmem %s2361_s3, 1024 }
 0x664   : > { %s2359_s6 = scalar_lea.hbm %s2409_s2, %s1514_s27  ;;  %p1661_p12 = scmp.ne.s32.totalorder %s2361_s3, %s1660_s13 }
 0x665   : > { %p1668_p2 = scmp.lt.s32.totalorder %s1666_s16, %s1660_s13 }
 0x666   : > { %p1662_p13 = pnand %p1661_p12, %p1784_p5 }
 0x667   : > { %p1669_p3 = por %p1668_p2, %p1667_p1 }
 0x668   : > { %p1663_p0 = pneg %p1662_p13 }
 0x66a   : > { %p1670_p4 = pnand %p1669_p3, %p1663_p0 }
 0x719   : > { %v1181_v19 = vpop.f32.mrb[24].mxu0  ;;  %v1222_v0 = vpop.f32.mrb[24].mxu1 }
 0x71a   : > { %v1229_v1 = vadd.f32 %v1497_v60, %v1181_v19  ;;  %v1183_v2 = vpop.f32.mrb[25].mxu0  ;;  %v1224_v20 = vpop.f32.mrb[25].mxu1  ;;  %v1231_v26 = vadd.f32 %v1499_v3, %v1222_v0 }
 0x71b   : > { %v1230_v21 = vadd.f32 %v1498_v62, %v1183_v2  ;;  %v1185_v4 = vpop.f32.mrb[26].mxu0  ;;  %v1226_v23 = vpop.f32.mrb[26].mxu1  ;;  %v1232_v7 = vadd.f32 %v1500_v27, %v1224_v20 }
 0x71c   : > { %v1233_v5 = vmul.f32 0.5, %v1229_v1  ;;  %v1186_v22 = vpop.f32.mrb[27].mxu0  ;;  %v1227_v6 = vpop.f32.mrb[27].mxu1 }
 0x71d   : > { %v1237_v24 = vmul.f32 0.5, %v1230_v21  ;;  %v1242_v8 = vmul.f32 0.5, %v1232_v7 }
 0x71e   : > { %1618 = vtanh.f32 %v1233_v5 }
 0x71f   : > { %1620 = vtanh.f32 %v1237_v24 }
 0x720   : > { %1622 = vtanh.f32 %v1231_v26 }
 0x721   : > { %1624 = vtanh.f32 %v1242_v8 }
 0x728   : > { %v1619_v9 = vpop.eup %1618 }
 0x729   : > { %v1621_v10 = vpop.eup %1620  ;;  %v1235_v11 = vmul.f32 0.5, %v1619_v9 }
 0x72a   : > { %v1239_v58 = vmul.f32 0.5, %v1621_v10  ;;  %v1623_v12 = vpop.eup %1622 }
 0x72b   : > { %v1236_v61 = vadd.f32 0.5, %v1235_v11  ;;  %v1625_v17 = vpop.eup %1624 }
 0x72c   : > { %v1240_v13 = vadd.f32 0.5, %v1239_v58  ;;  %v1244_v18 = vmul.f32 0.5, %v1625_v17 }
 0x72d   : > { %v1247_v14 = vmul.f32 %v1623_v12, %v1236_v61 }
 0x72e   : > { %v1246_v15 = vmul.f32 %v1240_v13, %v2330_v54  ;;  %v1245_v41 = vadd.f32 0.5, %v1244_v18 }
 0x730   : > { %v1248_v16 = vadd.f32 %v1247_v14, %v1246_v15 }
 0x732   : > { %1626 = vtanh.f32 %v1248_v16 }
 0x73c   : > { %v1627_v51 = vpop.eup %1626 }
 0x73d   : > { %v1250_v52 = vmul.f32 %v1627_v51, %v1245_v41 }
 0x73f   : > { %1501 = vst [vmem:[%s1803_s28 + $0x30] sm:$0xff] %v1250_v52  ;;  %v1258_v53 = vpack.c.bf16 %v1250_v52, %v1250_v52 }
 0x741   : > { %1292 = vmatmul.mubr.bf16.vlgmr.msra.gmra.mrb[28].mxu0 %v1258_v53  ;;  %1333 = vmatmul.mubr.bf16.vlgmr.msra.gmra.mrb[28].mxu1 %v1258_v53 }
 0x814   : > { %v1293_v57 = vpop.f32.mrb[28].mxu0  ;;  %v1334_v28 = vpop.f32.mrb[28].mxu1 }
 0x815   : > { %v1341_v29 = vadd.f32 %v1502_v55, %v1293_v57  ;;  %v1295_v30 = vpop.f32.mrb[29].mxu0  ;;  %v1336_v54 = vpop.f32.mrb[29].mxu1  ;;  %v1343_v40 = vadd.f32 %v1504_v31, %v1334_v28 }
 0x816   : > { %v1342_v33 = vadd.f32 %v1503_v56, %v1295_v30  ;;  %v1297_v34 = vpop.f32.mrb[30].mxu0  ;;  %v1338_v35 = vpop.f32.mrb[30].mxu1  ;;  %v1344_v32 = vadd.f32 %v1505_v42, %v1336_v54 }
 0x817   : > { %v1345_v36 = vmul.f32 0.5, %v1341_v29  ;;  %v1298_v38 = vpop.f32.mrb[31].mxu0  ;;  %v1339_v25 = vpop.f32.mrb[31].mxu1 }
 0x818   : > { %v1349_v39 = vmul.f32 0.5, %v1342_v33  ;;  %v1354_v43 = vmul.f32 0.5, %v1344_v32 }
 0x819   : > { %1628 = vtanh.f32 %v1345_v36 }
 0x81a   : > { %1630 = vtanh.f32 %v1349_v39 }
 0x81b   : > { %1632 = vtanh.f32 %v1343_v40 }
 0x81c   : > { %1634 = vtanh.f32 %v1354_v43 }
 0x823   : > { %v1629_v44 = vpop.eup %1628 }
 0x824   : > { %v1631_v45 = vpop.eup %1630  ;;  %v1347_v63 = vmul.f32 0.5, %v1629_v44 }
 0x825   : > { %v1351_v46 = vmul.f32 0.5, %v1631_v45  ;;  %v1633_v47 = vpop.eup %1632 }
 0x826   : > { %v1348_v37 = vadd.f32 0.5, %v1347_v63  ;;  %v1635_v60 = vpop.eup %1634 }
 0x827   : > { %v1352_v48 = vadd.f32 0.5, %v1351_v46  ;;  %v1356_v62 = vmul.f32 0.5, %v1635_v60 }
 0x828   : > { %v1359_v49 = vmul.f32 %v1633_v47, %v1348_v37 }
 0x829   : > { %v1358_v50 = vmul.f32 %v1352_v48, %v1248_v16  ;;  %v1357_v19 = vadd.f32 0.5, %v1356_v62 }
 0x82b   : > { %v1360_v59 = vadd.f32 %v1359_v49, %v1358_v50 }
 0x82d   : > { %1636 = vtanh.f32 %v1360_v59  ;;  %1366 = vst [vmem:[#allocation4] sm:$0xff] %v1360_v59 }
 0x837   : > { %v1637_v0 = vpop.eup %1636 }
 0x838   : > { %v1362_v1 = vmul.f32 %v1637_v0, %v1357_v19 }
 0x83a   : > { %1506 = vst [vmem:[%s1803_s28 + $0x38] sm:$0xff] %v1362_v1  ;;  %1365 = vst [vmem:[#allocation3] sm:$0xff] %v1362_v1 }
 0x83b   : > { %1673 = shalt.err (!%p1670_p4)
}
 0x83c   : > { %s1674_s21 = scalar_lea.hbm %s2359_s6, 1024  ;;  %s1678_s22 = scalar_lea.hbm %s2409_s2, 4096 }
 0x83d   : > { %p1675_p7 = scmp.ne.s32.totalorder %s2359_s6, %s1674_s21  ;;  %p1679_p10 = scmp.lt.u32.totalorder %s2359_s6, %s2409_s2 }
 0x83e   : > { %p1680_p11 = scmp.lt.u32.totalorder %s1678_s22, %s1674_s21  ;;  %p1682_p13 = scmp.lt.u32.totalorder %s1674_s21, %s2359_s6 }
 0x83f   : > { %p1676_p8 = pnand %p1675_p7, %p1784_p5 }
 0x840   : > { %p1681_p12 = por %p1680_p11, %p1679_p10 }
 0x841   : > { %p1677_p9 = pneg %p1676_p8 }
 0x842   : > { %p1683_p0 = por %p1682_p13, %p1681_p12 }
 0x844   : > { %p1684_p1 = pnand %p1683_p0, %p1677_p9 }
 0x846   : > { %1687 = shalt.err (!%p1684_p1)
}
 0x847   : > { %s1729_s25 = smov 128   ;;  %s1730_s26 = smov 8  }
 0x848   : > { %1515 = dma.vmem_to_hbm [thread:$0]  (%p1784_p5), %s2361_s3, 1024, %s2359_s6, %s2366_s7, %s1729_s25, %s1729_s25, %s1730_s26  }
 0x849 PF: > { %p1521_p2 = scmp.ge.s32.totalorder %s1724_s12, 2  ;;  %s1396_s29 = sand.u32 1, %s1712_s9  }
 0x84a   : > { %s1397_s30 = scalar_lea.sflag [#allocation7], %s1396_s29 }
 0x84b   : > { %p1518_p3 = pnand %p1521_p2, %p1788_p6 }
 0x84d   : > { %1707 = dma.done.wait (!%p1518_p3), %s1397_s30, 1024  }
 0x84e   : > { %1709 = vsyncadd (!%p1518_p3), %s1397_s30, 4294966272  ;;  %p12_p4 = scmp.ge.s32.totalorder %s1771_s15, 6   ;;  %s2412_s9 = smov %s1716_s10 }
 0x84f   : > { %s2413_s10 = smov %s1720_s11  ;;  %s2414_s11 = smov %s1782_s18 }
 0x850   : > { %s2415_s12 = smov %s1771_s15  ;;  %14 = sbr.rel (!%p12_p4) target bundleno = 3 (0x3), region = 128 }
 0x857   :  { %1402 = vsyncpa [#allocation7], 1 }
 0x858   :  { %1404 = vsyncpa [#allocation7 + $0x1], 1 }
 0x859   :  { %1405 = vsyncmov [#allocation5] }
 0x85c   :  { %s1406_s12 = vpop.sfrf %1405 }
 0x85d   :  { %p1512_p5 = scmp.ne.s32.totalorder %s1406_s12, 0 }
 0x85f   :  { %1410 = shalt.err (%p1512_p5)  }

</bundles_post_ra>
